<compile_context>
chip_gen: v6e
topology: v6e:2x2x1
jax: 0.10.0
libtpu: 0.0.40
codegen_flags: <defaults>
</compile_context>

<pallas_src>
import functools

import jax
import jax.numpy as jnp
from jax import lax
from jax.experimental import pallas as pl
from jax.experimental.pallas import tpu as pltpu

_VMEM = pl.BlockSpec(memory_space=pltpu.MemorySpace.VMEM)


# -------------------- fused ConvBlock kernel (conv+pool+bias+LeakyReLU) -----

def _conv_pool_kernel(xs_ref, w_ref, b_ref, o_ref, *, Cin, slope):
    """3x3 'same' conv -> 2x2 max pool -> +bias -> LeakyReLU, lane-dense.

    xs_ref: (16*Cin, L)  rows ordered (a*4+b)*Cin + ci, where
            xs[(a*4+b)*Cin+ci, n*Ho*Wo + ho*Wo + wo] == xpad[ci, n, 2ho+a, 2wo+b]
            (xpad has 1 row/col of zero padding before the image).
    w_ref:  (9, Cout, Cin)  tap-major weights, tap k = i*3+j.
    b_ref:  (Cout, 1)
    o_ref:  (Cout, L)       L = N*Ho*Wo padded to a multiple of 128 lanes.
    """
    f32 = jnp.float32
    Cout, L = o_ref.shape
    pooled = None
    # 4 pooling phases (di, dj); max over them == 2x2 max pool of the conv.
    for di in range(2):
        for dj in range(2):
            acc = jnp.zeros((Cout, L), f32)
            for i in range(3):
                for j in range(3):
                    ab = (di + i) * 4 + (dj + j)
                    piece = xs_ref[ab * Cin:(ab + 1) * Cin, :]   # (Cin, L) aligned
                    wk = w_ref[i * 3 + j]                        # (Cout, Cin)
                    if Cin == 1:
                        # Full-lane VPU broadcast FMA; avoids K=1 MXU matmuls.
                        acc = acc + wk * piece
                    else:
                        acc = acc + jnp.dot(wk, piece,
                                            preferred_element_type=f32)
            pooled = acc if pooled is None else jnp.maximum(pooled, acc)
    y = pooled + b_ref[...]                 # bias after max (monotone epilogue)
    o_ref[...] = jnp.where(y >= 0.0, y, slope * y)


def conv_block(x_cnhw, w9, b2, slope=0.01):
    """laia ConvBlock: Conv2d(3x3,s1,p1) -> LeakyReLU -> MaxPool2d(2).

    Layout: (C, N, H, W) in / (C, N, H//2, W//2) out (dropout=0, batchnorm=False).
    """
    Cin, N, H, W = x_cnhw.shape
    Cout = w9.shape[1]
    assert H % 2 == 0 and W % 2 == 0
    Ho, Wo = H // 2, W // 2
    L = N * Ho * Wo
    Lpad = -(-L // 128) * 128

    # 16 shift views: xs[a,b][ci,n,ho,wo] = xpad[ci,n,2ho+a,2wo+b].  This is
    # 4x the pooled-output bytes == 1x the input bytes (no im2col blow-up).
    xpad = jnp.pad(x_cnhw, ((0, 0), (0, 0), (1, 2), (1, 2)))
    shifts = [xpad[:, :, a:a + 2 * Ho:2, bb:bb + 2 * Wo:2]
              for a in range(4) for bb in range(4)]
    xs = jnp.stack(shifts, 0).reshape(16 * Cin, L)
    if Lpad != L:
        xs = jnp.pad(xs, ((0, 0), (0, Lpad - L)))

    kern = functools.partial(_conv_pool_kernel, Cin=Cin, slope=slope)
    flops = 2 * 4 * 9 * Cin * Cout * Lpad
    bytes_accessed = 4 * (16 * Cin * Lpad + 9 * Cout * Cin + Cout + Cout * Lpad)

    out = pl.pallas_call(
        kern,
        out_shape=jax.ShapeDtypeStruct((Cout, Lpad), jnp.float32),
        in_specs=[_VMEM, _VMEM, _VMEM],
        out_specs=_VMEM,
        cost_estimate=pl.CostEstimate(flops=flops, transcendentals=0,
                                      bytes_accessed=bytes_accessed),
    )(xs, w9, b2)
    return out[:, :L].reshape(Cout, N, Ho, Wo)


# -------------- fused bidirectional LSTM + Linear (single kernel) -----------

def _bilstm_linear_kernel(seq_ref, wih_ref, b_ref, whhf_ref, whhb_ref,
                          lwf_ref, lwb_ref, lb_ref, out_ref,
                          gx_ref, hf_ref, hb_ref, *, T, NP, H):
    f32 = jnp.float32
    G = 4 * H

    # Hoisted input projection for BOTH directions: one lane-dense MXU matmul.
    gx_ref[...] = (jnp.dot(seq_ref[...], wih_ref[...],
                           preferred_element_type=f32) + b_ref[...])

    # tanh lanes (gate g) within each 4H gate block; other lanes are sigmoid,
    # whose columns were pre-scaled by 0.5 offline: sigmoid(x)=0.5*(1+tanh(x/2)).
    lane = lax.broadcasted_iota(jnp.int32, (NP, G), 1)
    g_lane = (lane >= 2 * H) & (lane < 3 * H)

    def cell(gates, c_prev):
        y = jnp.tanh(gates)                       # single EUP pass per step
        act = jnp.where(g_lane, y, 0.5 * (y + 1.0))
        i_t = act[:, 0:H]
        f_t = act[:, H:2 * H]
        g_t = act[:, 2 * H:3 * H]
        o_t = act[:, 3 * H:4 * H]
        c_t = f_t * c_prev + i_t * g_t
        h_t = o_t * jnp.tanh(c_t)
        return h_t, c_t

    whh_f = whhf_ref[...]
    whh_b = whhb_ref[...]
    hf = jnp.zeros((NP, H), f32)
    cf = jnp.zeros((NP, H), f32)
    hb = jnp.zeros((NP, H), f32)
    cb = jnp.zeros((NP, H), f32)

    # Both directions in ONE serial loop (T steps instead of 2T); the two
    # chains are independent so the scheduler overlaps them.  Fully unrolled
    # (T is small and static here; use fori_loop with partial unroll at scale).
    for s in range(T):
        tb = T - 1 - s
        g_f = (gx_ref[s * NP:(s + 1) * NP, 0:G]
               + jnp.dot(hf, whh_f, preferred_element_type=f32))
        g_b = (gx_ref[tb * NP:(tb + 1) * NP, G:2 * G]
               + jnp.dot(hb, whh_b, preferred_element_type=f32))
        hf, cf = cell(g_f, cf)
        hb, cb = cell(g_b, cb)
        hf_ref[s * NP:(s + 1) * NP, :] = hf
        hb_ref[tb * NP:(tb + 1) * NP, :] = hb

    # Hoisted output Linear: one dense matmul per direction + one dense store.
    out_ref[...] = (jnp.dot(hf_ref[...], lwf_ref[...], preferred_element_type=f32)
                    + jnp.dot(hb_ref[...], lwb_ref[...], preferred_element_type=f32)
                    + lb_ref[...]).astype(out_ref.dtype)


def bilstm_linear(seq2d, T, NP, wih_cat, b_cat, whh_f, whh_b, lwf, lwb, lb):
    H = whh_f.shape[0]
    G = 4 * H
    I = seq2d.shape[1]
    Lpad = lwf.shape[1]
    kern = functools.partial(_bilstm_linear_kernel, T=T, NP=NP, H=H)
    flops = 2 * (T * NP * I * 2 * G + 2 * T * NP * H * G + 2 * T * NP * H * Lpad)
    transcendentals = 2 * T * NP * (G + H)
    bytes_accessed = 4 * (seq2d.size + wih_cat.size + b_cat.size + whh_f.size
                          + whh_b.size + lwf.size + lwb.size + lb.size
                          + T * NP * Lpad)
    # TODO(synk): for production shapes (H=256, T in the hundreds) tile the gx
    # projection over T-chunks and set vmem_limit_bytes explicitly (v7x 64MiB).
    return pl.pallas_call(
        kern,
        out_shape=jax.ShapeDtypeStruct((T * NP, Lpad), jnp.float32),
        in_specs=[_VMEM] * 8,
        out_specs=_VMEM,
        scratch_shapes=[pltpu.VMEM((T * NP, 2 * G), jnp.float32),
                        pltpu.VMEM((T * NP, H), jnp.float32),
                        pltpu.VMEM((T * NP, H), jnp.float32)],
        cost_estimate=pl.CostEstimate(flops=flops,
                                      transcendentals=transcendentals,
                                      bytes_accessed=bytes_accessed),
    )(seq2d, wih_cat, b_cat, whh_f, whh_b, lwf, lwb, lb)


# -------------------- one-time parameter preparation ------------------------

def prepare_params(p):
    """Kernel-ready parameter pytree (run once, outside the forward path)."""
    H = p["whh_f"].shape[0]
    G = 4 * H
    col = jnp.arange(G)
    # Pre-scale sigmoid gate columns (i, f, o) by 0.5 so the kernel needs a
    # single tanh per step: sigmoid(x) == 0.5 * (1 + tanh(x / 2)).
    gate_scale = jnp.where((col >= 2 * H) & (col < 3 * H),
                           jnp.float32(1.0), jnp.float32(0.5))

    def prep_conv(w, b):
        Cout, Cin = w.shape[0], w.shape[1]
        w9 = w.transpose(2, 3, 0, 1).reshape(9, Cout, Cin)   # tap-major
        return w9.astype(jnp.float32), b.reshape(Cout, 1).astype(jnp.float32)

    w1, b1 = prep_conv(p["conv1_w"], p["conv1_b"])
    w2, b2 = prep_conv(p["conv2_w"], p["conv2_b"])

    wih_cat = jnp.concatenate([p["wih_f"] * gate_scale,
                               p["wih_b"] * gate_scale], axis=1)
    b_cat = jnp.concatenate([p["b_f"] * gate_scale,
                             p["b_b"] * gate_scale], axis=1)
    whh_f = p["whh_f"] * gate_scale
    whh_b = p["whh_b"] * gate_scale

    L = p["lin_w"].shape[1]
    Lpad = max(128, -(-L // 128) * 128)        # lane-dense Linear output
    lwf = jnp.zeros((H, Lpad), jnp.float32).at[:, :L].set(p["lin_w"][:H])
    lwb = jnp.zeros((H, Lpad), jnp.float32).at[:, :L].set(p["lin_w"][H:])
    lb = jnp.zeros((1, Lpad), jnp.float32).at[:, :L].set(p["lin_b"])

    return dict(conv1_w=w1, conv1_b=b1, conv2_w=w2, conv2_b=b2,
                wih_cat=wih_cat, b_cat=b_cat, whh_f=whh_f, whh_b=whh_b,
                lin_wf=lwf, lin_wb=lwb, lin_b=lb)


# ------------------------------- forward ------------------------------------

def laia_crnn_forward(x_nchw, prep, fix_size, num_labels):
    # TODO(synk): PaddedTensor/PackedSequence variable-length handling and
    # rnn/lin dropout (identity in eval) are not implemented.
    x = x_nchw.transpose(1, 0, 2, 3)                      # NCHW -> (C, N, H, W)
    x = conv_block(x, prep["conv1_w"], prep["conv1_b"])
    x = conv_block(x, prep["conv2_w"], prep["conv2_b"])
    C, N, Hf, Wf = x.shape
    assert Hf == fix_size                                 # ImagePoolingSequencer("none-<fix>")
    T = Wf
    NP = max(8, -(-N // 8) * 8)                           # pad batch -> aligned tiles

    # (T=W, N, C*H) with feature index c*H + h (laia columnwise sequencer),
    # batch padded to NP rows per time step.
    seq = x.transpose(3, 1, 0, 2)                         # (W, N, C, H)
    seq = jnp.pad(seq, ((0, 0), (0, NP - N), (0, 0), (0, 0)))
    seq2d = seq.reshape(T * NP, C * Hf)

    out2d = bilstm_linear(seq2d, T, NP,
                          prep["wih_cat"], prep["b_cat"],
                          prep["whh_f"], prep["whh_b"],
                          prep["lin_wf"], prep["lin_wb"], prep["lin_b"])
    return out2d.reshape(T, NP, -1)[:, :N, :num_labels]   # (T, N, num_output_labels)


# -------------------------- pure-JAX reference ------------------------------

def reference_forward(x, params):
    def conv_ref(x, w, b):
        y = lax.conv_general_dilated(x, w, (1, 1), ((1, 1), (1, 1)),
                                     dimension_numbers=("NCHW", "OIHW", "NCHW"))
        y = y + b[None, :, None, None]
        y = jnp.where(y >= 0, y, 0.01 * y)
        N, C, H, W = y.shape
        return y.reshape(N, C, H // 2, 2, W // 2, 2).max(axis=(3, 5))

    x = conv_ref(x, params["conv1_w"], params["conv1_b"])
    x = conv_ref(x, params["conv2_w"], params["conv2_b"])
    N, C, H, W = x.shape
    seq = x.transpose(3, 0, 1, 2).reshape(W, N, C * H)

    def run_lstm(xs, wih, whh, b):
        Hh = whh.shape[0]

        def step(carry, x_t):
            h, c = carry
            g = x_t @ wih + h @ whh + b[0]
            i = jax.nn.sigmoid(g[:, :Hh])
            f = jax.nn.sigmoid(g[:, Hh:2 * Hh])
            gg = jnp.tanh(g[:, 2 * Hh:3 * Hh])
            o = jax.nn.sigmoid(g[:, 3 * Hh:])
            c = f * c + i * gg
            h = o * jnp.tanh(c)
            return (h, c), h

        init = (jnp.zeros((xs.shape[1], Hh)), jnp.zeros((xs.shape[1], Hh)))
        return lax.scan(step, init, xs)[1]

    hf = run_lstm(seq, params["wih_f"], params["whh_f"], params["b_f"])
    hb = run_lstm(seq[::-1], params["wih_b"], params["whh_b"], params["b_b"])[::-1]
    h = jnp.concatenate([hf, hb], axis=-1)
    return h @ params["lin_w"] + params["lin_b"][0]


# --------------------------------- main --------------------------------------

if __name__ == "__main__":
    # Model config (consistent with LaiaCRNN.__init__ at small scale):
    #   num_input_channels=1, cnn_num_features=[8,16], kernel=3x3, stride=1,
    #   dilation=1, activation=LeakyReLU, poolsize=2x2, dropout=0, batchnorm=False,
    #   image_sequencer="none-4", rnn_units=32, rnn_layers=1, bidirectional LSTM,
    #   num_output_labels=10, rnn_dropout=lin_dropout=0.0 (eval mode).
    C_in, C1, C2 = 1, 8, 16
    Nb, H_img, W_img = 2, 16, 32
    fix_size = H_img // 4            # two 2x2 max-pools -> feature height 4
    rnn_units = 32
    num_labels = 10
    I = C2 * fix_size                # RNN input size = ni * sequencer.fix_size = 64
    G = 4 * rnn_units

    key = jax.random.PRNGKey(0)
    ks = jax.random.split(key, 12)

    def u(k, shape, fan_in):
        s = 1.0 / jnp.sqrt(jnp.float32(fan_in))
        return jax.random.uniform(k, shape, jnp.float32, -s, s)

    params = dict(
        conv1_w=u(ks[0], (C1, C_in, 3, 3), C_in * 9),
        conv1_b=u(ks[1], (C1,), C_in * 9),
        conv2_w=u(ks[2], (C2, C1, 3, 3), C1 * 9),
        conv2_b=u(ks[3], (C2,), C1 * 9),
        # LSTM weights stored pre-transposed: W_ih^T (I, 4H), W_hh^T (H, 4H),
        # bias = b_ih + b_hh as (1, 4H).  Gate order [i, f, g, o].
        wih_f=u(ks[4], (I, G), rnn_units),
        whh_f=u(ks[5], (rnn_units, G), rnn_units),
        b_f=u(ks[6], (1, G), rnn_units),
        wih_b=u(ks[7], (I, G), rnn_units),
        whh_b=u(ks[8], (rnn_units, G), rnn_units),
        b_b=u(ks[9], (1, G), rnn_units),
        # Linear stored pre-transposed: (2H, L), bias (1, L).
        lin_w=u(ks[10], (2 * rnn_units, num_labels), 2 * rnn_units),
        lin_b=u(ks[11], (1, num_labels), 2 * rnn_units),
    )

    x = jax.random.normal(jax.random.PRNGKey(1), (Nb, C_in, H_img, W_img), jnp.float32)

    prep = prepare_params(params)                         # one-time param prep
    fwd = jax.jit(laia_crnn_forward, static_argnums=(2, 3))
    out = jax.block_until_ready(fwd(x, prep, fix_size, num_labels))
    ref = jax.block_until_ready(reference_forward(x, params))

    assert out.shape == (W_img // 4, Nb, num_labels), out.shape
    err = float(jnp.max(jnp.abs(out - ref)))
    assert jnp.allclose(out, ref, atol=5e-4, rtol=5e-4), err
    print("KERNEL_OK")
</pallas_src>

<mosaic_0001>
module attributes {stable_mosaic.version = 11 : i64} {
  func.func @_conv_pool_kernel(%arg0: memref<16x256xf32, #tpu.memory_space<vmem>>, %arg1: memref<9x8x1xf32, #tpu.memory_space<vmem>>, %arg2: memref<8x1xf32, #tpu.memory_space<vmem>>, %arg3: memref<8x256xf32, #tpu.memory_space<vmem>>) attributes {dimension_semantics = [], scalar_prefetch = 0 : i64, scratch_operands = 0 : i64, tpu.core_type = #tpu.core_type<tc>} {
    %cst = arith.constant 0.000000e+00 : f32
    %0 = vector.broadcast %cst : f32 to vector<8x256xf32>
    %c0 = arith.constant 0 : index
    %c0_0 = arith.constant 0 : index
    %1 = vector.load %arg0[%c0, %c0_0] : memref<16x256xf32, #tpu.memory_space<vmem>>, vector<1x256xf32>
    %c0_1 = arith.constant 0 : index
    %c0_2 = arith.constant 0 : index
    %c0_3 = arith.constant 0 : index
    %2 = vector.load %arg1[%c0_1, %c0_2, %c0_3] : memref<9x8x1xf32, #tpu.memory_space<vmem>>, vector<1x8x1xf32>
    %3 = vector.shape_cast %2 : vector<1x8x1xf32> to vector<8x1xf32>
    %4 = vector.broadcast %3 : vector<8x1xf32> to vector<8x256xf32>
    %5 = vector.broadcast %1 : vector<1x256xf32> to vector<8x256xf32>
    %6 = arith.mulf %4, %5 : vector<8x256xf32>
    %7 = arith.addf %0, %6 : vector<8x256xf32>
    %c1 = arith.constant 1 : index
    %c0_4 = arith.constant 0 : index
    %8 = vector.load %arg0[%c1, %c0_4] : memref<16x256xf32, #tpu.memory_space<vmem>>, vector<1x256xf32>
    %c1_5 = arith.constant 1 : index
    %c0_6 = arith.constant 0 : index
    %c0_7 = arith.constant 0 : index
    %9 = vector.load %arg1[%c1_5, %c0_6, %c0_7] : memref<9x8x1xf32, #tpu.memory_space<vmem>>, vector<1x8x1xf32>
    %10 = vector.shape_cast %9 : vector<1x8x1xf32> to vector<8x1xf32>
    %11 = vector.broadcast %10 : vector<8x1xf32> to vector<8x256xf32>
    %12 = vector.broadcast %8 : vector<1x256xf32> to vector<8x256xf32>
    %13 = arith.mulf %11, %12 : vector<8x256xf32>
    %14 = arith.addf %7, %13 : vector<8x256xf32>
    %c2 = arith.constant 2 : index
    %c0_8 = arith.constant 0 : index
    %15 = vector.load %arg0[%c2, %c0_8] : memref<16x256xf32, #tpu.memory_space<vmem>>, vector<1x256xf32>
    %c2_9 = arith.constant 2 : index
    %c0_10 = arith.constant 0 : index
    %c0_11 = arith.constant 0 : index
    %16 = vector.load %arg1[%c2_9, %c0_10, %c0_11] : memref<9x8x1xf32, #tpu.memory_space<vmem>>, vector<1x8x1xf32>
    %17 = vector.shape_cast %16 : vector<1x8x1xf32> to vector<8x1xf32>
    %18 = vector.broadcast %17 : vector<8x1xf32> to vector<8x256xf32>
    %19 = vector.broadcast %15 : vector<1x256xf32> to vector<8x256xf32>
    %20 = arith.mulf %18, %19 : vector<8x256xf32>
    %21 = arith.addf %14, %20 : vector<8x256xf32>
    %c4 = arith.constant 4 : index
    %c0_12 = arith.constant 0 : index
    %22 = vector.load %arg0[%c4, %c0_12] : memref<16x256xf32, #tpu.memory_space<vmem>>, vector<1x256xf32>
    %c3 = arith.constant 3 : index
    %c0_13 = arith.constant 0 : index
    %c0_14 = arith.constant 0 : index
    %23 = vector.load %arg1[%c3, %c0_13, %c0_14] : memref<9x8x1xf32, #tpu.memory_space<vmem>>, vector<1x8x1xf32>
    %24 = vector.shape_cast %23 : vector<1x8x1xf32> to vector<8x1xf32>
    %25 = vector.broadcast %24 : vector<8x1xf32> to vector<8x256xf32>
    %26 = vector.broadcast %22 : vector<1x256xf32> to vector<8x256xf32>
    %27 = arith.mulf %25, %26 : vector<8x256xf32>
    %28 = arith.addf %21, %27 : vector<8x256xf32>
    %c5 = arith.constant 5 : index
    %c0_15 = arith.constant 0 : index
    %29 = vector.load %arg0[%c5, %c0_15] : memref<16x256xf32, #tpu.memory_space<vmem>>, vector<1x256xf32>
    %c4_16 = arith.constant 4 : index
    %c0_17 = arith.constant 0 : index
    %c0_18 = arith.constant 0 : index
    %30 = vector.load %arg1[%c4_16, %c0_17, %c0_18] : memref<9x8x1xf32, #tpu.memory_space<vmem>>, vector<1x8x1xf32>
    %31 = vector.shape_cast %30 : vector<1x8x1xf32> to vector<8x1xf32>
    %32 = vector.broadcast %31 : vector<8x1xf32> to vector<8x256xf32>
    %33 = vector.broadcast %29 : vector<1x256xf32> to vector<8x256xf32>
    %34 = arith.mulf %32, %33 : vector<8x256xf32>
    %35 = arith.addf %28, %34 : vector<8x256xf32>
    %c6 = arith.constant 6 : index
    %c0_19 = arith.constant 0 : index
    %36 = vector.load %arg0[%c6, %c0_19] : memref<16x256xf32, #tpu.memory_space<vmem>>, vector<1x256xf32>
    %c5_20 = arith.constant 5 : index
    %c0_21 = arith.constant 0 : index
    %c0_22 = arith.constant 0 : index
    %37 = vector.load %arg1[%c5_20, %c0_21, %c0_22] : memref<9x8x1xf32, #tpu.memory_space<vmem>>, vector<1x8x1xf32>
    %38 = vector.shape_cast %37 : vector<1x8x1xf32> to vector<8x1xf32>
    %39 = vector.broadcast %38 : vector<8x1xf32> to vector<8x256xf32>
    %40 = vector.broadcast %36 : vector<1x256xf32> to vector<8x256xf32>
    %41 = arith.mulf %39, %40 : vector<8x256xf32>
    %42 = arith.addf %35, %41 : vector<8x256xf32>
    %c8 = arith.constant 8 : index
    %c0_23 = arith.constant 0 : index
    %43 = vector.load %arg0[%c8, %c0_23] : memref<16x256xf32, #tpu.memory_space<vmem>>, vector<1x256xf32>
    %c6_24 = arith.constant 6 : index
    %c0_25 = arith.constant 0 : index
    %c0_26 = arith.constant 0 : index
    %44 = vector.load %arg1[%c6_24, %c0_25, %c0_26] : memref<9x8x1xf32, #tpu.memory_space<vmem>>, vector<1x8x1xf32>
    %45 = vector.shape_cast %44 : vector<1x8x1xf32> to vector<8x1xf32>
    %46 = vector.broadcast %45 : vector<8x1xf32> to vector<8x256xf32>
    %47 = vector.broadcast %43 : vector<1x256xf32> to vector<8x256xf32>
    %48 = arith.mulf %46, %47 : vector<8x256xf32>
    %49 = arith.addf %42, %48 : vector<8x256xf32>
    %c9 = arith.constant 9 : index
    %c0_27 = arith.constant 0 : index
    %50 = vector.load %arg0[%c9, %c0_27] : memref<16x256xf32, #tpu.memory_space<vmem>>, vector<1x256xf32>
    %c7 = arith.constant 7 : index
    %c0_28 = arith.constant 0 : index
    %c0_29 = arith.constant 0 : index
    %51 = vector.load %arg1[%c7, %c0_28, %c0_29] : memref<9x8x1xf32, #tpu.memory_space<vmem>>, vector<1x8x1xf32>
    %52 = vector.shape_cast %51 : vector<1x8x1xf32> to vector<8x1xf32>
    %53 = vector.broadcast %52 : vector<8x1xf32> to vector<8x256xf32>
    %54 = vector.broadcast %50 : vector<1x256xf32> to vector<8x256xf32>
    %55 = arith.mulf %53, %54 : vector<8x256xf32>
    %56 = arith.addf %49, %55 : vector<8x256xf32>
    %c10 = arith.constant 10 : index
    %c0_30 = arith.constant 0 : index
    %57 = vector.load %arg0[%c10, %c0_30] : memref<16x256xf32, #tpu.memory_space<vmem>>, vector<1x256xf32>
    %c8_31 = arith.constant 8 : index
    %c0_32 = arith.constant 0 : index
    %c0_33 = arith.constant 0 : index
    %58 = vector.load %arg1[%c8_31, %c0_32, %c0_33] : memref<9x8x1xf32, #tpu.memory_space<vmem>>, vector<1x8x1xf32>
    %59 = vector.shape_cast %58 : vector<1x8x1xf32> to vector<8x1xf32>
    %60 = vector.broadcast %59 : vector<8x1xf32> to vector<8x256xf32>
    %61 = vector.broadcast %57 : vector<1x256xf32> to vector<8x256xf32>
    %62 = arith.mulf %60, %61 : vector<8x256xf32>
    %63 = arith.addf %56, %62 : vector<8x256xf32>
    %cst_34 = arith.constant 0.000000e+00 : f32
    %64 = vector.broadcast %cst_34 : f32 to vector<8x256xf32>
    %c1_35 = arith.constant 1 : index
    %c0_36 = arith.constant 0 : index
    %65 = vector.load %arg0[%c1_35, %c0_36] : memref<16x256xf32, #tpu.memory_space<vmem>>, vector<1x256xf32>
    %c0_37 = arith.constant 0 : index
    %c0_38 = arith.constant 0 : index
    %c0_39 = arith.constant 0 : index
    %66 = vector.load %arg1[%c0_37, %c0_38, %c0_39] : memref<9x8x1xf32, #tpu.memory_space<vmem>>, vector<1x8x1xf32>
    %67 = vector.shape_cast %66 : vector<1x8x1xf32> to vector<8x1xf32>
    %68 = vector.broadcast %67 : vector<8x1xf32> to vector<8x256xf32>
    %69 = vector.broadcast %65 : vector<1x256xf32> to vector<8x256xf32>
    %70 = arith.mulf %68, %69 : vector<8x256xf32>
    %71 = arith.addf %64, %70 : vector<8x256xf32>
    %c2_40 = arith.constant 2 : index
    %c0_41 = arith.constant 0 : index
    %72 = vector.load %arg0[%c2_40, %c0_41] : memref<16x256xf32, #tpu.memory_space<vmem>>, vector<1x256xf32>
    %c1_42 = arith.constant 1 : index
    %c0_43 = arith.constant 0 : index
    %c0_44 = arith.constant 0 : index
    %73 = vector.load %arg1[%c1_42, %c0_43, %c0_44] : memref<9x8x1xf32, #tpu.memory_space<vmem>>, vector<1x8x1xf32>
    %74 = vector.shape_cast %73 : vector<1x8x1xf32> to vector<8x1xf32>
    %75 = vector.broadcast %74 : vector<8x1xf32> to vector<8x256xf32>
    %76 = vector.broadcast %72 : vector<1x256xf32> to vector<8x256xf32>
    %77 = arith.mulf %75, %76 : vector<8x256xf32>
    %78 = arith.addf %71, %77 : vector<8x256xf32>
    %c3_45 = arith.constant 3 : index
    %c0_46 = arith.constant 0 : index
    %79 = vector.load %arg0[%c3_45, %c0_46] : memref<16x256xf32, #tpu.memory_space<vmem>>, vector<1x256xf32>
    %c2_47 = arith.constant 2 : index
    %c0_48 = arith.constant 0 : index
    %c0_49 = arith.constant 0 : index
    %80 = vector.load %arg1[%c2_47, %c0_48, %c0_49] : memref<9x8x1xf32, #tpu.memory_space<vmem>>, vector<1x8x1xf32>
    %81 = vector.shape_cast %80 : vector<1x8x1xf32> to vector<8x1xf32>
    %82 = vector.broadcast %81 : vector<8x1xf32> to vector<8x256xf32>
    %83 = vector.broadcast %79 : vector<1x256xf32> to vector<8x256xf32>
    %84 = arith.mulf %82, %83 : vector<8x256xf32>
    %85 = arith.addf %78, %84 : vector<8x256xf32>
    %c5_50 = arith.constant 5 : index
    %c0_51 = arith.constant 0 : index
    %86 = vector.load %arg0[%c5_50, %c0_51] : memref<16x256xf32, #tpu.memory_space<vmem>>, vector<1x256xf32>
    %c3_52 = arith.constant 3 : index
    %c0_53 = arith.constant 0 : index
    %c0_54 = arith.constant 0 : index
    %87 = vector.load %arg1[%c3_52, %c0_53, %c0_54] : memref<9x8x1xf32, #tpu.memory_space<vmem>>, vector<1x8x1xf32>
    %88 = vector.shape_cast %87 : vector<1x8x1xf32> to vector<8x1xf32>
    %89 = vector.broadcast %88 : vector<8x1xf32> to vector<8x256xf32>
    %90 = vector.broadcast %86 : vector<1x256xf32> to vector<8x256xf32>
    %91 = arith.mulf %89, %90 : vector<8x256xf32>
    %92 = arith.addf %85, %91 : vector<8x256xf32>
    %c6_55 = arith.constant 6 : index
    %c0_56 = arith.constant 0 : index
    %93 = vector.load %arg0[%c6_55, %c0_56] : memref<16x256xf32, #tpu.memory_space<vmem>>, vector<1x256xf32>
    %c4_57 = arith.constant 4 : index
    %c0_58 = arith.constant 0 : index
    %c0_59 = arith.constant 0 : index
    %94 = vector.load %arg1[%c4_57, %c0_58, %c0_59] : memref<9x8x1xf32, #tpu.memory_space<vmem>>, vector<1x8x1xf32>
    %95 = vector.shape_cast %94 : vector<1x8x1xf32> to vector<8x1xf32>
    %96 = vector.broadcast %95 : vector<8x1xf32> to vector<8x256xf32>
    %97 = vector.broadcast %93 : vector<1x256xf32> to vector<8x256xf32>
    %98 = arith.mulf %96, %97 : vector<8x256xf32>
    %99 = arith.addf %92, %98 : vector<8x256xf32>
    %c7_60 = arith.constant 7 : index
    %c0_61 = arith.constant 0 : index
    %100 = vector.load %arg0[%c7_60, %c0_61] : memref<16x256xf32, #tpu.memory_space<vmem>>, vector<1x256xf32>
    %c5_62 = arith.constant 5 : index
    %c0_63 = arith.constant 0 : index
    %c0_64 = arith.constant 0 : index
    %101 = vector.load %arg1[%c5_62, %c0_63, %c0_64] : memref<9x8x1xf32, #tpu.memory_space<vmem>>, vector<1x8x1xf32>
    %102 = vector.shape_cast %101 : vector<1x8x1xf32> to vector<8x1xf32>
    %103 = vector.broadcast %102 : vector<8x1xf32> to vector<8x256xf32>
    %104 = vector.broadcast %100 : vector<1x256xf32> to vector<8x256xf32>
    %105 = arith.mulf %103, %104 : vector<8x256xf32>
    %106 = arith.addf %99, %105 : vector<8x256xf32>
    %c9_65 = arith.constant 9 : index
    %c0_66 = arith.constant 0 : index
    %107 = vector.load %arg0[%c9_65, %c0_66] : memref<16x256xf32, #tpu.memory_space<vmem>>, vector<1x256xf32>
    %c6_67 = arith.constant 6 : index
    %c0_68 = arith.constant 0 : index
    %c0_69 = arith.constant 0 : index
    %108 = vector.load %arg1[%c6_67, %c0_68, %c0_69] : memref<9x8x1xf32, #tpu.memory_space<vmem>>, vector<1x8x1xf32>
    %109 = vector.shape_cast %108 : vector<1x8x1xf32> to vector<8x1xf32>
    %110 = vector.broadcast %109 : vector<8x1xf32> to vector<8x256xf32>
    %111 = vector.broadcast %107 : vector<1x256xf32> to vector<8x256xf32>
    %112 = arith.mulf %110, %111 : vector<8x256xf32>
    %113 = arith.addf %106, %112 : vector<8x256xf32>
    %c10_70 = arith.constant 10 : index
    %c0_71 = arith.constant 0 : index
    %114 = vector.load %arg0[%c10_70, %c0_71] : memref<16x256xf32, #tpu.memory_space<vmem>>, vector<1x256xf32>
    %c7_72 = arith.constant 7 : index
    %c0_73 = arith.constant 0 : index
    %c0_74 = arith.constant 0 : index
    %115 = vector.load %arg1[%c7_72, %c0_73, %c0_74] : memref<9x8x1xf32, #tpu.memory_space<vmem>>, vector<1x8x1xf32>
    %116 = vector.shape_cast %115 : vector<1x8x1xf32> to vector<8x1xf32>
    %117 = vector.broadcast %116 : vector<8x1xf32> to vector<8x256xf32>
    %118 = vector.broadcast %114 : vector<1x256xf32> to vector<8x256xf32>
    %119 = arith.mulf %117, %118 : vector<8x256xf32>
    %120 = arith.addf %113, %119 : vector<8x256xf32>
    %c11 = arith.constant 11 : index
    %c0_75 = arith.constant 0 : index
    %121 = vector.load %arg0[%c11, %c0_75] : memref<16x256xf32, #tpu.memory_space<vmem>>, vector<1x256xf32>
    %c8_76 = arith.constant 8 : index
    %c0_77 = arith.constant 0 : index
    %c0_78 = arith.constant 0 : index
    %122 = vector.load %arg1[%c8_76, %c0_77, %c0_78] : memref<9x8x1xf32, #tpu.memory_space<vmem>>, vector<1x8x1xf32>
    %123 = vector.shape_cast %122 : vector<1x8x1xf32> to vector<8x1xf32>
    %124 = vector.broadcast %123 : vector<8x1xf32> to vector<8x256xf32>
    %125 = vector.broadcast %121 : vector<1x256xf32> to vector<8x256xf32>
    %126 = arith.mulf %124, %125 : vector<8x256xf32>
    %127 = arith.addf %120, %126 : vector<8x256xf32>
    %128 = arith.maximumf %63, %127 : vector<8x256xf32>
    %cst_79 = arith.constant 0.000000e+00 : f32
    %129 = vector.broadcast %cst_79 : f32 to vector<8x256xf32>
    %c4_80 = arith.constant 4 : index
    %c0_81 = arith.constant 0 : index
    %130 = vector.load %arg0[%c4_80, %c0_81] : memref<16x256xf32, #tpu.memory_space<vmem>>, vector<1x256xf32>
    %c0_82 = arith.constant 0 : index
    %c0_83 = arith.constant 0 : index
    %c0_84 = arith.constant 0 : index
    %131 = vector.load %arg1[%c0_82, %c0_83, %c0_84] : memref<9x8x1xf32, #tpu.memory_space<vmem>>, vector<1x8x1xf32>
    %132 = vector.shape_cast %131 : vector<1x8x1xf32> to vector<8x1xf32>
    %133 = vector.broadcast %132 : vector<8x1xf32> to vector<8x256xf32>
    %134 = vector.broadcast %130 : vector<1x256xf32> to vector<8x256xf32>
    %135 = arith.mulf %133, %134 : vector<8x256xf32>
    %136 = arith.addf %129, %135 : vector<8x256xf32>
    %c5_85 = arith.constant 5 : index
    %c0_86 = arith.constant 0 : index
    %137 = vector.load %arg0[%c5_85, %c0_86] : memref<16x256xf32, #tpu.memory_space<vmem>>, vector<1x256xf32>
    %c1_87 = arith.constant 1 : index
    %c0_88 = arith.constant 0 : index
    %c0_89 = arith.constant 0 : index
    %138 = vector.load %arg1[%c1_87, %c0_88, %c0_89] : memref<9x8x1xf32, #tpu.memory_space<vmem>>, vector<1x8x1xf32>
    %139 = vector.shape_cast %138 : vector<1x8x1xf32> to vector<8x1xf32>
    %140 = vector.broadcast %139 : vector<8x1xf32> to vector<8x256xf32>
    %141 = vector.broadcast %137 : vector<1x256xf32> to vector<8x256xf32>
    %142 = arith.mulf %140, %141 : vector<8x256xf32>
    %143 = arith.addf %136, %142 : vector<8x256xf32>
    %c6_90 = arith.constant 6 : index
    %c0_91 = arith.constant 0 : index
    %144 = vector.load %arg0[%c6_90, %c0_91] : memref<16x256xf32, #tpu.memory_space<vmem>>, vector<1x256xf32>
    %c2_92 = arith.constant 2 : index
    %c0_93 = arith.constant 0 : index
    %c0_94 = arith.constant 0 : index
    %145 = vector.load %arg1[%c2_92, %c0_93, %c0_94] : memref<9x8x1xf32, #tpu.memory_space<vmem>>, vector<1x8x1xf32>
    %146 = vector.shape_cast %145 : vector<1x8x1xf32> to vector<8x1xf32>
    %147 = vector.broadcast %146 : vector<8x1xf32> to vector<8x256xf32>
    %148 = vector.broadcast %144 : vector<1x256xf32> to vector<8x256xf32>
    %149 = arith.mulf %147, %148 : vector<8x256xf32>
    %150 = arith.addf %143, %149 : vector<8x256xf32>
    %c8_95 = arith.constant 8 : index
    %c0_96 = arith.constant 0 : index
    %151 = vector.load %arg0[%c8_95, %c0_96] : memref<16x256xf32, #tpu.memory_space<vmem>>, vector<1x256xf32>
    %c3_97 = arith.constant 3 : index
    %c0_98 = arith.constant 0 : index
    %c0_99 = arith.constant 0 : index
    %152 = vector.load %arg1[%c3_97, %c0_98, %c0_99] : memref<9x8x1xf32, #tpu.memory_space<vmem>>, vector<1x8x1xf32>
    %153 = vector.shape_cast %152 : vector<1x8x1xf32> to vector<8x1xf32>
    %154 = vector.broadcast %153 : vector<8x1xf32> to vector<8x256xf32>
    %155 = vector.broadcast %151 : vector<1x256xf32> to vector<8x256xf32>
    %156 = arith.mulf %154, %155 : vector<8x256xf32>
    %157 = arith.addf %150, %156 : vector<8x256xf32>
    %c9_100 = arith.constant 9 : index
    %c0_101 = arith.constant 0 : index
    %158 = vector.load %arg0[%c9_100, %c0_101] : memref<16x256xf32, #tpu.memory_space<vmem>>, vector<1x256xf32>
    %c4_102 = arith.constant 4 : index
    %c0_103 = arith.constant 0 : index
    %c0_104 = arith.constant 0 : index
    %159 = vector.load %arg1[%c4_102, %c0_103, %c0_104] : memref<9x8x1xf32, #tpu.memory_space<vmem>>, vector<1x8x1xf32>
    %160 = vector.shape_cast %159 : vector<1x8x1xf32> to vector<8x1xf32>
    %161 = vector.broadcast %160 : vector<8x1xf32> to vector<8x256xf32>
    %162 = vector.broadcast %158 : vector<1x256xf32> to vector<8x256xf32>
    %163 = arith.mulf %161, %162 : vector<8x256xf32>
    %164 = arith.addf %157, %163 : vector<8x256xf32>
    %c10_105 = arith.constant 10 : index
    %c0_106 = arith.constant 0 : index
    %165 = vector.load %arg0[%c10_105, %c0_106] : memref<16x256xf32, #tpu.memory_space<vmem>>, vector<1x256xf32>
    %c5_107 = arith.constant 5 : index
    %c0_108 = arith.constant 0 : index
    %c0_109 = arith.constant 0 : index
    %166 = vector.load %arg1[%c5_107, %c0_108, %c0_109] : memref<9x8x1xf32, #tpu.memory_space<vmem>>, vector<1x8x1xf32>
    %167 = vector.shape_cast %166 : vector<1x8x1xf32> to vector<8x1xf32>
    %168 = vector.broadcast %167 : vector<8x1xf32> to vector<8x256xf32>
    %169 = vector.broadcast %165 : vector<1x256xf32> to vector<8x256xf32>
    %170 = arith.mulf %168, %169 : vector<8x256xf32>
    %171 = arith.addf %164, %170 : vector<8x256xf32>
    %c12 = arith.constant 12 : index
    %c0_110 = arith.constant 0 : index
    %172 = vector.load %arg0[%c12, %c0_110] : memref<16x256xf32, #tpu.memory_space<vmem>>, vector<1x256xf32>
    %c6_111 = arith.constant 6 : index
    %c0_112 = arith.constant 0 : index
    %c0_113 = arith.constant 0 : index
    %173 = vector.load %arg1[%c6_111, %c0_112, %c0_113] : memref<9x8x1xf32, #tpu.memory_space<vmem>>, vector<1x8x1xf32>
    %174 = vector.shape_cast %173 : vector<1x8x1xf32> to vector<8x1xf32>
    %175 = vector.broadcast %174 : vector<8x1xf32> to vector<8x256xf32>
    %176 = vector.broadcast %172 : vector<1x256xf32> to vector<8x256xf32>
    %177 = arith.mulf %175, %176 : vector<8x256xf32>
    %178 = arith.addf %171, %177 : vector<8x256xf32>
    %c13 = arith.constant 13 : index
    %c0_114 = arith.constant 0 : index
    %179 = vector.load %arg0[%c13, %c0_114] : memref<16x256xf32, #tpu.memory_space<vmem>>, vector<1x256xf32>
    %c7_115 = arith.constant 7 : index
    %c0_116 = arith.constant 0 : index
    %c0_117 = arith.constant 0 : index
    %180 = vector.load %arg1[%c7_115, %c0_116, %c0_117] : memref<9x8x1xf32, #tpu.memory_space<vmem>>, vector<1x8x1xf32>
    %181 = vector.shape_cast %180 : vector<1x8x1xf32> to vector<8x1xf32>
    %182 = vector.broadcast %181 : vector<8x1xf32> to vector<8x256xf32>
    %183 = vector.broadcast %179 : vector<1x256xf32> to vector<8x256xf32>
    %184 = arith.mulf %182, %183 : vector<8x256xf32>
    %185 = arith.addf %178, %184 : vector<8x256xf32>
    %c14 = arith.constant 14 : index
    %c0_118 = arith.constant 0 : index
    %186 = vector.load %arg0[%c14, %c0_118] : memref<16x256xf32, #tpu.memory_space<vmem>>, vector<1x256xf32>
    %c8_119 = arith.constant 8 : index
    %c0_120 = arith.constant 0 : index
    %c0_121 = arith.constant 0 : index
    %187 = vector.load %arg1[%c8_119, %c0_120, %c0_121] : memref<9x8x1xf32, #tpu.memory_space<vmem>>, vector<1x8x1xf32>
    %188 = vector.shape_cast %187 : vector<1x8x1xf32> to vector<8x1xf32>
    %189 = vector.broadcast %188 : vector<8x1xf32> to vector<8x256xf32>
    %190 = vector.broadcast %186 : vector<1x256xf32> to vector<8x256xf32>
    %191 = arith.mulf %189, %190 : vector<8x256xf32>
    %192 = arith.addf %185, %191 : vector<8x256xf32>
    %193 = arith.maximumf %128, %192 : vector<8x256xf32>
    %cst_122 = arith.constant 0.000000e+00 : f32
    %194 = vector.broadcast %cst_122 : f32 to vector<8x256xf32>
    %c5_123 = arith.constant 5 : index
    %c0_124 = arith.constant 0 : index
    %195 = vector.load %arg0[%c5_123, %c0_124] : memref<16x256xf32, #tpu.memory_space<vmem>>, vector<1x256xf32>
    %c0_125 = arith.constant 0 : index
    %c0_126 = arith.constant 0 : index
    %c0_127 = arith.constant 0 : index
    %196 = vector.load %arg1[%c0_125, %c0_126, %c0_127] : memref<9x8x1xf32, #tpu.memory_space<vmem>>, vector<1x8x1xf32>
    %197 = vector.shape_cast %196 : vector<1x8x1xf32> to vector<8x1xf32>
    %198 = vector.broadcast %197 : vector<8x1xf32> to vector<8x256xf32>
    %199 = vector.broadcast %195 : vector<1x256xf32> to vector<8x256xf32>
    %200 = arith.mulf %198, %199 : vector<8x256xf32>
    %201 = arith.addf %194, %200 : vector<8x256xf32>
    %c6_128 = arith.constant 6 : index
    %c0_129 = arith.constant 0 : index
    %202 = vector.load %arg0[%c6_128, %c0_129] : memref<16x256xf32, #tpu.memory_space<vmem>>, vector<1x256xf32>
    %c1_130 = arith.constant 1 : index
    %c0_131 = arith.constant 0 : index
    %c0_132 = arith.constant 0 : index
    %203 = vector.load %arg1[%c1_130, %c0_131, %c0_132] : memref<9x8x1xf32, #tpu.memory_space<vmem>>, vector<1x8x1xf32>
    %204 = vector.shape_cast %203 : vector<1x8x1xf32> to vector<8x1xf32>
    %205 = vector.broadcast %204 : vector<8x1xf32> to vector<8x256xf32>
    %206 = vector.broadcast %202 : vector<1x256xf32> to vector<8x256xf32>
    %207 = arith.mulf %205, %206 : vector<8x256xf32>
    %208 = arith.addf %201, %207 : vector<8x256xf32>
    %c7_133 = arith.constant 7 : index
    %c0_134 = arith.constant 0 : index
    %209 = vector.load %arg0[%c7_133, %c0_134] : memref<16x256xf32, #tpu.memory_space<vmem>>, vector<1x256xf32>
    %c2_135 = arith.constant 2 : index
    %c0_136 = arith.constant 0 : index
    %c0_137 = arith.constant 0 : index
    %210 = vector.load %arg1[%c2_135, %c0_136, %c0_137] : memref<9x8x1xf32, #tpu.memory_space<vmem>>, vector<1x8x1xf32>
    %211 = vector.shape_cast %210 : vector<1x8x1xf32> to vector<8x1xf32>
    %212 = vector.broadcast %211 : vector<8x1xf32> to vector<8x256xf32>
    %213 = vector.broadcast %209 : vector<1x256xf32> to vector<8x256xf32>
    %214 = arith.mulf %212, %213 : vector<8x256xf32>
    %215 = arith.addf %208, %214 : vector<8x256xf32>
    %c9_138 = arith.constant 9 : index
    %c0_139 = arith.constant 0 : index
    %216 = vector.load %arg0[%c9_138, %c0_139] : memref<16x256xf32, #tpu.memory_space<vmem>>, vector<1x256xf32>
    %c3_140 = arith.constant 3 : index
    %c0_141 = arith.constant 0 : index
    %c0_142 = arith.constant 0 : index
    %217 = vector.load %arg1[%c3_140, %c0_141, %c0_142] : memref<9x8x1xf32, #tpu.memory_space<vmem>>, vector<1x8x1xf32>
    %218 = vector.shape_cast %217 : vector<1x8x1xf32> to vector<8x1xf32>
    %219 = vector.broadcast %218 : vector<8x1xf32> to vector<8x256xf32>
    %220 = vector.broadcast %216 : vector<1x256xf32> to vector<8x256xf32>
    %221 = arith.mulf %219, %220 : vector<8x256xf32>
    %222 = arith.addf %215, %221 : vector<8x256xf32>
    %c10_143 = arith.constant 10 : index
    %c0_144 = arith.constant 0 : index
    %223 = vector.load %arg0[%c10_143, %c0_144] : memref<16x256xf32, #tpu.memory_space<vmem>>, vector<1x256xf32>
    %c4_145 = arith.constant 4 : index
    %c0_146 = arith.constant 0 : index
    %c0_147 = arith.constant 0 : index
    %224 = vector.load %arg1[%c4_145, %c0_146, %c0_147] : memref<9x8x1xf32, #tpu.memory_space<vmem>>, vector<1x8x1xf32>
    %225 = vector.shape_cast %224 : vector<1x8x1xf32> to vector<8x1xf32>
    %226 = vector.broadcast %225 : vector<8x1xf32> to vector<8x256xf32>
    %227 = vector.broadcast %223 : vector<1x256xf32> to vector<8x256xf32>
    %228 = arith.mulf %226, %227 : vector<8x256xf32>
    %229 = arith.addf %222, %228 : vector<8x256xf32>
    %c11_148 = arith.constant 11 : index
    %c0_149 = arith.constant 0 : index
    %230 = vector.load %arg0[%c11_148, %c0_149] : memref<16x256xf32, #tpu.memory_space<vmem>>, vector<1x256xf32>
    %c5_150 = arith.constant 5 : index
    %c0_151 = arith.constant 0 : index
    %c0_152 = arith.constant 0 : index
    %231 = vector.load %arg1[%c5_150, %c0_151, %c0_152] : memref<9x8x1xf32, #tpu.memory_space<vmem>>, vector<1x8x1xf32>
    %232 = vector.shape_cast %231 : vector<1x8x1xf32> to vector<8x1xf32>
    %233 = vector.broadcast %232 : vector<8x1xf32> to vector<8x256xf32>
    %234 = vector.broadcast %230 : vector<1x256xf32> to vector<8x256xf32>
    %235 = arith.mulf %233, %234 : vector<8x256xf32>
    %236 = arith.addf %229, %235 : vector<8x256xf32>
    %c13_153 = arith.constant 13 : index
    %c0_154 = arith.constant 0 : index
    %237 = vector.load %arg0[%c13_153, %c0_154] : memref<16x256xf32, #tpu.memory_space<vmem>>, vector<1x256xf32>
    %c6_155 = arith.constant 6 : index
    %c0_156 = arith.constant 0 : index
    %c0_157 = arith.constant 0 : index
    %238 = vector.load %arg1[%c6_155, %c0_156, %c0_157] : memref<9x8x1xf32, #tpu.memory_space<vmem>>, vector<1x8x1xf32>
    %239 = vector.shape_cast %238 : vector<1x8x1xf32> to vector<8x1xf32>
    %240 = vector.broadcast %239 : vector<8x1xf32> to vector<8x256xf32>
    %241 = vector.broadcast %237 : vector<1x256xf32> to vector<8x256xf32>
    %242 = arith.mulf %240, %241 : vector<8x256xf32>
    %243 = arith.addf %236, %242 : vector<8x256xf32>
    %c14_158 = arith.constant 14 : index
    %c0_159 = arith.constant 0 : index
    %244 = vector.load %arg0[%c14_158, %c0_159] : memref<16x256xf32, #tpu.memory_space<vmem>>, vector<1x256xf32>
    %c7_160 = arith.constant 7 : index
    %c0_161 = arith.constant 0 : index
    %c0_162 = arith.constant 0 : index
    %245 = vector.load %arg1[%c7_160, %c0_161, %c0_162] : memref<9x8x1xf32, #tpu.memory_space<vmem>>, vector<1x8x1xf32>
    %246 = vector.shape_cast %245 : vector<1x8x1xf32> to vector<8x1xf32>
    %247 = vector.broadcast %246 : vector<8x1xf32> to vector<8x256xf32>
    %248 = vector.broadcast %244 : vector<1x256xf32> to vector<8x256xf32>
    %249 = arith.mulf %247, %248 : vector<8x256xf32>
    %250 = arith.addf %243, %249 : vector<8x256xf32>
    %c15 = arith.constant 15 : index
    %c0_163 = arith.constant 0 : index
    %251 = vector.load %arg0[%c15, %c0_163] : memref<16x256xf32, #tpu.memory_space<vmem>>, vector<1x256xf32>
    %c8_164 = arith.constant 8 : index
    %c0_165 = arith.constant 0 : index
    %c0_166 = arith.constant 0 : index
    %252 = vector.load %arg1[%c8_164, %c0_165, %c0_166] : memref<9x8x1xf32, #tpu.memory_space<vmem>>, vector<1x8x1xf32>
    %253 = vector.shape_cast %252 : vector<1x8x1xf32> to vector<8x1xf32>
    %254 = vector.broadcast %253 : vector<8x1xf32> to vector<8x256xf32>
    %255 = vector.broadcast %251 : vector<1x256xf32> to vector<8x256xf32>
    %256 = arith.mulf %254, %255 : vector<8x256xf32>
    %257 = arith.addf %250, %256 : vector<8x256xf32>
    %258 = arith.maximumf %193, %257 : vector<8x256xf32>
    %c0_167 = arith.constant 0 : index
    %c0_168 = arith.constant 0 : index
    %259 = vector.load %arg2[%c0_167, %c0_168] : memref<8x1xf32, #tpu.memory_space<vmem>>, vector<8x1xf32>
    %260 = vector.broadcast %259 : vector<8x1xf32> to vector<8x256xf32>
    %261 = arith.addf %258, %260 : vector<8x256xf32>
    %cst_169 = arith.constant 0.000000e+00 : f32
    %262 = vector.broadcast %cst_169 : f32 to vector<8x256xf32>
    %263 = arith.cmpf oge, %261, %262 : vector<8x256xf32>
    %cst_170 = arith.constant 0.00999999977 : f32
    %264 = vector.broadcast %cst_170 : f32 to vector<8x256xf32>
    %265 = arith.mulf %264, %261 : vector<8x256xf32>
    %266 = arith.select %263, %261, %265 : vector<8x256xi1>, vector<8x256xf32>
    %c0_171 = arith.constant 0 : index
    %c0_172 = arith.constant 0 : index
    %267 = vector.load %arg3[%c0_171, %c0_172] : memref<8x256xf32, #tpu.memory_space<vmem>>, vector<8x256xf32>
    tpu.vector_store %arg3[%c0_171, %c0_172], %266 {strides = array<i32>} : memref<8x256xf32, #tpu.memory_space<vmem>>, vector<8x256xf32>,
    return
  }
}

module attributes {stable_mosaic.version = 11 : i64} {
  func.func @_conv_pool_kernel(%arg0: memref<128x128xf32, #tpu.memory_space<vmem>>, %arg1: memref<9x16x8xf32, #tpu.memory_space<vmem>>, %arg2: memref<16x1xf32, #tpu.memory_space<vmem>>, %arg3: memref<16x128xf32, #tpu.memory_space<vmem>>) attributes {dimension_semantics = [], scalar_prefetch = 0 : i64, scratch_operands = 0 : i64, tpu.core_type = #tpu.core_type<tc>} {
    %cst = arith.constant 0.000000e+00 : f32
    %0 = vector.broadcast %cst : f32 to vector<16x128xf32>
    %c0 = arith.constant 0 : index
    %c0_0 = arith.constant 0 : index
    %1 = vector.load %arg0[%c0, %c0_0] : memref<128x128xf32, #tpu.memory_space<vmem>>, vector<8x128xf32>
    %c0_1 = arith.constant 0 : index
    %c0_2 = arith.constant 0 : index
    %c0_3 = arith.constant 0 : index
    %2 = vector.load %arg1[%c0_1, %c0_2, %c0_3] : memref<9x16x8xf32, #tpu.memory_space<vmem>>, vector<1x16x8xf32>
    %3 = vector.shape_cast %2 : vector<1x16x8xf32> to vector<16x8xf32>
    %cst_4 = arith.constant dense<0.000000e+00> : vector<16x128xf32>
    %4 = tpu.matmul %3, %1, %cst_4 {dimension_numbers = #tpu.dot_dimension_numbers<[1], [0], [0], [1], [0, 0, 1, 1], [], []>} : vector<16x8xf32>, vector<8x128xf32>, vector<16x128xf32> -> vector<16x128xf32>
    %5 = arith.addf %0, %4 : vector<16x128xf32>
    %c8 = arith.constant 8 : index
    %c0_5 = arith.constant 0 : index
    %6 = vector.load %arg0[%c8, %c0_5] : memref<128x128xf32, #tpu.memory_space<vmem>>, vector<8x128xf32>
    %c1 = arith.constant 1 : index
    %c0_6 = arith.constant 0 : index
    %c0_7 = arith.constant 0 : index
    %7 = vector.load %arg1[%c1, %c0_6, %c0_7] : memref<9x16x8xf32, #tpu.memory_space<vmem>>, vector<1x16x8xf32>
    %8 = vector.shape_cast %7 : vector<1x16x8xf32> to vector<16x8xf32>
    %cst_8 = arith.constant dense<0.000000e+00> : vector<16x128xf32>
    %9 = tpu.matmul %8, %6, %cst_8 {dimension_numbers = #tpu.dot_dimension_numbers<[1], [0], [0], [1], [0, 0, 1, 1], [], []>} : vector<16x8xf32>, vector<8x128xf32>, vector<16x128xf32> -> vector<16x128xf32>
    %10 = arith.addf %5, %9 : vector<16x128xf32>
    %c16 = arith.constant 16 : index
    %c0_9 = arith.constant 0 : index
    %11 = vector.load %arg0[%c16, %c0_9] : memref<128x128xf32, #tpu.memory_space<vmem>>, vector<8x128xf32>
    %c2 = arith.constant 2 : index
    %c0_10 = arith.constant 0 : index
    %c0_11 = arith.constant 0 : index
    %12 = vector.load %arg1[%c2, %c0_10, %c0_11] : memref<9x16x8xf32, #tpu.memory_space<vmem>>, vector<1x16x8xf32>
    %13 = vector.shape_cast %12 : vector<1x16x8xf32> to vector<16x8xf32>
    %cst_12 = arith.constant dense<0.000000e+00> : vector<16x128xf32>
    %14 = tpu.matmul %13, %11, %cst_12 {dimension_numbers = #tpu.dot_dimension_numbers<[1], [0], [0], [1], [0, 0, 1, 1], [], []>} : vector<16x8xf32>, vector<8x128xf32>, vector<16x128xf32> -> vector<16x128xf32>
    %15 = arith.addf %10, %14 : vector<16x128xf32>
    %c32 = arith.constant 32 : index
    %c0_13 = arith.constant 0 : index
    %16 = vector.load %arg0[%c32, %c0_13] : memref<128x128xf32, #tpu.memory_space<vmem>>, vector<8x128xf32>
    %c3 = arith.constant 3 : index
    %c0_14 = arith.constant 0 : index
    %c0_15 = arith.constant 0 : index
    %17 = vector.load %arg1[%c3, %c0_14, %c0_15] : memref<9x16x8xf32, #tpu.memory_space<vmem>>, vector<1x16x8xf32>
    %18 = vector.shape_cast %17 : vector<1x16x8xf32> to vector<16x8xf32>
    %cst_16 = arith.constant dense<0.000000e+00> : vector<16x128xf32>
    %19 = tpu.matmul %18, %16, %cst_16 {dimension_numbers = #tpu.dot_dimension_numbers<[1], [0], [0], [1], [0, 0, 1, 1], [], []>} : vector<16x8xf32>, vector<8x128xf32>, vector<16x128xf32> -> vector<16x128xf32>
    %20 = arith.addf %15, %19 : vector<16x128xf32>
    %c40 = arith.constant 40 : index
    %c0_17 = arith.constant 0 : index
    %21 = vector.load %arg0[%c40, %c0_17] : memref<128x128xf32, #tpu.memory_space<vmem>>, vector<8x128xf32>
    %c4 = arith.constant 4 : index
    %c0_18 = arith.constant 0 : index
    %c0_19 = arith.constant 0 : index
    %22 = vector.load %arg1[%c4, %c0_18, %c0_19] : memref<9x16x8xf32, #tpu.memory_space<vmem>>, vector<1x16x8xf32>
    %23 = vector.shape_cast %22 : vector<1x16x8xf32> to vector<16x8xf32>
    %cst_20 = arith.constant dense<0.000000e+00> : vector<16x128xf32>
    %24 = tpu.matmul %23, %21, %cst_20 {dimension_numbers = #tpu.dot_dimension_numbers<[1], [0], [0], [1], [0, 0, 1, 1], [], []>} : vector<16x8xf32>, vector<8x128xf32>, vector<16x128xf32> -> vector<16x128xf32>
    %25 = arith.addf %20, %24 : vector<16x128xf32>
    %c48 = arith.constant 48 : index
    %c0_21 = arith.constant 0 : index
    %26 = vector.load %arg0[%c48, %c0_21] : memref<128x128xf32, #tpu.memory_space<vmem>>, vector<8x128xf32>
    %c5 = arith.constant 5 : index
    %c0_22 = arith.constant 0 : index
    %c0_23 = arith.constant 0 : index
    %27 = vector.load %arg1[%c5, %c0_22, %c0_23] : memref<9x16x8xf32, #tpu.memory_space<vmem>>, vector<1x16x8xf32>
    %28 = vector.shape_cast %27 : vector<1x16x8xf32> to vector<16x8xf32>
    %cst_24 = arith.constant dense<0.000000e+00> : vector<16x128xf32>
    %29 = tpu.matmul %28, %26, %cst_24 {dimension_numbers = #tpu.dot_dimension_numbers<[1], [0], [0], [1], [0, 0, 1, 1], [], []>} : vector<16x8xf32>, vector<8x128xf32>, vector<16x128xf32> -> vector<16x128xf32>
    %30 = arith.addf %25, %29 : vector<16x128xf32>
    %c64 = arith.constant 64 : index
    %c0_25 = arith.constant 0 : index
    %31 = vector.load %arg0[%c64, %c0_25] : memref<128x128xf32, #tpu.memory_space<vmem>>, vector<8x128xf32>
    %c6 = arith.constant 6 : index
    %c0_26 = arith.constant 0 : index
    %c0_27 = arith.constant 0 : index
    %32 = vector.load %arg1[%c6, %c0_26, %c0_27] : memref<9x16x8xf32, #tpu.memory_space<vmem>>, vector<1x16x8xf32>
    %33 = vector.shape_cast %32 : vector<1x16x8xf32> to vector<16x8xf32>
    %cst_28 = arith.constant dense<0.000000e+00> : vector<16x128xf32>
    %34 = tpu.matmul %33, %31, %cst_28 {dimension_numbers = #tpu.dot_dimension_numbers<[1], [0], [0], [1], [0, 0, 1, 1], [], []>} : vector<16x8xf32>, vector<8x128xf32>, vector<16x128xf32> -> vector<16x128xf32>
    %35 = arith.addf %30, %34 : vector<16x128xf32>
    %c72 = arith.constant 72 : index
    %c0_29 = arith.constant 0 : index
    %36 = vector.load %arg0[%c72, %c0_29] : memref<128x128xf32, #tpu.memory_space<vmem>>, vector<8x128xf32>
    %c7 = arith.constant 7 : index
    %c0_30 = arith.constant 0 : index
    %c0_31 = arith.constant 0 : index
    %37 = vector.load %arg1[%c7, %c0_30, %c0_31] : memref<9x16x8xf32, #tpu.memory_space<vmem>>, vector<1x16x8xf32>
    %38 = vector.shape_cast %37 : vector<1x16x8xf32> to vector<16x8xf32>
    %cst_32 = arith.constant dense<0.000000e+00> : vector<16x128xf32>
    %39 = tpu.matmul %38, %36, %cst_32 {dimension_numbers = #tpu.dot_dimension_numbers<[1], [0], [0], [1], [0, 0, 1, 1], [], []>} : vector<16x8xf32>, vector<8x128xf32>, vector<16x128xf32> -> vector<16x128xf32>
    %40 = arith.addf %35, %39 : vector<16x128xf32>
    %c80 = arith.constant 80 : index
    %c0_33 = arith.constant 0 : index
    %41 = vector.load %arg0[%c80, %c0_33] : memref<128x128xf32, #tpu.memory_space<vmem>>, vector<8x128xf32>
    %c8_34 = arith.constant 8 : index
    %c0_35 = arith.constant 0 : index
    %c0_36 = arith.constant 0 : index
    %42 = vector.load %arg1[%c8_34, %c0_35, %c0_36] : memref<9x16x8xf32, #tpu.memory_space<vmem>>, vector<1x16x8xf32>
    %43 = vector.shape_cast %42 : vector<1x16x8xf32> to vector<16x8xf32>
    %cst_37 = arith.constant dense<0.000000e+00> : vector<16x128xf32>
    %44 = tpu.matmul %43, %41, %cst_37 {dimension_numbers = #tpu.dot_dimension_numbers<[1], [0], [0], [1], [0, 0, 1, 1], [], []>} : vector<16x8xf32>, vector<8x128xf32>, vector<16x128xf32> -> vector<16x128xf32>
    %45 = arith.addf %40, %44 : vector<16x128xf32>
    %cst_38 = arith.constant 0.000000e+00 : f32
    %46 = vector.broadcast %cst_38 : f32 to vector<16x128xf32>
    %c8_39 = arith.constant 8 : index
    %c0_40 = arith.constant 0 : index
    %47 = vector.load %arg0[%c8_39, %c0_40] : memref<128x128xf32, #tpu.memory_space<vmem>>, vector<8x128xf32>
    %c0_41 = arith.constant 0 : index
    %c0_42 = arith.constant 0 : index
    %c0_43 = arith.constant 0 : index
    %48 = vector.load %arg1[%c0_41, %c0_42, %c0_43] : memref<9x16x8xf32, #tpu.memory_space<vmem>>, vector<1x16x8xf32>
    %49 = vector.shape_cast %48 : vector<1x16x8xf32> to vector<16x8xf32>
    %cst_44 = arith.constant dense<0.000000e+00> : vector<16x128xf32>
    %50 = tpu.matmul %49, %47, %cst_44 {dimension_numbers = #tpu.dot_dimension_numbers<[1], [0], [0], [1], [0, 0, 1, 1], [], []>} : vector<16x8xf32>, vector<8x128xf32>, vector<16x128xf32> -> vector<16x128xf32>
    %51 = arith.addf %46, %50 : vector<16x128xf32>
    %c16_45 = arith.constant 16 : index
    %c0_46 = arith.constant 0 : index
    %52 = vector.load %arg0[%c16_45, %c0_46] : memref<128x128xf32, #tpu.memory_space<vmem>>, vector<8x128xf32>
    %c1_47 = arith.constant 1 : index
    %c0_48 = arith.constant 0 : index
    %c0_49 = arith.constant 0 : index
    %53 = vector.load %arg1[%c1_47, %c0_48, %c0_49] : memref<9x16x8xf32, #tpu.memory_space<vmem>>, vector<1x16x8xf32>
    %54 = vector.shape_cast %53 : vector<1x16x8xf32> to vector<16x8xf32>
    %cst_50 = arith.constant dense<0.000000e+00> : vector<16x128xf32>
    %55 = tpu.matmul %54, %52, %cst_50 {dimension_numbers = #tpu.dot_dimension_numbers<[1], [0], [0], [1], [0, 0, 1, 1], [], []>} : vector<16x8xf32>, vector<8x128xf32>, vector<16x128xf32> -> vector<16x128xf32>
    %56 = arith.addf %51, %55 : vector<16x128xf32>
    %c24 = arith.constant 24 : index
    %c0_51 = arith.constant 0 : index
    %57 = vector.load %arg0[%c24, %c0_51] : memref<128x128xf32, #tpu.memory_space<vmem>>, vector<8x128xf32>
    %c2_52 = arith.constant 2 : index
    %c0_53 = arith.constant 0 : index
    %c0_54 = arith.constant 0 : index
    %58 = vector.load %arg1[%c2_52, %c0_53, %c0_54] : memref<9x16x8xf32, #tpu.memory_space<vmem>>, vector<1x16x8xf32>
    %59 = vector.shape_cast %58 : vector<1x16x8xf32> to vector<16x8xf32>
    %cst_55 = arith.constant dense<0.000000e+00> : vector<16x128xf32>
    %60 = tpu.matmul %59, %57, %cst_55 {dimension_numbers = #tpu.dot_dimension_numbers<[1], [0], [0], [1], [0, 0, 1, 1], [], []>} : vector<16x8xf32>, vector<8x128xf32>, vector<16x128xf32> -> vector<16x128xf32>
    %61 = arith.addf %56, %60 : vector<16x128xf32>
    %c40_56 = arith.constant 40 : index
    %c0_57 = arith.constant 0 : index
    %62 = vector.load %arg0[%c40_56, %c0_57] : memref<128x128xf32, #tpu.memory_space<vmem>>, vector<8x128xf32>
    %c3_58 = arith.constant 3 : index
    %c0_59 = arith.constant 0 : index
    %c0_60 = arith.constant 0 : index
    %63 = vector.load %arg1[%c3_58, %c0_59, %c0_60] : memref<9x16x8xf32, #tpu.memory_space<vmem>>, vector<1x16x8xf32>
    %64 = vector.shape_cast %63 : vector<1x16x8xf32> to vector<16x8xf32>
    %cst_61 = arith.constant dense<0.000000e+00> : vector<16x128xf32>
    %65 = tpu.matmul %64, %62, %cst_61 {dimension_numbers = #tpu.dot_dimension_numbers<[1], [0], [0], [1], [0, 0, 1, 1], [], []>} : vector<16x8xf32>, vector<8x128xf32>, vector<16x128xf32> -> vector<16x128xf32>
    %66 = arith.addf %61, %65 : vector<16x128xf32>
    %c48_62 = arith.constant 48 : index
    %c0_63 = arith.constant 0 : index
    %67 = vector.load %arg0[%c48_62, %c0_63] : memref<128x128xf32, #tpu.memory_space<vmem>>, vector<8x128xf32>
    %c4_64 = arith.constant 4 : index
    %c0_65 = arith.constant 0 : index
    %c0_66 = arith.constant 0 : index
    %68 = vector.load %arg1[%c4_64, %c0_65, %c0_66] : memref<9x16x8xf32, #tpu.memory_space<vmem>>, vector<1x16x8xf32>
    %69 = vector.shape_cast %68 : vector<1x16x8xf32> to vector<16x8xf32>
    %cst_67 = arith.constant dense<0.000000e+00> : vector<16x128xf32>
    %70 = tpu.matmul %69, %67, %cst_67 {dimension_numbers = #tpu.dot_dimension_numbers<[1], [0], [0], [1], [0, 0, 1, 1], [], []>} : vector<16x8xf32>, vector<8x128xf32>, vector<16x128xf32> -> vector<16x128xf32>
    %71 = arith.addf %66, %70 : vector<16x128xf32>
    %c56 = arith.constant 56 : index
    %c0_68 = arith.constant 0 : index
    %72 = vector.load %arg0[%c56, %c0_68] : memref<128x128xf32, #tpu.memory_space<vmem>>, vector<8x128xf32>
    %c5_69 = arith.constant 5 : index
    %c0_70 = arith.constant 0 : index
    %c0_71 = arith.constant 0 : index
    %73 = vector.load %arg1[%c5_69, %c0_70, %c0_71] : memref<9x16x8xf32, #tpu.memory_space<vmem>>, vector<1x16x8xf32>
    %74 = vector.shape_cast %73 : vector<1x16x8xf32> to vector<16x8xf32>
    %cst_72 = arith.constant dense<0.000000e+00> : vector<16x128xf32>
    %75 = tpu.matmul %74, %72, %cst_72 {dimension_numbers = #tpu.dot_dimension_numbers<[1], [0], [0], [1], [0, 0, 1, 1], [], []>} : vector<16x8xf32>, vector<8x128xf32>, vector<16x128xf32> -> vector<16x128xf32>
    %76 = arith.addf %71, %75 : vector<16x128xf32>
    %c72_73 = arith.constant 72 : index
    %c0_74 = arith.constant 0 : index
    %77 = vector.load %arg0[%c72_73, %c0_74] : memref<128x128xf32, #tpu.memory_space<vmem>>, vector<8x128xf32>
    %c6_75 = arith.constant 6 : index
    %c0_76 = arith.constant 0 : index
    %c0_77 = arith.constant 0 : index
    %78 = vector.load %arg1[%c6_75, %c0_76, %c0_77] : memref<9x16x8xf32, #tpu.memory_space<vmem>>, vector<1x16x8xf32>
    %79 = vector.shape_cast %78 : vector<1x16x8xf32> to vector<16x8xf32>
    %cst_78 = arith.constant dense<0.000000e+00> : vector<16x128xf32>
    %80 = tpu.matmul %79, %77, %cst_78 {dimension_numbers = #tpu.dot_dimension_numbers<[1], [0], [0], [1], [0, 0, 1, 1], [], []>} : vector<16x8xf32>, vector<8x128xf32>, vector<16x128xf32> -> vector<16x128xf32>
    %81 = arith.addf %76, %80 : vector<16x128xf32>
    %c80_79 = arith.constant 80 : index
    %c0_80 = arith.constant 0 : index
    %82 = vector.load %arg0[%c80_79, %c0_80] : memref<128x128xf32, #tpu.memory_space<vmem>>, vector<8x128xf32>
    %c7_81 = arith.constant 7 : index
    %c0_82 = arith.constant 0 : index
    %c0_83 = arith.constant 0 : index
    %83 = vector.load %arg1[%c7_81, %c0_82, %c0_83] : memref<9x16x8xf32, #tpu.memory_space<vmem>>, vector<1x16x8xf32>
    %84 = vector.shape_cast %83 : vector<1x16x8xf32> to vector<16x8xf32>
    %cst_84 = arith.constant dense<0.000000e+00> : vector<16x128xf32>
    %85 = tpu.matmul %84, %82, %cst_84 {dimension_numbers = #tpu.dot_dimension_numbers<[1], [0], [0], [1], [0, 0, 1, 1], [], []>} : vector<16x8xf32>, vector<8x128xf32>, vector<16x128xf32> -> vector<16x128xf32>
    %86 = arith.addf %81, %85 : vector<16x128xf32>
    %c88 = arith.constant 88 : index
    %c0_85 = arith.constant 0 : index
    %87 = vector.load %arg0[%c88, %c0_85] : memref<128x128xf32, #tpu.memory_space<vmem>>, vector<8x128xf32>
    %c8_86 = arith.constant 8 : index
    %c0_87 = arith.constant 0 : index
    %c0_88 = arith.constant 0 : index
    %88 = vector.load %arg1[%c8_86, %c0_87, %c0_88] : memref<9x16x8xf32, #tpu.memory_space<vmem>>, vector<1x16x8xf32>
    %89 = vector.shape_cast %88 : vector<1x16x8xf32> to vector<16x8xf32>
    %cst_89 = arith.constant dense<0.000000e+00> : vector<16x128xf32>
    %90 = tpu.matmul %89, %87, %cst_89 {dimension_numbers = #tpu.dot_dimension_numbers<[1], [0], [0], [1], [0, 0, 1, 1], [], []>} : vector<16x8xf32>, vector<8x128xf32>, vector<16x128xf32> -> vector<16x128xf32>
    %91 = arith.addf %86, %90 : vector<16x128xf32>
    %92 = arith.maximumf %45, %91 : vector<16x128xf32>
    %cst_90 = arith.constant 0.000000e+00 : f32
    %93 = vector.broadcast %cst_90 : f32 to vector<16x128xf32>
    %c32_91 = arith.constant 32 : index
    %c0_92 = arith.constant 0 : index
    %94 = vector.load %arg0[%c32_91, %c0_92] : memref<128x128xf32, #tpu.memory_space<vmem>>, vector<8x128xf32>
    %c0_93 = arith.constant 0 : index
    %c0_94 = arith.constant 0 : index
    %c0_95 = arith.constant 0 : index
    %95 = vector.load %arg1[%c0_93, %c0_94, %c0_95] : memref<9x16x8xf32, #tpu.memory_space<vmem>>, vector<1x16x8xf32>
    %96 = vector.shape_cast %95 : vector<1x16x8xf32> to vector<16x8xf32>
    %cst_96 = arith.constant dense<0.000000e+00> : vector<16x128xf32>
    %97 = tpu.matmul %96, %94, %cst_96 {dimension_numbers = #tpu.dot_dimension_numbers<[1], [0], [0], [1], [0, 0, 1, 1], [], []>} : vector<16x8xf32>, vector<8x128xf32>, vector<16x128xf32> -> vector<16x128xf32>
    %98 = arith.addf %93, %97 : vector<16x128xf32>
    %c40_97 = arith.constant 40 : index
    %c0_98 = arith.constant 0 : index
    %99 = vector.load %arg0[%c40_97, %c0_98] : memref<128x128xf32, #tpu.memory_space<vmem>>, vector<8x128xf32>
    %c1_99 = arith.constant 1 : index
    %c0_100 = arith.constant 0 : index
    %c0_101 = arith.constant 0 : index
    %100 = vector.load %arg1[%c1_99, %c0_100, %c0_101] : memref<9x16x8xf32, #tpu.memory_space<vmem>>, vector<1x16x8xf32>
    %101 = vector.shape_cast %100 : vector<1x16x8xf32> to vector<16x8xf32>
    %cst_102 = arith.constant dense<0.000000e+00> : vector<16x128xf32>
    %102 = tpu.matmul %101, %99, %cst_102 {dimension_numbers = #tpu.dot_dimension_numbers<[1], [0], [0], [1], [0, 0, 1, 1], [], []>} : vector<16x8xf32>, vector<8x128xf32>, vector<16x128xf32> -> vector<16x128xf32>
    %103 = arith.addf %98, %102 : vector<16x128xf32>
    %c48_103 = arith.constant 48 : index
    %c0_104 = arith.constant 0 : index
    %104 = vector.load %arg0[%c48_103, %c0_104] : memref<128x128xf32, #tpu.memory_space<vmem>>, vector<8x128xf32>
    %c2_105 = arith.constant 2 : index
    %c0_106 = arith.constant 0 : index
    %c0_107 = arith.constant 0 : index
    %105 = vector.load %arg1[%c2_105, %c0_106, %c0_107] : memref<9x16x8xf32, #tpu.memory_space<vmem>>, vector<1x16x8xf32>
    %106 = vector.shape_cast %105 : vector<1x16x8xf32> to vector<16x8xf32>
    %cst_108 = arith.constant dense<0.000000e+00> : vector<16x128xf32>
    %107 = tpu.matmul %106, %104, %cst_108 {dimension_numbers = #tpu.dot_dimension_numbers<[1], [0], [0], [1], [0, 0, 1, 1], [], []>} : vector<16x8xf32>, vector<8x128xf32>, vector<16x128xf32> -> vector<16x128xf32>
    %108 = arith.addf %103, %107 : vector<16x128xf32>
    %c64_109 = arith.constant 64 : index
    %c0_110 = arith.constant 0 : index
    %109 = vector.load %arg0[%c64_109, %c0_110] : memref<128x128xf32, #tpu.memory_space<vmem>>, vector<8x128xf32>
    %c3_111 = arith.constant 3 : index
    %c0_112 = arith.constant 0 : index
    %c0_113 = arith.constant 0 : index
    %110 = vector.load %arg1[%c3_111, %c0_112, %c0_113] : memref<9x16x8xf32, #tpu.memory_space<vmem>>, vector<1x16x8xf32>
    %111 = vector.shape_cast %110 : vector<1x16x8xf32> to vector<16x8xf32>
    %cst_114 = arith.constant dense<0.000000e+00> : vector<16x128xf32>
    %112 = tpu.matmul %111, %109, %cst_114 {dimension_numbers = #tpu.dot_dimension_numbers<[1], [0], [0], [1], [0, 0, 1, 1], [], []>} : vector<16x8xf32>, vector<8x128xf32>, vector<16x128xf32> -> vector<16x128xf32>
    %113 = arith.addf %108, %112 : vector<16x128xf32>
    %c72_115 = arith.constant 72 : index
    %c0_116 = arith.constant 0 : index
    %114 = vector.load %arg0[%c72_115, %c0_116] : memref<128x128xf32, #tpu.memory_space<vmem>>, vector<8x128xf32>
    %c4_117 = arith.constant 4 : index
    %c0_118 = arith.constant 0 : index
    %c0_119 = arith.constant 0 : index
    %115 = vector.load %arg1[%c4_117, %c0_118, %c0_119] : memref<9x16x8xf32, #tpu.memory_space<vmem>>, vector<1x16x8xf32>
    %116 = vector.shape_cast %115 : vector<1x16x8xf32> to vector<16x8xf32>
    %cst_120 = arith.constant dense<0.000000e+00> : vector<16x128xf32>
    %117 = tpu.matmul %116, %114, %cst_120 {dimension_numbers = #tpu.dot_dimension_numbers<[1], [0], [0], [1], [0, 0, 1, 1], [], []>} : vector<16x8xf32>, vector<8x128xf32>, vector<16x128xf32> -> vector<16x128xf32>
    %118 = arith.addf %113, %117 : vector<16x128xf32>
    %c80_121 = arith.constant 80 : index
    %c0_122 = arith.constant 0 : index
    %119 = vector.load %arg0[%c80_121, %c0_122] : memref<128x128xf32, #tpu.memory_space<vmem>>, vector<8x128xf32>
    %c5_123 = arith.constant 5 : index
    %c0_124 = arith.constant 0 : index
    %c0_125 = arith.constant 0 : index
    %120 = vector.load %arg1[%c5_123, %c0_124, %c0_125] : memref<9x16x8xf32, #tpu.memory_space<vmem>>, vector<1x16x8xf32>
    %121 = vector.shape_cast %120 : vector<1x16x8xf32> to vector<16x8xf32>
    %cst_126 = arith.constant dense<0.000000e+00> : vector<16x128xf32>
    %122 = tpu.matmul %121, %119, %cst_126 {dimension_numbers = #tpu.dot_dimension_numbers<[1], [0], [0], [1], [0, 0, 1, 1], [], []>} : vector<16x8xf32>, vector<8x128xf32>, vector<16x128xf32> -> vector<16x128xf32>
    %123 = arith.addf %118, %122 : vector<16x128xf32>
    %c96 = arith.constant 96 : index
    %c0_127 = arith.constant 0 : index
    %124 = vector.load %arg0[%c96, %c0_127] : memref<128x128xf32, #tpu.memory_space<vmem>>, vector<8x128xf32>
    %c6_128 = arith.constant 6 : index
    %c0_129 = arith.constant 0 : index
    %c0_130 = arith.constant 0 : index
    %125 = vector.load %arg1[%c6_128, %c0_129, %c0_130] : memref<9x16x8xf32, #tpu.memory_space<vmem>>, vector<1x16x8xf32>
    %126 = vector.shape_cast %125 : vector<1x16x8xf32> to vector<16x8xf32>
    %cst_131 = arith.constant dense<0.000000e+00> : vector<16x128xf32>
    %127 = tpu.matmul %126, %124, %cst_131 {dimension_numbers = #tpu.dot_dimension_numbers<[1], [0], [0], [1], [0, 0, 1, 1], [], []>} : vector<16x8xf32>, vector<8x128xf32>, vector<16x128xf32> -> vector<16x128xf32>
    %128 = arith.addf %123, %127 : vector<16x128xf32>
    %c104 = arith.constant 104 : index
    %c0_132 = arith.constant 0 : index
    %129 = vector.load %arg0[%c104, %c0_132] : memref<128x128xf32, #tpu.memory_space<vmem>>, vector<8x128xf32>
    %c7_133 = arith.constant 7 : index
    %c0_134 = arith.constant 0 : index
    %c0_135 = arith.constant 0 : index
    %130 = vector.load %arg1[%c7_133, %c0_134, %c0_135] : memref<9x16x8xf32, #tpu.memory_space<vmem>>, vector<1x16x8xf32>
    %131 = vector.shape_cast %130 : vector<1x16x8xf32> to vector<16x8xf32>
    %cst_136 = arith.constant dense<0.000000e+00> : vector<16x128xf32>
    %132 = tpu.matmul %131, %129, %cst_136 {dimension_numbers = #tpu.dot_dimension_numbers<[1], [0], [0], [1], [0, 0, 1, 1], [], []>} : vector<16x8xf32>, vector<8x128xf32>, vector<16x128xf32> -> vector<16x128xf32>
    %133 = arith.addf %128, %132 : vector<16x128xf32>
    %c112 = arith.constant 112 : index
    %c0_137 = arith.constant 0 : index
    %134 = vector.load %arg0[%c112, %c0_137] : memref<128x128xf32, #tpu.memory_space<vmem>>, vector<8x128xf32>
    %c8_138 = arith.constant 8 : index
    %c0_139 = arith.constant 0 : index
    %c0_140 = arith.constant 0 : index
    %135 = vector.load %arg1[%c8_138, %c0_139, %c0_140] : memref<9x16x8xf32, #tpu.memory_space<vmem>>, vector<1x16x8xf32>
    %136 = vector.shape_cast %135 : vector<1x16x8xf32> to vector<16x8xf32>
    %cst_141 = arith.constant dense<0.000000e+00> : vector<16x128xf32>
    %137 = tpu.matmul %136, %134, %cst_141 {dimension_numbers = #tpu.dot_dimension_numbers<[1], [0], [0], [1], [0, 0, 1, 1], [], []>} : vector<16x8xf32>, vector<8x128xf32>, vector<16x128xf32> -> vector<16x128xf32>
    %138 = arith.addf %133, %137 : vector<16x128xf32>
    %139 = arith.maximumf %92, %138 : vector<16x128xf32>
    %cst_142 = arith.constant 0.000000e+00 : f32
    %140 = vector.broadcast %cst_142 : f32 to vector<16x128xf32>
    %c40_143 = arith.constant 40 : index
    %c0_144 = arith.constant 0 : index
    %141 = vector.load %arg0[%c40_143, %c0_144] : memref<128x128xf32, #tpu.memory_space<vmem>>, vector<8x128xf32>
    %c0_145 = arith.constant 0 : index
    %c0_146 = arith.constant 0 : index
    %c0_147 = arith.constant 0 : index
    %142 = vector.load %arg1[%c0_145, %c0_146, %c0_147] : memref<9x16x8xf32, #tpu.memory_space<vmem>>, vector<1x16x8xf32>
    %143 = vector.shape_cast %142 : vector<1x16x8xf32> to vector<16x8xf32>
    %cst_148 = arith.constant dense<0.000000e+00> : vector<16x128xf32>
    %144 = tpu.matmul %143, %141, %cst_148 {dimension_numbers = #tpu.dot_dimension_numbers<[1], [0], [0], [1], [0, 0, 1, 1], [], []>} : vector<16x8xf32>, vector<8x128xf32>, vector<16x128xf32> -> vector<16x128xf32>
    %145 = arith.addf %140, %144 : vector<16x128xf32>
    %c48_149 = arith.constant 48 : index
    %c0_150 = arith.constant 0 : index
    %146 = vector.load %arg0[%c48_149, %c0_150] : memref<128x128xf32, #tpu.memory_space<vmem>>, vector<8x128xf32>
    %c1_151 = arith.constant 1 : index
    %c0_152 = arith.constant 0 : index
    %c0_153 = arith.constant 0 : index
    %147 = vector.load %arg1[%c1_151, %c0_152, %c0_153] : memref<9x16x8xf32, #tpu.memory_space<vmem>>, vector<1x16x8xf32>
    %148 = vector.shape_cast %147 : vector<1x16x8xf32> to vector<16x8xf32>
    %cst_154 = arith.constant dense<0.000000e+00> : vector<16x128xf32>
    %149 = tpu.matmul %148, %146, %cst_154 {dimension_numbers = #tpu.dot_dimension_numbers<[1], [0], [0], [1], [0, 0, 1, 1], [], []>} : vector<16x8xf32>, vector<8x128xf32>, vector<16x128xf32> -> vector<16x128xf32>
    %150 = arith.addf %145, %149 : vector<16x128xf32>
    %c56_155 = arith.constant 56 : index
    %c0_156 = arith.constant 0 : index
    %151 = vector.load %arg0[%c56_155, %c0_156] : memref<128x128xf32, #tpu.memory_space<vmem>>, vector<8x128xf32>
    %c2_157 = arith.constant 2 : index
    %c0_158 = arith.constant 0 : index
    %c0_159 = arith.constant 0 : index
    %152 = vector.load %arg1[%c2_157, %c0_158, %c0_159] : memref<9x16x8xf32, #tpu.memory_space<vmem>>, vector<1x16x8xf32>
    %153 = vector.shape_cast %152 : vector<1x16x8xf32> to vector<16x8xf32>
    %cst_160 = arith.constant dense<0.000000e+00> : vector<16x128xf32>
    %154 = tpu.matmul %153, %151, %cst_160 {dimension_numbers = #tpu.dot_dimension_numbers<[1], [0], [0], [1], [0, 0, 1, 1], [], []>} : vector<16x8xf32>, vector<8x128xf32>, vector<16x128xf32> -> vector<16x128xf32>
    %155 = arith.addf %150, %154 : vector<16x128xf32>
    %c72_161 = arith.constant 72 : index
    %c0_162 = arith.constant 0 : index
    %156 = vector.load %arg0[%c72_161, %c0_162] : memref<128x128xf32, #tpu.memory_space<vmem>>, vector<8x128xf32>
    %c3_163 = arith.constant 3 : index
    %c0_164 = arith.constant 0 : index
    %c0_165 = arith.constant 0 : index
    %157 = vector.load %arg1[%c3_163, %c0_164, %c0_165] : memref<9x16x8xf32, #tpu.memory_space<vmem>>, vector<1x16x8xf32>
    %158 = vector.shape_cast %157 : vector<1x16x8xf32> to vector<16x8xf32>
    %cst_166 = arith.constant dense<0.000000e+00> : vector<16x128xf32>
    %159 = tpu.matmul %158, %156, %cst_166 {dimension_numbers = #tpu.dot_dimension_numbers<[1], [0], [0], [1], [0, 0, 1, 1], [], []>} : vector<16x8xf32>, vector<8x128xf32>, vector<16x128xf32> -> vector<16x128xf32>
    %160 = arith.addf %155, %159 : vector<16x128xf32>
    %c80_167 = arith.constant 80 : index
    %c0_168 = arith.constant 0 : index
    %161 = vector.load %arg0[%c80_167, %c0_168] : memref<128x128xf32, #tpu.memory_space<vmem>>, vector<8x128xf32>
    %c4_169 = arith.constant 4 : index
    %c0_170 = arith.constant 0 : index
    %c0_171 = arith.constant 0 : index
    %162 = vector.load %arg1[%c4_169, %c0_170, %c0_171] : memref<9x16x8xf32, #tpu.memory_space<vmem>>, vector<1x16x8xf32>
    %163 = vector.shape_cast %162 : vector<1x16x8xf32> to vector<16x8xf32>
    %cst_172 = arith.constant dense<0.000000e+00> : vector<16x128xf32>
    %164 = tpu.matmul %163, %161, %cst_172 {dimension_numbers = #tpu.dot_dimension_numbers<[1], [0], [0], [1], [0, 0, 1, 1], [], []>} : vector<16x8xf32>, vector<8x128xf32>, vector<16x128xf32> -> vector<16x128xf32>
    %165 = arith.addf %160, %164 : vector<16x128xf32>
    %c88_173 = arith.constant 88 : index
    %c0_174 = arith.constant 0 : index
    %166 = vector.load %arg0[%c88_173, %c0_174] : memref<128x128xf32, #tpu.memory_space<vmem>>, vector<8x128xf32>
    %c5_175 = arith.constant 5 : index
    %c0_176 = arith.constant 0 : index
    %c0_177 = arith.constant 0 : index
    %167 = vector.load %arg1[%c5_175, %c0_176, %c0_177] : memref<9x16x8xf32, #tpu.memory_space<vmem>>, vector<1x16x8xf32>
    %168 = vector.shape_cast %167 : vector<1x16x8xf32> to vector<16x8xf32>
    %cst_178 = arith.constant dense<0.000000e+00> : vector<16x128xf32>
    %169 = tpu.matmul %168, %166, %cst_178 {dimension_numbers = #tpu.dot_dimension_numbers<[1], [0], [0], [1], [0, 0, 1, 1], [], []>} : vector<16x8xf32>, vector<8x128xf32>, vector<16x128xf32> -> vector<16x128xf32>
    %170 = arith.addf %165, %169 : vector<16x128xf32>
    %c104_179 = arith.constant 104 : index
    %c0_180 = arith.constant 0 : index
    %171 = vector.load %arg0[%c104_179, %c0_180] : memref<128x128xf32, #tpu.memory_space<vmem>>, vector<8x128xf32>
    %c6_181 = arith.constant 6 : index
    %c0_182 = arith.constant 0 : index
    %c0_183 = arith.constant 0 : index
    %172 = vector.load %arg1[%c6_181, %c0_182, %c0_183] : memref<9x16x8xf32, #tpu.memory_space<vmem>>, vector<1x16x8xf32>
    %173 = vector.shape_cast %172 : vector<1x16x8xf32> to vector<16x8xf32>
    %cst_184 = arith.constant dense<0.000000e+00> : vector<16x128xf32>
    %174 = tpu.matmul %173, %171, %cst_184 {dimension_numbers = #tpu.dot_dimension_numbers<[1], [0], [0], [1], [0, 0, 1, 1], [], []>} : vector<16x8xf32>, vector<8x128xf32>, vector<16x128xf32> -> vector<16x128xf32>
    %175 = arith.addf %170, %174 : vector<16x128xf32>
    %c112_185 = arith.constant 112 : index
    %c0_186 = arith.constant 0 : index
    %176 = vector.load %arg0[%c112_185, %c0_186] : memref<128x128xf32, #tpu.memory_space<vmem>>, vector<8x128xf32>
    %c7_187 = arith.constant 7 : index
    %c0_188 = arith.constant 0 : index
    %c0_189 = arith.constant 0 : index
    %177 = vector.load %arg1[%c7_187, %c0_188, %c0_189] : memref<9x16x8xf32, #tpu.memory_space<vmem>>, vector<1x16x8xf32>
    %178 = vector.shape_cast %177 : vector<1x16x8xf32> to vector<16x8xf32>
    %cst_190 = arith.constant dense<0.000000e+00> : vector<16x128xf32>
    %179 = tpu.matmul %178, %176, %cst_190 {dimension_numbers = #tpu.dot_dimension_numbers<[1], [0], [0], [1], [0, 0, 1, 1], [], []>} : vector<16x8xf32>, vector<8x128xf32>, vector<16x128xf32> -> vector<16x128xf32>
    %180 = arith.addf %175, %179 : vector<16x128xf32>
    %c120 = arith.constant 120 : index
    %c0_191 = arith.constant 0 : index
    %181 = vector.load %arg0[%c120, %c0_191] : memref<128x128xf32, #tpu.memory_space<vmem>>, vector<8x128xf32>
    %c8_192 = arith.constant 8 : index
    %c0_193 = arith.constant 0 : index
    %c0_194 = arith.constant 0 : index
    %182 = vector.load %arg1[%c8_192, %c0_193, %c0_194] : memref<9x16x8xf32, #tpu.memory_space<vmem>>, vector<1x16x8xf32>
    %183 = vector.shape_cast %182 : vector<1x16x8xf32> to vector<16x8xf32>
    %cst_195 = arith.constant dense<0.000000e+00> : vector<16x128xf32>
    %184 = tpu.matmul %183, %181, %cst_195 {dimension_numbers = #tpu.dot_dimension_numbers<[1], [0], [0], [1], [0, 0, 1, 1], [], []>} : vector<16x8xf32>, vector<8x128xf32>, vector<16x128xf32> -> vector<16x128xf32>
    %185 = arith.addf %180, %184 : vector<16x128xf32>
    %186 = arith.maximumf %139, %185 : vector<16x128xf32>
    %c0_196 = arith.constant 0 : index
    %c0_197 = arith.constant 0 : index
    %187 = vector.load %arg2[%c0_196, %c0_197] : memref<16x1xf32, #tpu.memory_space<vmem>>, vector<16x1xf32>
    %188 = vector.broadcast %187 : vector<16x1xf32> to vector<16x128xf32>
    %189 = arith.addf %186, %188 : vector<16x128xf32>
    %cst_198 = arith.constant 0.000000e+00 : f32
    %190 = vector.broadcast %cst_198 : f32 to vector<16x128xf32>
    %191 = arith.cmpf oge, %189, %190 : vector<16x128xf32>
    %cst_199 = arith.constant 0.00999999977 : f32
    %192 = vector.broadcast %cst_199 : f32 to vector<16x128xf32>
    %193 = arith.mulf %192, %189 : vector<16x128xf32>
    %194 = arith.select %191, %189, %193 : vector<16x128xi1>, vector<16x128xf32>
    %c0_200 = arith.constant 0 : index
    %c0_201 = arith.constant 0 : index
    %195 = vector.load %arg3[%c0_200, %c0_201] : memref<16x128xf32, #tpu.memory_space<vmem>>, vector<16x128xf32>
    tpu.vector_store %arg3[%c0_200, %c0_201], %194 {strides = array<i32>} : memref<16x128xf32, #tpu.memory_space<vmem>>, vector<16x128xf32>,
    return
  }
}

module attributes {stable_mosaic.version = 11 : i64} {
  func.func @_bilstm_linear_kernel(%arg0: memref<64x64xf32, #tpu.memory_space<vmem>>, %arg1: memref<64x256xf32, #tpu.memory_space<vmem>>, %arg2: memref<1x256xf32, #tpu.memory_space<vmem>>, %arg3: memref<32x128xf32, #tpu.memory_space<vmem>>, %arg4: memref<32x128xf32, #tpu.memory_space<vmem>>, %arg5: memref<32x128xf32, #tpu.memory_space<vmem>>, %arg6: memref<32x128xf32, #tpu.memory_space<vmem>>, %arg7: memref<1x128xf32, #tpu.memory_space<vmem>>, %arg8: memref<64x128xf32, #tpu.memory_space<vmem>>, %arg9: memref<64x256xf32, #tpu.memory_space<vmem>>, %arg10: memref<64x32xf32, #tpu.memory_space<vmem>>, %arg11: memref<64x32xf32, #tpu.memory_space<vmem>>) attributes {dimension_semantics = [], scalar_prefetch = 0 : i64, scratch_operands = 3 : i64, tpu.core_type = #tpu.core_type<tc>} {
    %c0 = arith.constant 0 : index
    %c0_0 = arith.constant 0 : index
    %0 = vector.load %arg0[%c0, %c0_0] : memref<64x64xf32, #tpu.memory_space<vmem>>, vector<64x64xf32>
    %c0_1 = arith.constant 0 : index
    %c0_2 = arith.constant 0 : index
    %1 = vector.load %arg1[%c0_1, %c0_2] : memref<64x256xf32, #tpu.memory_space<vmem>>, vector<64x256xf32>
    %cst = arith.constant dense<0.000000e+00> : vector<64x256xf32>
    %2 = tpu.matmul %0, %1, %cst {dimension_numbers = #tpu.dot_dimension_numbers<[1], [0], [0], [1], [0, 0, 1, 1], [], []>} : vector<64x64xf32>, vector<64x256xf32>, vector<64x256xf32> -> vector<64x256xf32>
    %c0_3 = arith.constant 0 : index
    %c0_4 = arith.constant 0 : index
    %3 = vector.load %arg2[%c0_3, %c0_4] : memref<1x256xf32, #tpu.memory_space<vmem>>, vector<1x256xf32>
    %4 = vector.broadcast %3 : vector<1x256xf32> to vector<64x256xf32>
    %5 = arith.addf %2, %4 : vector<64x256xf32>
    %c0_5 = arith.constant 0 : index
    %c0_6 = arith.constant 0 : index
    %6 = vector.load %arg9[%c0_5, %c0_6] : memref<64x256xf32, #tpu.memory_space<vmem>>, vector<64x256xf32>
    tpu.vector_store %arg9[%c0_5, %c0_6], %5 {strides = array<i32>} : memref<64x256xf32, #tpu.memory_space<vmem>>, vector<64x256xf32>,
    %7 = tpu.iota {dimensions = array<i32: 1>} : vector<8x128xi32>
    %c64_i32 = arith.constant 64 : i32
    %8 = vector.broadcast %c64_i32 : i32 to vector<8x128xi32>
    %9 = arith.cmpi sge, %7, %8 : vector<8x128xi32>
    %c96_i32 = arith.constant 96 : i32
    %10 = vector.broadcast %c96_i32 : i32 to vector<8x128xi32>
    %11 = arith.cmpi slt, %7, %10 : vector<8x128xi32>
    %12 = arith.andi %9, %11 : vector<8x128xi1>
    %c0_7 = arith.constant 0 : index
    %c0_8 = arith.constant 0 : index
    %13 = vector.load %arg3[%c0_7, %c0_8] : memref<32x128xf32, #tpu.memory_space<vmem>>, vector<32x128xf32>
    %c0_9 = arith.constant 0 : index
    %c0_10 = arith.constant 0 : index
    %14 = vector.load %arg4[%c0_9, %c0_10] : memref<32x128xf32, #tpu.memory_space<vmem>>, vector<32x128xf32>
    %cst_11 = arith.constant 0.000000e+00 : f32
    %15 = vector.broadcast %cst_11 : f32 to vector<8x32xf32>
    %cst_12 = arith.constant 0.000000e+00 : f32
    %16 = vector.broadcast %cst_12 : f32 to vector<8x32xf32>
    %cst_13 = arith.constant 0.000000e+00 : f32
    %17 = vector.broadcast %cst_13 : f32 to vector<8x32xf32>
    %cst_14 = arith.constant 0.000000e+00 : f32
    %18 = vector.broadcast %cst_14 : f32 to vector<8x32xf32>
    %c0_15 = arith.constant 0 : index
    %c0_16 = arith.constant 0 : index
    %19 = vector.load %arg9[%c0_15, %c0_16] : memref<64x256xf32, #tpu.memory_space<vmem>>, vector<8x128xf32>
    %cst_17 = arith.constant dense<0.000000e+00> : vector<8x128xf32>
    %20 = tpu.matmul %15, %13, %cst_17 {dimension_numbers = #tpu.dot_dimension_numbers<[1], [0], [0], [1], [0, 0, 1, 1], [], []>} : vector<8x32xf32>, vector<32x128xf32>, vector<8x128xf32> -> vector<8x128xf32>
    %21 = arith.addf %19, %20 : vector<8x128xf32>
    %c56 = arith.constant 56 : index
    %c128 = arith.constant 128 : index
    %22 = vector.load %arg9[%c56, %c128] : memref<64x256xf32, #tpu.memory_space<vmem>>, vector<8x128xf32>
    %cst_18 = arith.constant dense<0.000000e+00> : vector<8x128xf32>
    %23 = tpu.matmul %17, %14, %cst_18 {dimension_numbers = #tpu.dot_dimension_numbers<[1], [0], [0], [1], [0, 0, 1, 1], [], []>} : vector<8x32xf32>, vector<32x128xf32>, vector<8x128xf32> -> vector<8x128xf32>
    %24 = arith.addf %22, %23 : vector<8x128xf32>
    %25 = math.tanh %21 : vector<8x128xf32>
    %cst_19 = arith.constant 1.000000e+00 : f32
    %26 = vector.broadcast %cst_19 : f32 to vector<8x128xf32>
    %27 = arith.addf %25, %26 : vector<8x128xf32>
    %cst_20 = arith.constant 5.000000e-01 : f32
    %28 = vector.broadcast %cst_20 : f32 to vector<8x128xf32>
    %29 = arith.mulf %28, %27 : vector<8x128xf32>
    %30 = arith.select %12, %25, %29 : vector<8x128xi1>, vector<8x128xf32>
    %31 = vector.extract_strided_slice %30 {offsets = [0, 0], sizes = [8, 32], strides = [1, 1]} : vector<8x128xf32> to vector<8x32xf32>
    %32 = vector.extract_strided_slice %30 {offsets = [0, 32], sizes = [8, 32], strides = [1, 1]} : vector<8x128xf32> to vector<8x32xf32>
    %33 = vector.extract_strided_slice %30 {offsets = [0, 64], sizes = [8, 32], strides = [1, 1]} : vector<8x128xf32> to vector<8x32xf32>
    %34 = vector.extract_strided_slice %30 {offsets = [0, 96], sizes = [8, 32], strides = [1, 1]} : vector<8x128xf32> to vector<8x32xf32>
    %35 = arith.mulf %32, %16 : vector<8x32xf32>
    %36 = arith.mulf %31, %33 : vector<8x32xf32>
    %37 = arith.addf %35, %36 : vector<8x32xf32>
    %38 = math.tanh %37 : vector<8x32xf32>
    %39 = arith.mulf %34, %38 : vector<8x32xf32>
    %40 = math.tanh %24 : vector<8x128xf32>
    %cst_21 = arith.constant 1.000000e+00 : f32
    %41 = vector.broadcast %cst_21 : f32 to vector<8x128xf32>
    %42 = arith.addf %40, %41 : vector<8x128xf32>
    %cst_22 = arith.constant 5.000000e-01 : f32
    %43 = vector.broadcast %cst_22 : f32 to vector<8x128xf32>
    %44 = arith.mulf %43, %42 : vector<8x128xf32>
    %45 = arith.select %12, %40, %44 : vector<8x128xi1>, vector<8x128xf32>
    %46 = vector.extract_strided_slice %45 {offsets = [0, 0], sizes = [8, 32], strides = [1, 1]} : vector<8x128xf32> to vector<8x32xf32>
    %47 = vector.extract_strided_slice %45 {offsets = [0, 32], sizes = [8, 32], strides = [1, 1]} : vector<8x128xf32> to vector<8x32xf32>
    %48 = vector.extract_strided_slice %45 {offsets = [0, 64], sizes = [8, 32], strides = [1, 1]} : vector<8x128xf32> to vector<8x32xf32>
    %49 = vector.extract_strided_slice %45 {offsets = [0, 96], sizes = [8, 32], strides = [1, 1]} : vector<8x128xf32> to vector<8x32xf32>
    %50 = arith.mulf %47, %18 : vector<8x32xf32>
    %51 = arith.mulf %46, %48 : vector<8x32xf32>
    %52 = arith.addf %50, %51 : vector<8x32xf32>
    %53 = math.tanh %52 : vector<8x32xf32>
    %54 = arith.mulf %49, %53 : vector<8x32xf32>
    %c0_23 = arith.constant 0 : index
    %c0_24 = arith.constant 0 : index
    %55 = vector.load %arg10[%c0_23, %c0_24] : memref<64x32xf32, #tpu.memory_space<vmem>>, vector<8x32xf32>
    tpu.vector_store %arg10[%c0_23, %c0_24], %39 {strides = array<i32>} : memref<64x32xf32, #tpu.memory_space<vmem>>, vector<8x32xf32>,
    %c56_25 = arith.constant 56 : index
    %c0_26 = arith.constant 0 : index
    %56 = vector.load %arg11[%c56_25, %c0_26] : memref<64x32xf32, #tpu.memory_space<vmem>>, vector<8x32xf32>
    tpu.vector_store %arg11[%c56_25, %c0_26], %54 {strides = array<i32>} : memref<64x32xf32, #tpu.memory_space<vmem>>, vector<8x32xf32>,
    %c8 = arith.constant 8 : index
    %c0_27 = arith.constant 0 : index
    %57 = vector.load %arg9[%c8, %c0_27] : memref<64x256xf32, #tpu.memory_space<vmem>>, vector<8x128xf32>
    %cst_28 = arith.constant dense<0.000000e+00> : vector<8x128xf32>
    %58 = tpu.matmul %39, %13, %cst_28 {dimension_numbers = #tpu.dot_dimension_numbers<[1], [0], [0], [1], [0, 0, 1, 1], [], []>} : vector<8x32xf32>, vector<32x128xf32>, vector<8x128xf32> -> vector<8x128xf32>
    %59 = arith.addf %57, %58 : vector<8x128xf32>
    %c48 = arith.constant 48 : index
    %c128_29 = arith.constant 128 : index
    %60 = vector.load %arg9[%c48, %c128_29] : memref<64x256xf32, #tpu.memory_space<vmem>>, vector<8x128xf32>
    %cst_30 = arith.constant dense<0.000000e+00> : vector<8x128xf32>
    %61 = tpu.matmul %54, %14, %cst_30 {dimension_numbers = #tpu.dot_dimension_numbers<[1], [0], [0], [1], [0, 0, 1, 1], [], []>} : vector<8x32xf32>, vector<32x128xf32>, vector<8x128xf32> -> vector<8x128xf32>
    %62 = arith.addf %60, %61 : vector<8x128xf32>
    %63 = math.tanh %59 : vector<8x128xf32>
    %cst_31 = arith.constant 1.000000e+00 : f32
    %64 = vector.broadcast %cst_31 : f32 to vector<8x128xf32>
    %65 = arith.addf %63, %64 : vector<8x128xf32>
    %cst_32 = arith.constant 5.000000e-01 : f32
    %66 = vector.broadcast %cst_32 : f32 to vector<8x128xf32>
    %67 = arith.mulf %66, %65 : vector<8x128xf32>
    %68 = arith.select %12, %63, %67 : vector<8x128xi1>, vector<8x128xf32>
    %69 = vector.extract_strided_slice %68 {offsets = [0, 0], sizes = [8, 32], strides = [1, 1]} : vector<8x128xf32> to vector<8x32xf32>
    %70 = vector.extract_strided_slice %68 {offsets = [0, 32], sizes = [8, 32], strides = [1, 1]} : vector<8x128xf32> to vector<8x32xf32>
    %71 = vector.extract_strided_slice %68 {offsets = [0, 64], sizes = [8, 32], strides = [1, 1]} : vector<8x128xf32> to vector<8x32xf32>
    %72 = vector.extract_strided_slice %68 {offsets = [0, 96], sizes = [8, 32], strides = [1, 1]} : vector<8x128xf32> to vector<8x32xf32>
    %73 = arith.mulf %70, %37 : vector<8x32xf32>
    %74 = arith.mulf %69, %71 : vector<8x32xf32>
    %75 = arith.addf %73, %74 : vector<8x32xf32>
    %76 = math.tanh %75 : vector<8x32xf32>
    %77 = arith.mulf %72, %76 : vector<8x32xf32>
    %78 = math.tanh %62 : vector<8x128xf32>
    %cst_33 = arith.constant 1.000000e+00 : f32
    %79 = vector.broadcast %cst_33 : f32 to vector<8x128xf32>
    %80 = arith.addf %78, %79 : vector<8x128xf32>
    %cst_34 = arith.constant 5.000000e-01 : f32
    %81 = vector.broadcast %cst_34 : f32 to vector<8x128xf32>
    %82 = arith.mulf %81, %80 : vector<8x128xf32>
    %83 = arith.select %12, %78, %82 : vector<8x128xi1>, vector<8x128xf32>
    %84 = vector.extract_strided_slice %83 {offsets = [0, 0], sizes = [8, 32], strides = [1, 1]} : vector<8x128xf32> to vector<8x32xf32>
    %85 = vector.extract_strided_slice %83 {offsets = [0, 32], sizes = [8, 32], strides = [1, 1]} : vector<8x128xf32> to vector<8x32xf32>
    %86 = vector.extract_strided_slice %83 {offsets = [0, 64], sizes = [8, 32], strides = [1, 1]} : vector<8x128xf32> to vector<8x32xf32>
    %87 = vector.extract_strided_slice %83 {offsets = [0, 96], sizes = [8, 32], strides = [1, 1]} : vector<8x128xf32> to vector<8x32xf32>
    %88 = arith.mulf %85, %52 : vector<8x32xf32>
    %89 = arith.mulf %84, %86 : vector<8x32xf32>
    %90 = arith.addf %88, %89 : vector<8x32xf32>
    %91 = math.tanh %90 : vector<8x32xf32>
    %92 = arith.mulf %87, %91 : vector<8x32xf32>
    %c8_35 = arith.constant 8 : index
    %c0_36 = arith.constant 0 : index
    %93 = vector.load %arg10[%c8_35, %c0_36] : memref<64x32xf32, #tpu.memory_space<vmem>>, vector<8x32xf32>
    tpu.vector_store %arg10[%c8_35, %c0_36], %77 {strides = array<i32>} : memref<64x32xf32, #tpu.memory_space<vmem>>, vector<8x32xf32>,
    %c48_37 = arith.constant 48 : index
    %c0_38 = arith.constant 0 : index
    %94 = vector.load %arg11[%c48_37, %c0_38] : memref<64x32xf32, #tpu.memory_space<vmem>>, vector<8x32xf32>
    tpu.vector_store %arg11[%c48_37, %c0_38], %92 {strides = array<i32>} : memref<64x32xf32, #tpu.memory_space<vmem>>, vector<8x32xf32>,
    %c16 = arith.constant 16 : index
    %c0_39 = arith.constant 0 : index
    %95 = vector.load %arg9[%c16, %c0_39] : memref<64x256xf32, #tpu.memory_space<vmem>>, vector<8x128xf32>
    %cst_40 = arith.constant dense<0.000000e+00> : vector<8x128xf32>
    %96 = tpu.matmul %77, %13, %cst_40 {dimension_numbers = #tpu.dot_dimension_numbers<[1], [0], [0], [1], [0, 0, 1, 1], [], []>} : vector<8x32xf32>, vector<32x128xf32>, vector<8x128xf32> -> vector<8x128xf32>
    %97 = arith.addf %95, %96 : vector<8x128xf32>
    %c40 = arith.constant 40 : index
    %c128_41 = arith.constant 128 : index
    %98 = vector.load %arg9[%c40, %c128_41] : memref<64x256xf32, #tpu.memory_space<vmem>>, vector<8x128xf32>
    %cst_42 = arith.constant dense<0.000000e+00> : vector<8x128xf32>
    %99 = tpu.matmul %92, %14, %cst_42 {dimension_numbers = #tpu.dot_dimension_numbers<[1], [0], [0], [1], [0, 0, 1, 1], [], []>} : vector<8x32xf32>, vector<32x128xf32>, vector<8x128xf32> -> vector<8x128xf32>
    %100 = arith.addf %98, %99 : vector<8x128xf32>
    %101 = math.tanh %97 : vector<8x128xf32>
    %cst_43 = arith.constant 1.000000e+00 : f32
    %102 = vector.broadcast %cst_43 : f32 to vector<8x128xf32>
    %103 = arith.addf %101, %102 : vector<8x128xf32>
    %cst_44 = arith.constant 5.000000e-01 : f32
    %104 = vector.broadcast %cst_44 : f32 to vector<8x128xf32>
    %105 = arith.mulf %104, %103 : vector<8x128xf32>
    %106 = arith.select %12, %101, %105 : vector<8x128xi1>, vector<8x128xf32>
    %107 = vector.extract_strided_slice %106 {offsets = [0, 0], sizes = [8, 32], strides = [1, 1]} : vector<8x128xf32> to vector<8x32xf32>
    %108 = vector.extract_strided_slice %106 {offsets = [0, 32], sizes = [8, 32], strides = [1, 1]} : vector<8x128xf32> to vector<8x32xf32>
    %109 = vector.extract_strided_slice %106 {offsets = [0, 64], sizes = [8, 32], strides = [1, 1]} : vector<8x128xf32> to vector<8x32xf32>
    %110 = vector.extract_strided_slice %106 {offsets = [0, 96], sizes = [8, 32], strides = [1, 1]} : vector<8x128xf32> to vector<8x32xf32>
    %111 = arith.mulf %108, %75 : vector<8x32xf32>
    %112 = arith.mulf %107, %109 : vector<8x32xf32>
    %113 = arith.addf %111, %112 : vector<8x32xf32>
    %114 = math.tanh %113 : vector<8x32xf32>
    %115 = arith.mulf %110, %114 : vector<8x32xf32>
    %116 = math.tanh %100 : vector<8x128xf32>
    %cst_45 = arith.constant 1.000000e+00 : f32
    %117 = vector.broadcast %cst_45 : f32 to vector<8x128xf32>
    %118 = arith.addf %116, %117 : vector<8x128xf32>
    %cst_46 = arith.constant 5.000000e-01 : f32
    %119 = vector.broadcast %cst_46 : f32 to vector<8x128xf32>
    %120 = arith.mulf %119, %118 : vector<8x128xf32>
    %121 = arith.select %12, %116, %120 : vector<8x128xi1>, vector<8x128xf32>
    %122 = vector.extract_strided_slice %121 {offsets = [0, 0], sizes = [8, 32], strides = [1, 1]} : vector<8x128xf32> to vector<8x32xf32>
    %123 = vector.extract_strided_slice %121 {offsets = [0, 32], sizes = [8, 32], strides = [1, 1]} : vector<8x128xf32> to vector<8x32xf32>
    %124 = vector.extract_strided_slice %121 {offsets = [0, 64], sizes = [8, 32], strides = [1, 1]} : vector<8x128xf32> to vector<8x32xf32>
    %125 = vector.extract_strided_slice %121 {offsets = [0, 96], sizes = [8, 32], strides = [1, 1]} : vector<8x128xf32> to vector<8x32xf32>
    %126 = arith.mulf %123, %90 : vector<8x32xf32>
    %127 = arith.mulf %122, %124 : vector<8x32xf32>
    %128 = arith.addf %126, %127 : vector<8x32xf32>
    %129 = math.tanh %128 : vector<8x32xf32>
    %130 = arith.mulf %125, %129 : vector<8x32xf32>
    %c16_47 = arith.constant 16 : index
    %c0_48 = arith.constant 0 : index
    %131 = vector.load %arg10[%c16_47, %c0_48] : memref<64x32xf32, #tpu.memory_space<vmem>>, vector<8x32xf32>
    tpu.vector_store %arg10[%c16_47, %c0_48], %115 {strides = array<i32>} : memref<64x32xf32, #tpu.memory_space<vmem>>, vector<8x32xf32>,
    %c40_49 = arith.constant 40 : index
    %c0_50 = arith.constant 0 : index
    %132 = vector.load %arg11[%c40_49, %c0_50] : memref<64x32xf32, #tpu.memory_space<vmem>>, vector<8x32xf32>
    tpu.vector_store %arg11[%c40_49, %c0_50], %130 {strides = array<i32>} : memref<64x32xf32, #tpu.memory_space<vmem>>, vector<8x32xf32>,
    %c24 = arith.constant 24 : index
    %c0_51 = arith.constant 0 : index
    %133 = vector.load %arg9[%c24, %c0_51] : memref<64x256xf32, #tpu.memory_space<vmem>>, vector<8x128xf32>
    %cst_52 = arith.constant dense<0.000000e+00> : vector<8x128xf32>
    %134 = tpu.matmul %115, %13, %cst_52 {dimension_numbers = #tpu.dot_dimension_numbers<[1], [0], [0], [1], [0, 0, 1, 1], [], []>} : vector<8x32xf32>, vector<32x128xf32>, vector<8x128xf32> -> vector<8x128xf32>
    %135 = arith.addf %133, %134 : vector<8x128xf32>
    %c32 = arith.constant 32 : index
    %c128_53 = arith.constant 128 : index
    %136 = vector.load %arg9[%c32, %c128_53] : memref<64x256xf32, #tpu.memory_space<vmem>>, vector<8x128xf32>
    %cst_54 = arith.constant dense<0.000000e+00> : vector<8x128xf32>
    %137 = tpu.matmul %130, %14, %cst_54 {dimension_numbers = #tpu.dot_dimension_numbers<[1], [0], [0], [1], [0, 0, 1, 1], [], []>} : vector<8x32xf32>, vector<32x128xf32>, vector<8x128xf32> -> vector<8x128xf32>
    %138 = arith.addf %136, %137 : vector<8x128xf32>
    %139 = math.tanh %135 : vector<8x128xf32>
    %cst_55 = arith.constant 1.000000e+00 : f32
    %140 = vector.broadcast %cst_55 : f32 to vector<8x128xf32>
    %141 = arith.addf %139, %140 : vector<8x128xf32>
    %cst_56 = arith.constant 5.000000e-01 : f32
    %142 = vector.broadcast %cst_56 : f32 to vector<8x128xf32>
    %143 = arith.mulf %142, %141 : vector<8x128xf32>
    %144 = arith.select %12, %139, %143 : vector<8x128xi1>, vector<8x128xf32>
    %145 = vector.extract_strided_slice %144 {offsets = [0, 0], sizes = [8, 32], strides = [1, 1]} : vector<8x128xf32> to vector<8x32xf32>
    %146 = vector.extract_strided_slice %144 {offsets = [0, 32], sizes = [8, 32], strides = [1, 1]} : vector<8x128xf32> to vector<8x32xf32>
    %147 = vector.extract_strided_slice %144 {offsets = [0, 64], sizes = [8, 32], strides = [1, 1]} : vector<8x128xf32> to vector<8x32xf32>
    %148 = vector.extract_strided_slice %144 {offsets = [0, 96], sizes = [8, 32], strides = [1, 1]} : vector<8x128xf32> to vector<8x32xf32>
    %149 = arith.mulf %146, %113 : vector<8x32xf32>
    %150 = arith.mulf %145, %147 : vector<8x32xf32>
    %151 = arith.addf %149, %150 : vector<8x32xf32>
    %152 = math.tanh %151 : vector<8x32xf32>
    %153 = arith.mulf %148, %152 : vector<8x32xf32>
    %154 = math.tanh %138 : vector<8x128xf32>
    %cst_57 = arith.constant 1.000000e+00 : f32
    %155 = vector.broadcast %cst_57 : f32 to vector<8x128xf32>
    %156 = arith.addf %154, %155 : vector<8x128xf32>
    %cst_58 = arith.constant 5.000000e-01 : f32
    %157 = vector.broadcast %cst_58 : f32 to vector<8x128xf32>
    %158 = arith.mulf %157, %156 : vector<8x128xf32>
    %159 = arith.select %12, %154, %158 : vector<8x128xi1>, vector<8x128xf32>
    %160 = vector.extract_strided_slice %159 {offsets = [0, 0], sizes = [8, 32], strides = [1, 1]} : vector<8x128xf32> to vector<8x32xf32>
    %161 = vector.extract_strided_slice %159 {offsets = [0, 32], sizes = [8, 32], strides = [1, 1]} : vector<8x128xf32> to vector<8x32xf32>
    %162 = vector.extract_strided_slice %159 {offsets = [0, 64], sizes = [8, 32], strides = [1, 1]} : vector<8x128xf32> to vector<8x32xf32>
    %163 = vector.extract_strided_slice %159 {offsets = [0, 96], sizes = [8, 32], strides = [1, 1]} : vector<8x128xf32> to vector<8x32xf32>
    %164 = arith.mulf %161, %128 : vector<8x32xf32>
    %165 = arith.mulf %160, %162 : vector<8x32xf32>
    %166 = arith.addf %164, %165 : vector<8x32xf32>
    %167 = math.tanh %166 : vector<8x32xf32>
    %168 = arith.mulf %163, %167 : vector<8x32xf32>
    %c24_59 = arith.constant 24 : index
    %c0_60 = arith.constant 0 : index
    %169 = vector.load %arg10[%c24_59, %c0_60] : memref<64x32xf32, #tpu.memory_space<vmem>>, vector<8x32xf32>
    tpu.vector_store %arg10[%c24_59, %c0_60], %153 {strides = array<i32>} : memref<64x32xf32, #tpu.memory_space<vmem>>, vector<8x32xf32>,
    %c32_61 = arith.constant 32 : index
    %c0_62 = arith.constant 0 : index
    %170 = vector.load %arg11[%c32_61, %c0_62] : memref<64x32xf32, #tpu.memory_space<vmem>>, vector<8x32xf32>
    tpu.vector_store %arg11[%c32_61, %c0_62], %168 {strides = array<i32>} : memref<64x32xf32, #tpu.memory_space<vmem>>, vector<8x32xf32>,
    %c32_63 = arith.constant 32 : index
    %c0_64 = arith.constant 0 : index
    %171 = vector.load %arg9[%c32_63, %c0_64] : memref<64x256xf32, #tpu.memory_space<vmem>>, vector<8x128xf32>
    %cst_65 = arith.constant dense<0.000000e+00> : vector<8x128xf32>
    %172 = tpu.matmul %153, %13, %cst_65 {dimension_numbers = #tpu.dot_dimension_numbers<[1], [0], [0], [1], [0, 0, 1, 1], [], []>} : vector<8x32xf32>, vector<32x128xf32>, vector<8x128xf32> -> vector<8x128xf32>
    %173 = arith.addf %171, %172 : vector<8x128xf32>
    %c24_66 = arith.constant 24 : index
    %c128_67 = arith.constant 128 : index
    %174 = vector.load %arg9[%c24_66, %c128_67] : memref<64x256xf32, #tpu.memory_space<vmem>>, vector<8x128xf32>
    %cst_68 = arith.constant dense<0.000000e+00> : vector<8x128xf32>
    %175 = tpu.matmul %168, %14, %cst_68 {dimension_numbers = #tpu.dot_dimension_numbers<[1], [0], [0], [1], [0, 0, 1, 1], [], []>} : vector<8x32xf32>, vector<32x128xf32>, vector<8x128xf32> -> vector<8x128xf32>
    %176 = arith.addf %174, %175 : vector<8x128xf32>
    %177 = math.tanh %173 : vector<8x128xf32>
    %cst_69 = arith.constant 1.000000e+00 : f32
    %178 = vector.broadcast %cst_69 : f32 to vector<8x128xf32>
    %179 = arith.addf %177, %178 : vector<8x128xf32>
    %cst_70 = arith.constant 5.000000e-01 : f32
    %180 = vector.broadcast %cst_70 : f32 to vector<8x128xf32>
    %181 = arith.mulf %180, %179 : vector<8x128xf32>
    %182 = arith.select %12, %177, %181 : vector<8x128xi1>, vector<8x128xf32>
    %183 = vector.extract_strided_slice %182 {offsets = [0, 0], sizes = [8, 32], strides = [1, 1]} : vector<8x128xf32> to vector<8x32xf32>
    %184 = vector.extract_strided_slice %182 {offsets = [0, 32], sizes = [8, 32], strides = [1, 1]} : vector<8x128xf32> to vector<8x32xf32>
    %185 = vector.extract_strided_slice %182 {offsets = [0, 64], sizes = [8, 32], strides = [1, 1]} : vector<8x128xf32> to vector<8x32xf32>
    %186 = vector.extract_strided_slice %182 {offsets = [0, 96], sizes = [8, 32], strides = [1, 1]} : vector<8x128xf32> to vector<8x32xf32>
    %187 = arith.mulf %184, %151 : vector<8x32xf32>
    %188 = arith.mulf %183, %185 : vector<8x32xf32>
    %189 = arith.addf %187, %188 : vector<8x32xf32>
    %190 = math.tanh %189 : vector<8x32xf32>
    %191 = arith.mulf %186, %190 : vector<8x32xf32>
    %192 = math.tanh %176 : vector<8x128xf32>
    %cst_71 = arith.constant 1.000000e+00 : f32
    %193 = vector.broadcast %cst_71 : f32 to vector<8x128xf32>
    %194 = arith.addf %192, %193 : vector<8x128xf32>
    %cst_72 = arith.constant 5.000000e-01 : f32
    %195 = vector.broadcast %cst_72 : f32 to vector<8x128xf32>
    %196 = arith.mulf %195, %194 : vector<8x128xf32>
    %197 = arith.select %12, %192, %196 : vector<8x128xi1>, vector<8x128xf32>
    %198 = vector.extract_strided_slice %197 {offsets = [0, 0], sizes = [8, 32], strides = [1, 1]} : vector<8x128xf32> to vector<8x32xf32>
    %199 = vector.extract_strided_slice %197 {offsets = [0, 32], sizes = [8, 32], strides = [1, 1]} : vector<8x128xf32> to vector<8x32xf32>
    %200 = vector.extract_strided_slice %197 {offsets = [0, 64], sizes = [8, 32], strides = [1, 1]} : vector<8x128xf32> to vector<8x32xf32>
    %201 = vector.extract_strided_slice %197 {offsets = [0, 96], sizes = [8, 32], strides = [1, 1]} : vector<8x128xf32> to vector<8x32xf32>
    %202 = arith.mulf %199, %166 : vector<8x32xf32>
    %203 = arith.mulf %198, %200 : vector<8x32xf32>
    %204 = arith.addf %202, %203 : vector<8x32xf32>
    %205 = math.tanh %204 : vector<8x32xf32>
    %206 = arith.mulf %201, %205 : vector<8x32xf32>
    %c32_73 = arith.constant 32 : index
    %c0_74 = arith.constant 0 : index
    %207 = vector.load %arg10[%c32_73, %c0_74] : memref<64x32xf32, #tpu.memory_space<vmem>>, vector<8x32xf32>
    tpu.vector_store %arg10[%c32_73, %c0_74], %191 {strides = array<i32>} : memref<64x32xf32, #tpu.memory_space<vmem>>, vector<8x32xf32>,
    %c24_75 = arith.constant 24 : index
    %c0_76 = arith.constant 0 : index
    %208 = vector.load %arg11[%c24_75, %c0_76] : memref<64x32xf32, #tpu.memory_space<vmem>>, vector<8x32xf32>
    tpu.vector_store %arg11[%c24_75, %c0_76], %206 {strides = array<i32>} : memref<64x32xf32, #tpu.memory_space<vmem>>, vector<8x32xf32>,
    %c40_77 = arith.constant 40 : index
    %c0_78 = arith.constant 0 : index
    %209 = vector.load %arg9[%c40_77, %c0_78] : memref<64x256xf32, #tpu.memory_space<vmem>>, vector<8x128xf32>
    %cst_79 = arith.constant dense<0.000000e+00> : vector<8x128xf32>
    %210 = tpu.matmul %191, %13, %cst_79 {dimension_numbers = #tpu.dot_dimension_numbers<[1], [0], [0], [1], [0, 0, 1, 1], [], []>} : vector<8x32xf32>, vector<32x128xf32>, vector<8x128xf32> -> vector<8x128xf32>
    %211 = arith.addf %209, %210 : vector<8x128xf32>
    %c16_80 = arith.constant 16 : index
    %c128_81 = arith.constant 128 : index
    %212 = vector.load %arg9[%c16_80, %c128_81] : memref<64x256xf32, #tpu.memory_space<vmem>>, vector<8x128xf32>
    %cst_82 = arith.constant dense<0.000000e+00> : vector<8x128xf32>
    %213 = tpu.matmul %206, %14, %cst_82 {dimension_numbers = #tpu.dot_dimension_numbers<[1], [0], [0], [1], [0, 0, 1, 1], [], []>} : vector<8x32xf32>, vector<32x128xf32>, vector<8x128xf32> -> vector<8x128xf32>
    %214 = arith.addf %212, %213 : vector<8x128xf32>
    %215 = math.tanh %211 : vector<8x128xf32>
    %cst_83 = arith.constant 1.000000e+00 : f32
    %216 = vector.broadcast %cst_83 : f32 to vector<8x128xf32>
    %217 = arith.addf %215, %216 : vector<8x128xf32>
    %cst_84 = arith.constant 5.000000e-01 : f32
    %218 = vector.broadcast %cst_84 : f32 to vector<8x128xf32>
    %219 = arith.mulf %218, %217 : vector<8x128xf32>
    %220 = arith.select %12, %215, %219 : vector<8x128xi1>, vector<8x128xf32>
    %221 = vector.extract_strided_slice %220 {offsets = [0, 0], sizes = [8, 32], strides = [1, 1]} : vector<8x128xf32> to vector<8x32xf32>
    %222 = vector.extract_strided_slice %220 {offsets = [0, 32], sizes = [8, 32], strides = [1, 1]} : vector<8x128xf32> to vector<8x32xf32>
    %223 = vector.extract_strided_slice %220 {offsets = [0, 64], sizes = [8, 32], strides = [1, 1]} : vector<8x128xf32> to vector<8x32xf32>
    %224 = vector.extract_strided_slice %220 {offsets = [0, 96], sizes = [8, 32], strides = [1, 1]} : vector<8x128xf32> to vector<8x32xf32>
    %225 = arith.mulf %222, %189 : vector<8x32xf32>
    %226 = arith.mulf %221, %223 : vector<8x32xf32>
    %227 = arith.addf %225, %226 : vector<8x32xf32>
    %228 = math.tanh %227 : vector<8x32xf32>
    %229 = arith.mulf %224, %228 : vector<8x32xf32>
    %230 = math.tanh %214 : vector<8x128xf32>
    %cst_85 = arith.constant 1.000000e+00 : f32
    %231 = vector.broadcast %cst_85 : f32 to vector<8x128xf32>
    %232 = arith.addf %230, %231 : vector<8x128xf32>
    %cst_86 = arith.constant 5.000000e-01 : f32
    %233 = vector.broadcast %cst_86 : f32 to vector<8x128xf32>
    %234 = arith.mulf %233, %232 : vector<8x128xf32>
    %235 = arith.select %12, %230, %234 : vector<8x128xi1>, vector<8x128xf32>
    %236 = vector.extract_strided_slice %235 {offsets = [0, 0], sizes = [8, 32], strides = [1, 1]} : vector<8x128xf32> to vector<8x32xf32>
    %237 = vector.extract_strided_slice %235 {offsets = [0, 32], sizes = [8, 32], strides = [1, 1]} : vector<8x128xf32> to vector<8x32xf32>
    %238 = vector.extract_strided_slice %235 {offsets = [0, 64], sizes = [8, 32], strides = [1, 1]} : vector<8x128xf32> to vector<8x32xf32>
    %239 = vector.extract_strided_slice %235 {offsets = [0, 96], sizes = [8, 32], strides = [1, 1]} : vector<8x128xf32> to vector<8x32xf32>
    %240 = arith.mulf %237, %204 : vector<8x32xf32>
    %241 = arith.mulf %236, %238 : vector<8x32xf32>
    %242 = arith.addf %240, %241 : vector<8x32xf32>
    %243 = math.tanh %242 : vector<8x32xf32>
    %244 = arith.mulf %239, %243 : vector<8x32xf32>
    %c40_87 = arith.constant 40 : index
    %c0_88 = arith.constant 0 : index
    %245 = vector.load %arg10[%c40_87, %c0_88] : memref<64x32xf32, #tpu.memory_space<vmem>>, vector<8x32xf32>
    tpu.vector_store %arg10[%c40_87, %c0_88], %229 {strides = array<i32>} : memref<64x32xf32, #tpu.memory_space<vmem>>, vector<8x32xf32>,
    %c16_89 = arith.constant 16 : index
    %c0_90 = arith.constant 0 : index
    %246 = vector.load %arg11[%c16_89, %c0_90] : memref<64x32xf32, #tpu.memory_space<vmem>>, vector<8x32xf32>
    tpu.vector_store %arg11[%c16_89, %c0_90], %244 {strides = array<i32>} : memref<64x32xf32, #tpu.memory_space<vmem>>, vector<8x32xf32>,
    %c48_91 = arith.constant 48 : index
    %c0_92 = arith.constant 0 : index
    %247 = vector.load %arg9[%c48_91, %c0_92] : memref<64x256xf32, #tpu.memory_space<vmem>>, vector<8x128xf32>
    %cst_93 = arith.constant dense<0.000000e+00> : vector<8x128xf32>
    %248 = tpu.matmul %229, %13, %cst_93 {dimension_numbers = #tpu.dot_dimension_numbers<[1], [0], [0], [1], [0, 0, 1, 1], [], []>} : vector<8x32xf32>, vector<32x128xf32>, vector<8x128xf32> -> vector<8x128xf32>
    %249 = arith.addf %247, %248 : vector<8x128xf32>
    %c8_94 = arith.constant 8 : index
    %c128_95 = arith.constant 128 : index
    %250 = vector.load %arg9[%c8_94, %c128_95] : memref<64x256xf32, #tpu.memory_space<vmem>>, vector<8x128xf32>
    %cst_96 = arith.constant dense<0.000000e+00> : vector<8x128xf32>
    %251 = tpu.matmul %244, %14, %cst_96 {dimension_numbers = #tpu.dot_dimension_numbers<[1], [0], [0], [1], [0, 0, 1, 1], [], []>} : vector<8x32xf32>, vector<32x128xf32>, vector<8x128xf32> -> vector<8x128xf32>
    %252 = arith.addf %250, %251 : vector<8x128xf32>
    %253 = math.tanh %249 : vector<8x128xf32>
    %cst_97 = arith.constant 1.000000e+00 : f32
    %254 = vector.broadcast %cst_97 : f32 to vector<8x128xf32>
    %255 = arith.addf %253, %254 : vector<8x128xf32>
    %cst_98 = arith.constant 5.000000e-01 : f32
    %256 = vector.broadcast %cst_98 : f32 to vector<8x128xf32>
    %257 = arith.mulf %256, %255 : vector<8x128xf32>
    %258 = arith.select %12, %253, %257 : vector<8x128xi1>, vector<8x128xf32>
    %259 = vector.extract_strided_slice %258 {offsets = [0, 0], sizes = [8, 32], strides = [1, 1]} : vector<8x128xf32> to vector<8x32xf32>
    %260 = vector.extract_strided_slice %258 {offsets = [0, 32], sizes = [8, 32], strides = [1, 1]} : vector<8x128xf32> to vector<8x32xf32>
    %261 = vector.extract_strided_slice %258 {offsets = [0, 64], sizes = [8, 32], strides = [1, 1]} : vector<8x128xf32> to vector<8x32xf32>
    %262 = vector.extract_strided_slice %258 {offsets = [0, 96], sizes = [8, 32], strides = [1, 1]} : vector<8x128xf32> to vector<8x32xf32>
    %263 = arith.mulf %260, %227 : vector<8x32xf32>
    %264 = arith.mulf %259, %261 : vector<8x32xf32>
    %265 = arith.addf %263, %264 : vector<8x32xf32>
    %266 = math.tanh %265 : vector<8x32xf32>
    %267 = arith.mulf %262, %266 : vector<8x32xf32>
    %268 = math.tanh %252 : vector<8x128xf32>
    %cst_99 = arith.constant 1.000000e+00 : f32
    %269 = vector.broadcast %cst_99 : f32 to vector<8x128xf32>
    %270 = arith.addf %268, %269 : vector<8x128xf32>
    %cst_100 = arith.constant 5.000000e-01 : f32
    %271 = vector.broadcast %cst_100 : f32 to vector<8x128xf32>
    %272 = arith.mulf %271, %270 : vector<8x128xf32>
    %273 = arith.select %12, %268, %272 : vector<8x128xi1>, vector<8x128xf32>
    %274 = vector.extract_strided_slice %273 {offsets = [0, 0], sizes = [8, 32], strides = [1, 1]} : vector<8x128xf32> to vector<8x32xf32>
    %275 = vector.extract_strided_slice %273 {offsets = [0, 32], sizes = [8, 32], strides = [1, 1]} : vector<8x128xf32> to vector<8x32xf32>
    %276 = vector.extract_strided_slice %273 {offsets = [0, 64], sizes = [8, 32], strides = [1, 1]} : vector<8x128xf32> to vector<8x32xf32>
    %277 = vector.extract_strided_slice %273 {offsets = [0, 96], sizes = [8, 32], strides = [1, 1]} : vector<8x128xf32> to vector<8x32xf32>
    %278 = arith.mulf %275, %242 : vector<8x32xf32>
    %279 = arith.mulf %274, %276 : vector<8x32xf32>
    %280 = arith.addf %278, %279 : vector<8x32xf32>
    %281 = math.tanh %280 : vector<8x32xf32>
    %282 = arith.mulf %277, %281 : vector<8x32xf32>
    %c48_101 = arith.constant 48 : index
    %c0_102 = arith.constant 0 : index
    %283 = vector.load %arg10[%c48_101, %c0_102] : memref<64x32xf32, #tpu.memory_space<vmem>>, vector<8x32xf32>
    tpu.vector_store %arg10[%c48_101, %c0_102], %267 {strides = array<i32>} : memref<64x32xf32, #tpu.memory_space<vmem>>, vector<8x32xf32>,
    %c8_103 = arith.constant 8 : index
    %c0_104 = arith.constant 0 : index
    %284 = vector.load %arg11[%c8_103, %c0_104] : memref<64x32xf32, #tpu.memory_space<vmem>>, vector<8x32xf32>
    tpu.vector_store %arg11[%c8_103, %c0_104], %282 {strides = array<i32>} : memref<64x32xf32, #tpu.memory_space<vmem>>, vector<8x32xf32>,
    %c56_105 = arith.constant 56 : index
    %c0_106 = arith.constant 0 : index
    %285 = vector.load %arg9[%c56_105, %c0_106] : memref<64x256xf32, #tpu.memory_space<vmem>>, vector<8x128xf32>
    %cst_107 = arith.constant dense<0.000000e+00> : vector<8x128xf32>
    %286 = tpu.matmul %267, %13, %cst_107 {dimension_numbers = #tpu.dot_dimension_numbers<[1], [0], [0], [1], [0, 0, 1, 1], [], []>} : vector<8x32xf32>, vector<32x128xf32>, vector<8x128xf32> -> vector<8x128xf32>
    %287 = arith.addf %285, %286 : vector<8x128xf32>
    %c0_108 = arith.constant 0 : index
    %c128_109 = arith.constant 128 : index
    %288 = vector.load %arg9[%c0_108, %c128_109] : memref<64x256xf32, #tpu.memory_space<vmem>>, vector<8x128xf32>
    %cst_110 = arith.constant dense<0.000000e+00> : vector<8x128xf32>
    %289 = tpu.matmul %282, %14, %cst_110 {dimension_numbers = #tpu.dot_dimension_numbers<[1], [0], [0], [1], [0, 0, 1, 1], [], []>} : vector<8x32xf32>, vector<32x128xf32>, vector<8x128xf32> -> vector<8x128xf32>
    %290 = arith.addf %288, %289 : vector<8x128xf32>
    %291 = math.tanh %287 : vector<8x128xf32>
    %cst_111 = arith.constant 1.000000e+00 : f32
    %292 = vector.broadcast %cst_111 : f32 to vector<8x128xf32>
    %293 = arith.addf %291, %292 : vector<8x128xf32>
    %cst_112 = arith.constant 5.000000e-01 : f32
    %294 = vector.broadcast %cst_112 : f32 to vector<8x128xf32>
    %295 = arith.mulf %294, %293 : vector<8x128xf32>
    %296 = arith.select %12, %291, %295 : vector<8x128xi1>, vector<8x128xf32>
    %297 = vector.extract_strided_slice %296 {offsets = [0, 0], sizes = [8, 32], strides = [1, 1]} : vector<8x128xf32> to vector<8x32xf32>
    %298 = vector.extract_strided_slice %296 {offsets = [0, 32], sizes = [8, 32], strides = [1, 1]} : vector<8x128xf32> to vector<8x32xf32>
    %299 = vector.extract_strided_slice %296 {offsets = [0, 64], sizes = [8, 32], strides = [1, 1]} : vector<8x128xf32> to vector<8x32xf32>
    %300 = vector.extract_strided_slice %296 {offsets = [0, 96], sizes = [8, 32], strides = [1, 1]} : vector<8x128xf32> to vector<8x32xf32>
    %301 = arith.mulf %298, %265 : vector<8x32xf32>
    %302 = arith.mulf %297, %299 : vector<8x32xf32>
    %303 = arith.addf %301, %302 : vector<8x32xf32>
    %304 = math.tanh %303 : vector<8x32xf32>
    %305 = arith.mulf %300, %304 : vector<8x32xf32>
    %306 = math.tanh %290 : vector<8x128xf32>
    %cst_113 = arith.constant 1.000000e+00 : f32
    %307 = vector.broadcast %cst_113 : f32 to vector<8x128xf32>
    %308 = arith.addf %306, %307 : vector<8x128xf32>
    %cst_114 = arith.constant 5.000000e-01 : f32
    %309 = vector.broadcast %cst_114 : f32 to vector<8x128xf32>
    %310 = arith.mulf %309, %308 : vector<8x128xf32>
    %311 = arith.select %12, %306, %310 : vector<8x128xi1>, vector<8x128xf32>
    %312 = vector.extract_strided_slice %311 {offsets = [0, 0], sizes = [8, 32], strides = [1, 1]} : vector<8x128xf32> to vector<8x32xf32>
    %313 = vector.extract_strided_slice %311 {offsets = [0, 32], sizes = [8, 32], strides = [1, 1]} : vector<8x128xf32> to vector<8x32xf32>
    %314 = vector.extract_strided_slice %311 {offsets = [0, 64], sizes = [8, 32], strides = [1, 1]} : vector<8x128xf32> to vector<8x32xf32>
    %315 = vector.extract_strided_slice %311 {offsets = [0, 96], sizes = [8, 32], strides = [1, 1]} : vector<8x128xf32> to vector<8x32xf32>
    %316 = arith.mulf %313, %280 : vector<8x32xf32>
    %317 = arith.mulf %312, %314 : vector<8x32xf32>
    %318 = arith.addf %316, %317 : vector<8x32xf32>
    %319 = math.tanh %318 : vector<8x32xf32>
    %320 = arith.mulf %315, %319 : vector<8x32xf32>
    %c56_115 = arith.constant 56 : index
    %c0_116 = arith.constant 0 : index
    %321 = vector.load %arg10[%c56_115, %c0_116] : memref<64x32xf32, #tpu.memory_space<vmem>>, vector<8x32xf32>
    tpu.vector_store %arg10[%c56_115, %c0_116], %305 {strides = array<i32>} : memref<64x32xf32, #tpu.memory_space<vmem>>, vector<8x32xf32>,
    %c0_117 = arith.constant 0 : index
    %c0_118 = arith.constant 0 : index
    %322 = vector.load %arg11[%c0_117, %c0_118] : memref<64x32xf32, #tpu.memory_space<vmem>>, vector<8x32xf32>
    tpu.vector_store %arg11[%c0_117, %c0_118], %320 {strides = array<i32>} : memref<64x32xf32, #tpu.memory_space<vmem>>, vector<8x32xf32>,
    %c0_119 = arith.constant 0 : index
    %c0_120 = arith.constant 0 : index
    %323 = vector.load %arg10[%c0_119, %c0_120] : memref<64x32xf32, #tpu.memory_space<vmem>>, vector<64x32xf32>
    %c0_121 = arith.constant 0 : index
    %c0_122 = arith.constant 0 : index
    %324 = vector.load %arg5[%c0_121, %c0_122] : memref<32x128xf32, #tpu.memory_space<vmem>>, vector<32x128xf32>
    %cst_123 = arith.constant dense<0.000000e+00> : vector<64x128xf32>
    %325 = tpu.matmul %323, %324, %cst_123 {dimension_numbers = #tpu.dot_dimension_numbers<[1], [0], [0], [1], [0, 0, 1, 1], [], []>} : vector<64x32xf32>, vector<32x128xf32>, vector<64x128xf32> -> vector<64x128xf32>
    %c0_124 = arith.constant 0 : index
    %c0_125 = arith.constant 0 : index
    %326 = vector.load %arg11[%c0_124, %c0_125] : memref<64x32xf32, #tpu.memory_space<vmem>>, vector<64x32xf32>
    %c0_126 = arith.constant 0 : index
    %c0_127 = arith.constant 0 : index
    %327 = vector.load %arg6[%c0_126, %c0_127] : memref<32x128xf32, #tpu.memory_space<vmem>>, vector<32x128xf32>
    %cst_128 = arith.constant dense<0.000000e+00> : vector<64x128xf32>
    %328 = tpu.matmul %326, %327, %cst_128 {dimension_numbers = #tpu.dot_dimension_numbers<[1], [0], [0], [1], [0, 0, 1, 1], [], []>} : vector<64x32xf32>, vector<32x128xf32>, vector<64x128xf32> -> vector<64x128xf32>
    %329 = arith.addf %325, %328 : vector<64x128xf32>
    %c0_129 = arith.constant 0 : index
    %c0_130 = arith.constant 0 : index
    %330 = vector.load %arg7[%c0_129, %c0_130] : memref<1x128xf32, #tpu.memory_space<vmem>>, vector<1x128xf32>
    %331 = vector.broadcast %330 : vector<1x128xf32> to vector<64x128xf32>
    %332 = arith.addf %329, %331 : vector<64x128xf32>
    %c0_131 = arith.constant 0 : index
    %c0_132 = arith.constant 0 : index
    %333 = vector.load %arg8[%c0_131, %c0_132] : memref<64x128xf32, #tpu.memory_space<vmem>>, vector<64x128xf32>
    tpu.vector_store %arg8[%c0_131, %c0_132], %332 {strides = array<i32>} : memref<64x128xf32, #tpu.memory_space<vmem>>, vector<64x128xf32>,
    return
  }
}

</mosaic_0001>

<bundles_post_ra>
// kernel: laia_crnn_forward.3
= control target key start
LH: loop header
LB: loop body
LE: loop exit
PB: predicated region body
PF: predicated region fallthrough
CT: control target
= control target key end

     0   :  { %v479_v0 = vmov 0   ;;  %v22_v11 = vlaneseq  ;;  %s746_s1 = inlined_call_operand.vmem [shape: f32[9,8,1], index: 1, kind: input, shape index: {}]   ;;  %s747_s2 = inlined_call_operand.vmem [shape: f32[8,1], index: 2, kind: input, shape index: {}]   ;;  %s748_s0 = inlined_call_operand.vmem [shape: f32[16,256], index: 0, kind: input, shape index: {}]   ;;  %s749_s3 = inlined_call_operand.vmem [shape: f32[8,256], index: 3, kind: output, shape index: {}]  }
   0x1   :  { %478 = vset.pattern.permute.xlu1 %v479_v0  ;;  %477 = vset.pattern.permute.xlu0 %v479_v0  ;;  %v456_v1 = vld [vmem:[%s746_s1 + $0x10] sm:$0xff]  ;;  %v15_v2 = vld [vmem:[%s746_s1] sm:$0xff]  ;;  %v458_v3 = vld [vmem:[%s746_s1 + $0x18] sm:$0xff] }
   0x2   :  { %66 = vperm.xlu1 %478, %v456_v1   ;;  %18 = vperm.xlu0 %477, %v15_v2   ;;  %v454_v4 = vld [vmem:[%s746_s1 + $0x8] sm:$0xff]  ;;  %v460_v6 = vld [vmem:[%s746_s1 + $0x20] sm:$0xff]  ;;  %v466_v7 = vld [vmem:[%s746_s1 + $0x38] sm:$0xff]  ;;  %v23_v12 = vshrl.u32 %v22_v11, 7 }
   0x3   :  { %v462_v5 = vld [vmem:[%s746_s1 + $0x28] sm:$0xff]  ;;  %v464_v8 = vld [vmem:[%s746_s1 + $0x30] sm:$0xff]  ;;  %v433_v9 = vld [vmem:[%s747_s2] sm:$0xff] }
   0x4   :  { %v468_v10 = vld [vmem:[%s746_s1 + $0x40] sm:$0xff]  ;;  %v530_v13 = vsub.s32 0, %v23_v12  ;;  %v532_v14 = vsub.s32 1, %v23_v12  ;;  %v463_v31 = vld [vmem:[%s748_s0 + $0x10] ss:$8 sm:$0x3] }
   0x5   :  { %v455_v15 = vld [vmem:[%s748_s0 + $0x2] ss:$8 sm:$0x3]  ;;  %v461_v16 = vld [vmem:[%s748_s0 + $0x6] ss:$8 sm:$0x3] }
   0x6   :  { %90 = vperm.xlu1 %478, %v458_v3   ;;  %42 = vperm.xlu0 %477, %v454_v4   ;;  %763 = vst [vmem:[#allocation2_spill] sm:$0xff] %v530_v13  ;;  %764 = vst [vmem:[#allocation3_spill] sm:$0xff] %v532_v14  ;;  %v469_v17 = vld [vmem:[%s748_s0 + $0x3] ss:$8 sm:$0x3]  ;;  %v553_v21 = vrot.slane %v455_v15, %v530_v13  ;;  %v556_v22 = vrot.slane %v455_v15, %v532_v14 }
   0x7   :  { %v470_v18 = vld [vmem:[%s748_s0 + $0x7] ss:$8 sm:$0x3]  ;;  %v14_v19 = vld [vmem:[%s748_s0] ss:$8 sm:$0x3]  ;;  %v559_v23 = vrot.slane %v461_v16, %v530_v13  ;;  %v562_v24 = vrot.slane %v461_v16, %v532_v14  ;;  %v242_v27 = vrot.slane %v469_v17, %v530_v13  ;;  %v246_v28 = vrot.slane %v469_v17, %v532_v14 }
   0x8   :  { %v453_v20 = vld [vmem:[%s748_s0 + $0x1] ss:$8 sm:$0x3]  ;;  %v457_v25 = vld [vmem:[%s748_s0 + $0x4] ss:$8 sm:$0x3]  ;;  %v573_v29 = vrot.slane %v470_v18, %v530_v13  ;;  %v576_v30 = vrot.slane %v470_v18, %v532_v14  ;;  %v25_v33 = vrot.slane %v14_v19, %v530_v13  ;;  %v29_v34 = vrot.slane %v14_v19, %v532_v14 }
   0x9   :  { %v459_v26 = vld [vmem:[%s748_s0 + $0x5] ss:$8 sm:$0x3]  ;;  %v465_v32 = vld [vmem:[%s748_s0 + $0x11] ss:$8 sm:$0x3]  ;;  %v49_v35 = vrot.slane %v453_v20, %v530_v13  ;;  %v53_v36 = vrot.slane %v453_v20, %v532_v14  ;;  %v97_v39 = vrot.slane %v457_v25, %v530_v13  ;;  %v101_v40 = vrot.slane %v457_v25, %v532_v14 }
   0xa   :  { %138 = vperm.xlu1 %478, %v462_v5   ;;  %114 = vperm.xlu0 %477, %v460_v6   ;;  %v467_v37 = vld [vmem:[%s748_s0 + $0x12] ss:$8 sm:$0x3]  ;;  %v471_v38 = vld [vmem:[%s748_s0 + $0x13] ss:$8 sm:$0x3]  ;;  %v597_v41 = vrot.slane %v459_v26, %v530_v13  ;;  %v600_v42 = vrot.slane %v459_v26, %v532_v14  ;;  %v611_v45 = vrot.slane %v463_v31, %v530_v13 }
   0xb   :  { %v473_v43 = vld [vmem:[%s748_s0 + $0x15] ss:$8 sm:$0x3]  ;;  %v608_v44 = vld [vmem:[%s748_s0 + $0x14] ss:$8 sm:$0x3]  ;;  %v614_v46 = vrot.slane %v463_v31, %v532_v14  ;;  %v617_v47 = vrot.slane %v465_v32, %v530_v13  ;;  %v620_v48 = vrot.slane %v465_v32, %v532_v14  ;;  %v631_v51 = vrot.slane %v467_v37, %v530_v13 }
   0xc   :  { %765 = vst [vmem:[#allocation4_spill] sm:$0xff] %v608_v44  ;;  %v474_v49 = vld [vmem:[%s748_s0 + $0x16] ss:$8 sm:$0x3]  ;;  %v634_v52 = vrot.slane %v467_v37, %v532_v14  ;;  %v637_v53 = vrot.slane %v471_v38, %v530_v13  ;;  %v640_v54 = vrot.slane %v471_v38, %v532_v14  ;;  %v643_v55 = vrot.slane %v473_v43, %v530_v13 }
   0xd   :  { %766 = vst [vmem:[#allocation5_spill] sm:$0xff] %v614_v46  ;;  %v628_v50 = vld [vmem:[%s748_s0 + $0x17] ss:$8 sm:$0x3]  ;;  %v646_v56 = vrot.slane %v473_v43, %v532_v14  ;;  %v653_v61 = vrot.slane %v474_v49, %v530_v13  ;;  %v656_v62 = vrot.slane %v474_v49, %v532_v14 }
   0xe   :  { %186 = vperm.xlu1 %478, %v466_v7   ;;  %162 = vperm.xlu0 %477, %v464_v8   ;;  %767 = vst [vmem:[#allocation6_spill] sm:$0xff] %v628_v50  ;;  %768 = vst [vmem:[#allocation7_spill] sm:$0xff] %v637_v53 }
   0xf   :  { %769 = vst [vmem:[#allocation8_spill] sm:$0xff] %v640_v54  ;;  %770 = vst [vmem:[#allocation9_spill] sm:$0xff] %v653_v61 }
  0x10   :  { %771 = vst [vmem:[#allocation10_spill] sm:$0xff] %v656_v62 }
  0x12   :  { %436 = vperm.xlu1 %478, %v433_v9   ;;  %210 = vperm.xlu0 %477, %v468_v10  }
  0x7d   :  { %v67_v59 = vpop.permute.xlu1 %66  ;;  %v19_v60 = vpop.permute.xlu0 %18 }
  0x7e   :  { %v80_v1 = vmul.f32 %v553_v21, %v67_v59  ;;  %v81_v2 = vmul.f32 %v556_v22, %v67_v59  ;;  %v249_v3 = vmul.f32 %v242_v27, %v67_v59  ;;  %v250_v4 = vmul.f32 %v246_v28, %v67_v59 }
  0x7f   :  { %v313_v5 = vmul.f32 %v559_v23, %v67_v59  ;;  %v314_v6 = vmul.f32 %v562_v24, %v67_v59  ;;  %v390_v7 = vmul.f32 %v573_v29, %v67_v59  ;;  %v391_v8 = vmul.f32 %v576_v30, %v67_v59 }
  0x80   :  { %v32_v9 = vmul.f32 %v25_v33, %v19_v60  ;;  %v33_v10 = vmul.f32 %v29_v34, %v19_v60  ;;  %v228_v11 = vmul.f32 %v49_v35, %v19_v60  ;;  %v229_v12 = vmul.f32 %v53_v36, %v19_v60 }
  0x81   :  { %v305_v15 = vmul.f32 %v97_v39, %v19_v60  ;;  %v306_v16 = vmul.f32 %v101_v40, %v19_v60  ;;  %v382_v17 = vmul.f32 %v597_v41, %v19_v60  ;;  %v383_v18 = vmul.f32 %v600_v42, %v19_v60  ;;  %v91_v19 = vpop.permute.xlu1 %90  ;;  %v43_v20 = vpop.permute.xlu0 %42 }
  0x82   :  { %v104_v25 = vmul.f32 %v97_v39, %v91_v19  ;;  %v105_v26 = vmul.f32 %v101_v40, %v91_v19  ;;  %v253_v27 = vmul.f32 %v597_v41, %v91_v19  ;;  %v254_v28 = vmul.f32 %v600_v42, %v91_v19 }
  0x83   :  { %v317_v31 = vmul.f32 %v611_v45, %v91_v19  ;;  %v318_v32 = vmul.f32 %v614_v46, %v91_v19  ;;  %v394_v33 = vmul.f32 %v617_v47, %v91_v19  ;;  %v395_v34 = vmul.f32 %v620_v48, %v91_v19 }
  0x84   :  { %v56_v37 = vmul.f32 %v49_v35, %v43_v20  ;;  %v57_v38 = vmul.f32 %v53_v36, %v43_v20  ;;  %v232_v43 = vmul.f32 %v553_v21, %v43_v20  ;;  %v233_v49 = vmul.f32 %v556_v22, %v43_v20 }
  0x85   :  { %v309_v39 = vmul.f32 %v597_v41, %v43_v20  ;;  %v310_v40 = vmul.f32 %v600_v42, %v43_v20  ;;  %v386_v59 = vmul.f32 %v559_v23, %v43_v20  ;;  %v387_v60 = vmul.f32 %v562_v24, %v43_v20  ;;  %v115_v50 = vpop.permute.xlu0 %114  ;;  %v682_v21 = vpop.permute.xlu1 %138 }
  0x86   :  { %v58_v0 = vadd.f32 %v56_v37, %v32_v9  ;;  %v59_v63 = vadd.f32 %v57_v38, %v33_v10  ;;  %v234_v58 = vadd.f32 %v232_v43, %v228_v11  ;;  %v235_v57 = vadd.f32 %v233_v49, %v229_v12  ;;  %v773_v37 = vld [vmem:[#allocation4_spill] sm:$0xff]  ;;  %v774_v38 = vld [vmem:[#allocation2_spill] sm:$0xff] }
  0x87   :  { %v311_v19 = vadd.f32 %v309_v39, %v305_v15  ;;  %v312_v35 = vadd.f32 %v310_v40, %v306_v16  ;;  %v388_v36 = vadd.f32 %v386_v59, %v382_v17  ;;  %v389_v62 = vadd.f32 %v387_v60, %v383_v18  ;;  %v776_v39 = vld [vmem:[#allocation3_spill] sm:$0xff] }
  0x88   :  { %v82_v22 = vadd.f32 %v80_v1, %v58_v0  ;;  %v83_v61 = vadd.f32 %v81_v2, %v59_v63  ;;  %v251_v54 = vadd.f32 %v249_v3, %v234_v58  ;;  %v252_v53 = vadd.f32 %v250_v4, %v235_v57 }
  0x89   :  { %v315_v14 = vadd.f32 %v313_v5, %v311_v19  ;;  %v316_v13 = vadd.f32 %v314_v6, %v312_v35  ;;  %v392_v44 = vadd.f32 %v390_v7, %v388_v36  ;;  %v393_v46 = vadd.f32 %v391_v8, %v389_v62  ;;  %v163_v4 = vpop.permute.xlu0 %162 }
  0x8a   :  { %v152_v9 = vmul.f32 %v559_v23, %v682_v21  ;;  %v153_v10 = vmul.f32 %v562_v24, %v682_v21  ;;  %v274_v11 = vmul.f32 %v573_v29, %v682_v21  ;;  %v275_v12 = vmul.f32 %v576_v30, %v682_v21 }
  0x8b   :  { %v325_v58 = vmul.f32 %v631_v51, %v682_v21  ;;  %v326_v57 = vmul.f32 %v634_v52, %v682_v21  ;;  %v106_v63 = vadd.f32 %v104_v25, %v82_v22  ;;  %v107_v62 = vadd.f32 %v105_v26, %v83_v61  ;;  %v187_v61 = vpop.permute.xlu1 %186 }
  0x8c   :  { %v128_v0 = vmul.f32 %v597_v41, %v115_v50  ;;  %v129_v1 = vmul.f32 %v600_v42, %v115_v50  ;;  %v255_v2 = vadd.f32 %v253_v27, %v251_v54  ;;  %v256_v3 = vadd.f32 %v254_v28, %v252_v53 }
  0x8d   :  { %v257_v29 = vmul.f32 %v559_v23, %v115_v50  ;;  %v258_v5 = vmul.f32 %v562_v24, %v115_v50  ;;  %v319_v30 = vadd.f32 %v317_v31, %v315_v14  ;;  %v320_v6 = vadd.f32 %v318_v32, %v316_v13  ;;  %v772_v32 = vld [vmem:[#allocation5_spill] sm:$0xff] }
  0x8e   :  { %v130_v7 = vadd.f32 %v128_v0, %v106_v63  ;;  %v131_v8 = vadd.f32 %v129_v1, %v107_v62  ;;  %v321_v15 = vmul.f32 %v617_v47, %v115_v50  ;;  %v322_v16 = vmul.f32 %v620_v48, %v115_v50  ;;  %v778_v63 = vld [vmem:[#allocation7_spill] sm:$0xff]  ;;  %v779_v0 = vld [vmem:[#allocation8_spill] sm:$0xff] }
  0x8f   :  { %v259_v17 = vadd.f32 %v257_v29, %v255_v2  ;;  %v260_v41 = vadd.f32 %v258_v5, %v256_v3  ;;  %v396_v18 = vadd.f32 %v394_v33, %v392_v44  ;;  %v397_v42 = vadd.f32 %v395_v34, %v393_v46  ;;  %v211_v46 = vpop.permute.xlu0 %210 }
  0x90   :  { %v323_v54 = vadd.f32 %v321_v15, %v319_v30  ;;  %v324_v53 = vadd.f32 %v322_v16, %v320_v6  ;;  %v398_v20 = vmul.f32 %v631_v51, %v115_v50  ;;  %v399_v23 = vmul.f32 %v634_v52, %v115_v50  ;;  %v780_v6 = vld [vmem:[#allocation9_spill] sm:$0xff] }
  0x91   :  { %v200_v14 = vmul.f32 %v617_v47, %v187_v61  ;;  %v201_v13 = vmul.f32 %v620_v48, %v187_v61  ;;  %v282_v24 = vmul.f32 %v631_v51, %v187_v61  ;;  %v283_v25 = vmul.f32 %v634_v52, %v187_v61 }
  0x92   :  { %v400_v26 = vadd.f32 %v398_v20, %v396_v18  ;;  %v401_v27 = vadd.f32 %v399_v23, %v397_v42  ;;  %v359_v28 = vmul.f32 %v643_v55, %v187_v61  ;;  %v360_v44 = vmul.f32 %v646_v56, %v187_v61 }
  0x93   :  { %v176_v31 = vmul.f32 %v611_v45, %v163_v4  ;;  %v177_v33 = vmul.f32 %v772_v32, %v163_v4  ;;  %v278_v50 = vmul.f32 %v617_v47, %v163_v4  ;;  %v279_v34 = vmul.f32 %v620_v48, %v163_v4  ;;  %v782_v32 = vld [vmem:[#allocation6_spill] sm:$0xff] }
  0x94   :  { %v775_v43 = vrot.slane %v773_v37, %v774_v38  ;;  %v777_v40 = vrot.slane %v773_v37, %v776_v39  ;;  %v406_v60 = vmul.f32 %v643_v55, %v163_v4  ;;  %v407_v19 = vmul.f32 %v646_v56, %v163_v4 }
  0x95   :  { %v154_v35 = vadd.f32 %v152_v9, %v130_v7  ;;  %v155_v45 = vadd.f32 %v153_v10, %v131_v8  ;;  %v224_v36 = vmul.f32 %v631_v51, %v211_v46  ;;  %v225_v47 = vmul.f32 %v634_v52, %v211_v46  ;;  %v781_v9 = vld [vmem:[#allocation10_spill] sm:$0xff] }
  0x96   :  { %v342_v49 = vmul.f32 %v775_v43, %v163_v4  ;;  %v343_v59 = vmul.f32 %v777_v40, %v163_v4  ;;  %v276_v22 = vadd.f32 %v274_v11, %v259_v17  ;;  %v277_v48 = vadd.f32 %v275_v12, %v260_v41  ;;  %v437_v40 = vpop.permute.xlu1 %436 }
  0x97   :  { %v299_v62 = vmul.f32 %v778_v63, %v211_v46  ;;  %v300_v1 = vmul.f32 %v779_v0, %v211_v46  ;;  %v178_v2 = vadd.f32 %v176_v31, %v154_v35  ;;  %v179_v3 = vadd.f32 %v177_v33, %v155_v45 }
  0x98   :  { %v327_v29 = vadd.f32 %v325_v58, %v323_v54  ;;  %v328_v5 = vadd.f32 %v326_v57, %v324_v53  ;;  %v280_v30 = vadd.f32 %v278_v50, %v276_v22  ;;  %v281_v55 = vadd.f32 %v279_v34, %v277_v48 }
  0x99   :  { %v376_v56 = vmul.f32 %v780_v6, %v211_v46  ;;  %v377_v10 = vmul.f32 %v781_v9, %v211_v46  ;;  %v202_v4 = vadd.f32 %v200_v14, %v178_v2  ;;  %v203_v51 = vadd.f32 %v201_v13, %v179_v3 }
  0x9a   :  { %v344_v7 = vadd.f32 %v342_v49, %v327_v29  ;;  %v345_v52 = vadd.f32 %v343_v59, %v328_v5  ;;  %v284_v11 = vadd.f32 %v282_v24, %v280_v30  ;;  %v285_v12 = vadd.f32 %v283_v25, %v281_v55 }
  0x9b   :  { %v402_v8 = vmul.f32 %v778_v63, %v682_v21  ;;  %v403_v15 = vmul.f32 %v779_v0, %v682_v21  ;;  %v226_v58 = vadd.f32 %v224_v36, %v202_v4  ;;  %v227_v57 = vadd.f32 %v225_v47, %v203_v51 }
  0x9c   :  { %v361_v16 = vadd.f32 %v359_v28, %v344_v7  ;;  %v362_v17 = vadd.f32 %v360_v44, %v345_v52  ;;  %v301_v41 = vadd.f32 %v299_v62, %v284_v11  ;;  %v302_v18 = vadd.f32 %v300_v1, %v285_v12 }
  0x9d   :  { %v404_v42 = vadd.f32 %v402_v8, %v400_v26  ;;  %v405_v54 = vadd.f32 %v403_v15, %v401_v27  ;;  %v410_v23 = vmul.f32 %v780_v6, %v187_v61  ;;  %v411_v14 = vmul.f32 %v781_v9, %v187_v61 }
  0x9e   :  { %v378_v53 = vadd.f32 %v376_v56, %v361_v16  ;;  %v379_v20 = vadd.f32 %v377_v10, %v362_v17  ;;  %v303_v13 = vmax.f32 %v226_v58, %v301_v41  ;;  %v304_v24 = vmax.f32 %v227_v57, %v302_v18 }
  0x9f   :  { %v408_v25 = vadd.f32 %v406_v60, %v404_v42  ;;  %v409_v31 = vadd.f32 %v407_v19, %v405_v54  ;;  %v783_v21 = vrot.slane %v782_v32, %v774_v38  ;;  %v784_v28 = vrot.slane %v782_v32, %v776_v39 }
  0xa0   :  { %v380_v26 = vmax.f32 %v303_v13, %v378_v53  ;;  %v381_v27 = vmax.f32 %v304_v24, %v379_v20 }
  0xa1   :  { %v427_v33 = vmul.f32 %v783_v21, %v211_v46  ;;  %v428_v44 = vmul.f32 %v784_v28, %v211_v46  ;;  %v412_v50 = vadd.f32 %v410_v23, %v408_v25  ;;  %v413_v34 = vadd.f32 %v411_v14, %v409_v31 }
  0xa3   :  { %v429_v37 = vadd.f32 %v427_v33, %v412_v50  ;;  %v430_v43 = vadd.f32 %v428_v44, %v413_v34 }
  0xa5   :  { %v431_v49 = vmax.f32 %v380_v26, %v429_v37  ;;  %v432_v61 = vmax.f32 %v381_v27, %v430_v43 }
  0xa7   :  { %v439_v59 = vadd.f32 %v437_v40, %v431_v49  ;;  %v440_v60 = vadd.f32 %v437_v40, %v432_v61 }
  0xa9   :  { %vm441_vm0 = vcmp.ge.f32.partialorder %v439_v59, 0.0  ;;  %vm442_vm1 = vcmp.ge.f32.partialorder %v440_v60, 0.0  ;;  %v443_v19 = vmul.f32 0.01, %v439_v59  ;;  %v444_v38 = vmul.f32 0.01, %v440_v60 }
  0xab   :  { %v445_v35 = vsel %vm441_vm0, %v439_v59, %v443_v19  ;;  %v446_v45 = vsel %vm442_vm1, %v440_v60, %v444_v38 }
  0xac   :  { %447 = vst [vmem:[%s749_s3] sm:$0xff] %v445_v35  ;;  %448 = vst [vmem:[%s749_s3 + $0x8] sm:$0xff] %v446_v45 }

// kernel: laia_crnn_forward.4
= control target key start
LH: loop header
LB: loop body
LE: loop exit
PB: predicated region body
PF: predicated region fallthrough
CT: control target
= control target key end

     0   :  { %vm21_vm0 = vcmask 64512   ;;  %v3277_v3 = vmov 0   ;;  %s3701_s0 = inlined_call_operand.vmem [shape: f32[128,128], index: 0, kind: input, shape index: {}]   ;;  %s3702_s1 = inlined_call_operand.vmem [shape: f32[9,16,8], index: 1, kind: input, shape index: {}]   ;;  %s3703_s2 = inlined_call_operand.vmem [shape: f32[16,1], index: 2, kind: input, shape index: {}]   ;;  %s3704_s3 = inlined_call_operand.vmem [shape: f32[16,128], index: 3, kind: output, shape index: {}]  }
   0x1   :  { %v3301_v0 = vld [vmem:[%s3701_s0 + $0x8] sm:$0xff]  ;;  %v14_v1 = vld [vmem:[%s3701_s0] sm:$0xff]  ;;  %v3309_v2 = vld [vmem:[%s3702_s1 + $0x10] sm:$0xff]  ;;  %3276 = vset.pattern.permute.xlu0 %v3277_v3 }
   0x2   :  { %3095 = vmatprep.subr.mxu0 %v3301_v0  ;;  %3100 = vmatprep.subr.mxu1 %v14_v1  ;;  %v3315_v4 = vld [vmem:[%s3702_s1] sm:$0xff]  ;;  %v3320_v5 = vld [vmem:[%s3702_s1 + $0x18] sm:$0xff]  ;;  %v3325_v6 = vld [vmem:[%s3702_s1 + $0x8] sm:$0xff] }
   0x3   :  { %3096 = vmatpush3.msra.mxu0 %v3301_v0  ;;  %3097 = vmatprep.mubr.msk.f32.mxu0 %vm21_vm0, %v3309_v2  ;;  %v184_v7 = vld [vmem:[%s3701_s0 + $0x10] sm:$0xff]  ;;  %v3336_v8 = vld [vmem:[%s3701_s0 + $0x20] sm:$0xff]  ;;  %v3358_v11 = vld [vmem:[%s3702_s1 + $0x28] sm:$0xff] }
   0x4   :  { %3101 = vmatpush3.msra.mxu1 %v14_v1  ;;  %3102 = vmatprep.mubr.msk.f32.mxu1 %vm21_vm0, %v3315_v4  ;;  %v3343_v9 = vld [vmem:[%s3702_s1 + $0x20] sm:$0xff]  ;;  %v3352_v10 = vld [vmem:[%s3702_s1 + $0x30] sm:$0xff]  ;;  %v3363_v12 = vld [vmem:[%s3702_s1 + $0x38] sm:$0xff] }
   0x5   :  { %3098 = vmatmul.mubr.msk.f32.vlgmr.msra.gmra.mxu0 %vm21_vm0, %v3320_v5  ;;  %3103 = vmatmul.mubr.msk.f32.vlgmr.msra.gmra.mxu1 %vm21_vm0, %v3325_v6  ;;  %v3370_v13 = vld [vmem:[%s3701_s0 + $0x28] sm:$0xff]  ;;  %v3375_v14 = vld [vmem:[%s3701_s0 + $0x30] sm:$0xff]  ;;  %v3383_v15 = vld [vmem:[%s3702_s1 + $0x40] sm:$0xff] }
   0x6   :  { %3105 = vmatprep.subr.mxu0 %v184_v7  ;;  %3110 = vmatprep.subr.mxu1 %v3336_v8  ;;  %v3392_v16 = vld [vmem:[%s3702_s1 + $0x50] sm:$0xff]  ;;  %v3399_v17 = vld [vmem:[%s3702_s1 + $0x48] sm:$0xff]  ;;  %v3404_v18 = vld [vmem:[%s3702_s1 + $0x58] sm:$0xff] }
   0x7   :  { %3106 = vmatpush3.msra.mxu0 %v184_v7  ;;  %3107 = vmatprep.mubr.msk.f32.mxu0 %vm21_vm0, %v3343_v9  ;;  %v3412_v19 = vld [vmem:[%s3701_s0 + $0x40] sm:$0xff]  ;;  %v3417_v20 = vld [vmem:[%s3701_s0 + $0x48] sm:$0xff]  ;;  %v3434_v22 = vld [vmem:[%s3702_s1 + $0x70] sm:$0xff] }
   0x8   :  { %3111 = vmatpush3.msra.mxu1 %v3336_v8  ;;  %3112 = vmatprep.mubr.msk.f32.mxu1 %vm21_vm0, %v3352_v10  ;;  %v3425_v21 = vld [vmem:[%s3702_s1 + $0x60] sm:$0xff]  ;;  %v3441_v23 = vld [vmem:[%s3702_s1 + $0x68] sm:$0xff]  ;;  %v3446_v24 = vld [vmem:[%s3702_s1 + $0x78] sm:$0xff] }
   0x9   :  { %3108 = vmatmul.mubr.msk.f32.vlgmr.msra.gmra.mxu0 %vm21_vm0, %v3358_v11  ;;  %3113 = vmatmul.mubr.msk.f32.vlgmr.msra.gmra.mxu1 %vm21_vm0, %v3363_v12  ;;  %v3454_v25 = vld [vmem:[%s3701_s0 + $0x50] sm:$0xff]  ;;  %v3462_v26 = vld [vmem:[%s3702_s1 + $0x80] sm:$0xff]  ;;  %v3472_v27 = vld [vmem:[%s3702_s1 + $0x88] sm:$0xff] }
   0xa   :  { %3115 = vmatprep.subr.mxu0 %v3370_v13  ;;  %3120 = vmatprep.subr.mxu1 %v3375_v14  ;;  %v943_v28 = vld [vmem:[%s3701_s0 + $0x18] sm:$0xff]  ;;  %v1945_v31 = vld [vmem:[%s3701_s0 + $0x60] sm:$0xff]  ;;  %v2023_v32 = vld [vmem:[%s3701_s0 + $0x68] sm:$0xff] }
   0xb   :  { %3116 = vmatpush3.msra.mxu0 %v3370_v13  ;;  %3117 = vmatprep.mubr.msk.f32.mxu0 %vm21_vm0, %v3383_v15  ;;  %v3504_v29 = vld [vmem:[%s3701_s0 + $0x38] sm:$0xff]  ;;  %v2101_v33 = vld [vmem:[%s3701_s0 + $0x70] sm:$0xff]  ;;  %v2873_v35 = vld [vmem:[%s3703_s2] sm:$0xff] }
   0xc   :  { %3121 = vmatpush3.msra.mxu1 %v3375_v14  ;;  %3122 = vmatprep.mubr.msk.f32.mxu1 %vm21_vm0, %v3392_v16  ;;  %v3521_v30 = vld [vmem:[%s3701_s0 + $0x58] sm:$0xff]  ;;  %v2874_v36 = vld [vmem:[%s3703_s2 + $0x8] sm:$0xff] }
   0xd   :  { %3118 = vmatmul.mubr.msk.f32.vlgmr.msra.gmra.mxu0 %vm21_vm0, %v3399_v17  ;;  %3123 = vmatmul.mubr.msk.f32.vlgmr.msra.gmra.mxu1 %vm21_vm0, %v3404_v18  ;;  %v2793_v34 = vld [vmem:[%s3701_s0 + $0x78] sm:$0xff] }
   0xe   :  { %3125 = vmatprep.subr.mxu0 %v3412_v19  ;;  %3130 = vmatprep.subr.mxu1 %v3417_v20 }
   0xf   :  { %3126 = vmatpush3.msra.mxu0 %v3412_v19  ;;  %3127 = vmatprep.mubr.msk.f32.mxu0 %vm21_vm0, %v3425_v21 }
  0x10   :  { %3131 = vmatpush3.msra.mxu1 %v3417_v20  ;;  %3132 = vmatprep.mubr.msk.f32.mxu1 %vm21_vm0, %v3434_v22 }
  0x11   :  { %3128 = vmatmul.mubr.msk.f32.vlgmr.msra.gmra.mxu0 %vm21_vm0, %v3441_v23  ;;  %3133 = vmatmul.mubr.msk.f32.vlgmr.msra.gmra.mxu1 %vm21_vm0, %v3446_v24 }
  0x12   :  { %3135 = vmatprep.subr.mxu0 %v3454_v25  ;;  %3140 = vmatprep.subr.mxu1 %v184_v7 }
  0x13   :  { %3136 = vmatpush3.msra.mxu0 %v3454_v25  ;;  %3137 = vmatprep.mubr.msk.f32.mxu0 %vm21_vm0, %v3462_v26 }
  0x14   :  { %3141 = vmatpush3.msra.mxu1 %v184_v7  ;;  %3142 = vmatprep.mubr.msk.f32.mxu1 %vm21_vm0, %v3309_v2 }
  0x15   :  { %3138 = vmatmul.mubr.msk.f32.vlgmr.msra.gmra.mxu0 %vm21_vm0, %v3472_v27  ;;  %3143 = vmatmul.mubr.msk.f32.vlgmr.msra.gmra.mxu1 %vm21_vm0, %v3320_v5 }
  0x16   :  { %3145 = vmatprep.subr.mxu0 %v3301_v0  ;;  %3150 = vmatprep.subr.mxu1 %v943_v28 }
  0x17   :  { %3146 = vmatpush3.msra.mxu0 %v3301_v0  ;;  %3147 = vmatprep.mubr.msk.f32.mxu0 %vm21_vm0, %v3315_v4 }
  0x18   :  { %3151 = vmatpush3.msra.mxu1 %v943_v28  ;;  %3152 = vmatprep.mubr.msk.f32.mxu1 %vm21_vm0, %v3343_v9 }
  0x19   :  { %3148 = vmatmul.mubr.msk.f32.vlgmr.msra.gmra.mxu0 %vm21_vm0, %v3325_v6  ;;  %3153 = vmatmul.mubr.msk.f32.vlgmr.msra.gmra.mxu1 %vm21_vm0, %v3358_v11 }
  0x1a   :  { %3155 = vmatprep.subr.mxu0 %v3370_v13  ;;  %3160 = vmatprep.subr.mxu1 %v3375_v14 }
  0x1b   :  { %3156 = vmatpush3.msra.mxu0 %v3370_v13  ;;  %3157 = vmatprep.mubr.msk.f32.mxu0 %vm21_vm0, %v3352_v10 }
  0x1c   :  { %3161 = vmatpush3.msra.mxu1 %v3375_v14  ;;  %3162 = vmatprep.mubr.msk.f32.mxu1 %vm21_vm0, %v3383_v15 }
  0x1d   :  { %3158 = vmatmul.mubr.msk.f32.vlgmr.msra.gmra.mxu0 %vm21_vm0, %v3363_v12  ;;  %3163 = vmatmul.mubr.msk.f32.vlgmr.msra.gmra.mxu1 %vm21_vm0, %v3399_v17 }
  0x1e   :  { %3165 = vmatprep.subr.mxu0 %v3504_v29  ;;  %3170 = vmatprep.subr.mxu1 %v3417_v20 }
  0x1f   :  { %3166 = vmatpush3.msra.mxu0 %v3504_v29  ;;  %3167 = vmatprep.mubr.msk.f32.mxu0 %vm21_vm0, %v3392_v16 }
  0x20   :  { %3171 = vmatpush3.msra.mxu1 %v3417_v20  ;;  %3172 = vmatprep.mubr.msk.f32.mxu1 %vm21_vm0, %v3425_v21 }
  0x21   :  { %3168 = vmatmul.mubr.msk.f32.vlgmr.msra.gmra.mxu0 %vm21_vm0, %v3404_v18  ;;  %3173 = vmatmul.mubr.msk.f32.vlgmr.msra.gmra.mxu1 %vm21_vm0, %v3441_v23 }
  0x22   :  { %3175 = vmatprep.subr.mxu0 %v3454_v25  ;;  %3180 = vmatprep.subr.mxu1 %v3521_v30 }
  0x23   :  { %3176 = vmatpush3.msra.mxu0 %v3454_v25  ;;  %3177 = vmatprep.mubr.msk.f32.mxu0 %vm21_vm0, %v3434_v22 }
  0x24   :  { %3181 = vmatpush3.msra.mxu1 %v3521_v30  ;;  %3182 = vmatprep.mubr.msk.f32.mxu1 %vm21_vm0, %v3462_v26 }
  0x25   :  { %3178 = vmatmul.mubr.msk.f32.vlgmr.msra.gmra.mxu0 %vm21_vm0, %v3446_v24  ;;  %3183 = vmatmul.mubr.msk.f32.vlgmr.msra.gmra.mxu1 %vm21_vm0, %v3472_v27 }
  0x26   :  { %3185 = vmatprep.subr.mxu0 %v3370_v13  ;;  %3190 = vmatprep.subr.mxu1 %v3336_v8 }
  0x27   :  { %3186 = vmatpush3.msra.mxu0 %v3370_v13  ;;  %3187 = vmatprep.mubr.msk.f32.mxu0 %vm21_vm0, %v3309_v2 }
  0x28   :  { %3191 = vmatpush3.msra.mxu1 %v3336_v8  ;;  %3192 = vmatprep.mubr.msk.f32.mxu1 %vm21_vm0, %v3315_v4 }
  0x29   :  { %3188 = vmatmul.mubr.msk.f32.vlgmr.msra.gmra.mxu0 %vm21_vm0, %v3320_v5  ;;  %3193 = vmatmul.mubr.msk.f32.vlgmr.msra.gmra.mxu1 %vm21_vm0, %v3325_v6 }
  0x2a   :  { %3195 = vmatprep.subr.mxu0 %v3375_v14  ;;  %3200 = vmatprep.subr.mxu1 %v3412_v19 }
  0x2b   :  { %3196 = vmatpush3.msra.mxu0 %v3375_v14  ;;  %3197 = vmatprep.mubr.msk.f32.mxu0 %vm21_vm0, %v3343_v9 }
  0x2c   :  { %3201 = vmatpush3.msra.mxu1 %v3412_v19  ;;  %3202 = vmatprep.mubr.msk.f32.mxu1 %vm21_vm0, %v3352_v10 }
  0x2d   :  { %3198 = vmatmul.mubr.msk.f32.vlgmr.msra.gmra.mxu0 %vm21_vm0, %v3358_v11  ;;  %3205 = vmatprep.subr.mxu0 %v3417_v20 }
  0x2e   :  { %3203 = vmatmul.mubr.msk.f32.vlgmr.msra.gmra.mxu1 %vm21_vm0, %v3363_v12  ;;  %3206 = vmatpush3.msra.mxu0 %v3417_v20 }
  0x2f   :  { %3210 = vmatprep.subr.mxu1 %v3454_v25  ;;  %3207 = vmatprep.mubr.msk.f32.mxu0 %vm21_vm0, %v3383_v15 }
  0x30   :  { %3211 = vmatpush3.msra.mxu1 %v3454_v25  ;;  %3212 = vmatprep.mubr.msk.f32.mxu1 %vm21_vm0, %v3392_v16 }
  0x31   :  { %3208 = vmatmul.mubr.msk.f32.vlgmr.msra.gmra.mxu0 %vm21_vm0, %v3399_v17  ;;  %3215 = vmatprep.subr.mxu0 %v1945_v31 }
  0x32   :  { %3213 = vmatmul.mubr.msk.f32.vlgmr.msra.gmra.mxu1 %vm21_vm0, %v3404_v18  ;;  %3216 = vmatpush3.msra.mxu0 %v1945_v31 }
  0x33   :  { %3220 = vmatprep.subr.mxu1 %v2023_v32  ;;  %3217 = vmatprep.mubr.msk.f32.mxu0 %vm21_vm0, %v3425_v21 }
  0x34   :  { %3221 = vmatpush3.msra.mxu1 %v2023_v32  ;;  %3222 = vmatprep.mubr.msk.f32.mxu1 %vm21_vm0, %v3434_v22 }
  0x35   :  { %3218 = vmatmul.mubr.msk.f32.vlgmr.msra.gmra.mxu0 %vm21_vm0, %v3441_v23  ;;  %3225 = vmatprep.subr.mxu0 %v2101_v33 }
  0x36   :  { %3223 = vmatmul.mubr.msk.f32.vlgmr.msra.gmra.mxu1 %vm21_vm0, %v3446_v24  ;;  %3226 = vmatpush3.msra.mxu0 %v2101_v33 }
  0x37   :  { %3230 = vmatprep.subr.mxu1 %v3375_v14  ;;  %3227 = vmatprep.mubr.msk.f32.mxu0 %vm21_vm0, %v3462_v26 }
  0x38   :  { %3231 = vmatpush3.msra.mxu1 %v3375_v14  ;;  %3232 = vmatprep.mubr.msk.f32.mxu1 %vm21_vm0, %v3309_v2 }
  0x39   :  { %3228 = vmatmul.mubr.msk.f32.vlgmr.msra.gmra.mxu0 %vm21_vm0, %v3472_v27  ;;  %3235 = vmatprep.subr.mxu0 %v3370_v13 }
  0x3a   :  { %3233 = vmatmul.mubr.msk.f32.vlgmr.msra.gmra.mxu1 %vm21_vm0, %v3320_v5  ;;  %3236 = vmatpush3.msra.mxu0 %v3370_v13 }
  0x3b   :  { %3240 = vmatprep.subr.mxu1 %v3504_v29  ;;  %3237 = vmatprep.mubr.msk.f32.mxu0 %vm21_vm0, %v3315_v4 }
  0x3c   :  { %3241 = vmatpush3.msra.mxu1 %v3504_v29  ;;  %3242 = vmatprep.mubr.msk.f32.mxu1 %vm21_vm0, %v3343_v9 }
  0x3d   :  { %3238 = vmatmul.mubr.msk.f32.vlgmr.msra.gmra.mxu0 %vm21_vm0, %v3325_v6  ;;  %3245 = vmatprep.subr.mxu0 %v3417_v20 }
  0x3e   :  { %3243 = vmatmul.mubr.msk.f32.vlgmr.msra.gmra.mxu1 %vm21_vm0, %v3358_v11  ;;  %3246 = vmatpush3.msra.mxu0 %v3417_v20 }
  0x3f   :  { %3250 = vmatprep.subr.mxu1 %v3454_v25  ;;  %3247 = vmatprep.mubr.msk.f32.mxu0 %vm21_vm0, %v3352_v10 }
  0x40   :  { %3251 = vmatpush3.msra.mxu1 %v3454_v25  ;;  %3252 = vmatprep.mubr.msk.f32.mxu1 %vm21_vm0, %v3383_v15 }
  0x41   :  { %3248 = vmatmul.mubr.msk.f32.vlgmr.msra.gmra.mxu0 %vm21_vm0, %v3363_v12  ;;  %3255 = vmatprep.subr.mxu0 %v3521_v30 }
  0x42   :  { %3253 = vmatmul.mubr.msk.f32.vlgmr.msra.gmra.mxu1 %vm21_vm0, %v3399_v17  ;;  %3256 = vmatpush3.msra.mxu0 %v3521_v30 }
  0x43   :  { %3260 = vmatprep.subr.mxu1 %v2023_v32  ;;  %3257 = vmatprep.mubr.msk.f32.mxu0 %vm21_vm0, %v3392_v16 }
  0x44   :  { %3261 = vmatpush3.msra.mxu1 %v2023_v32  ;;  %3262 = vmatprep.mubr.msk.f32.mxu1 %vm21_vm0, %v3425_v21 }
  0x45   :  { %3258 = vmatmul.mubr.msk.f32.vlgmr.msra.gmra.mxu0 %vm21_vm0, %v3404_v18  ;;  %3265 = vmatprep.subr.mxu0 %v2101_v33 }
  0x46   :  { %3263 = vmatmul.mubr.msk.f32.vlgmr.msra.gmra.mxu1 %vm21_vm0, %v3441_v23  ;;  %3266 = vmatpush3.msra.mxu0 %v2101_v33 }
  0x47   :  { %3270 = vmatprep.subr.mxu1 %v2793_v34  ;;  %3267 = vmatprep.mubr.msk.f32.mxu0 %vm21_vm0, %v3434_v22 }
  0x48   :  { %3271 = vmatpush3.msra.mxu1 %v2793_v34  ;;  %3272 = vmatprep.mubr.msk.f32.mxu1 %vm21_vm0, %v3462_v26 }
  0x49   :  { %3268 = vmatmul.mubr.msk.f32.vlgmr.msra.gmra.mxu0 %vm21_vm0, %v3446_v24  ;;  %2877 = vperm.xlu0 %3276, %v2873_v35  }
  0x4a   :  { %3273 = vmatmul.mubr.msk.f32.vlgmr.msra.gmra.mxu1 %vm21_vm0, %v3472_v27 }
  0x4d   :  { %2882 = vperm.xlu0 %3276, %v2874_v36  }
  0xc5   :  { %v3099_v37 = vpop.f32.mrf.mxu0  ;;  %v3104_v38 = vpop.f32.mrf.mxu1 }
  0xc6   :  { %v181_v15 = vadd.f32 %v3104_v38, %v3099_v37 }
  0xc7   :  { %v94_v39 = vpop.f32.mrf.mxu0  ;;  %v175_v40 = vpop.f32.mrf.mxu1 }
  0xc8   :  { %v176_v20 = vadd.f32 %v175_v40, %v94_v39 }
  0xc9   :  { %v3109_v41 = vpop.f32.mrf.mxu0  ;;  %v3114_v42 = vpop.f32.mrf.mxu1 }
  0xca   :  { %v270_v21 = vadd.f32 %v3109_v41, %v181_v15 }
  0xcb   :  { %v260_v43 = vpop.f32.mrf.mxu0  ;;  %v347_v44 = vpop.f32.mrf.mxu1 }
  0xcc   :  { %v269_v27 = vadd.f32 %v260_v43, %v176_v20  ;;  %v357_v32 = vadd.f32 %v3114_v42, %v270_v21 }
  0xcd   :  { %v3119_v45 = vpop.f32.mrf.mxu0  ;;  %v3656_v46 = vpop.f32.mrf.mxu1 }
  0xce   :  { %v356_v37 = vadd.f32 %v347_v44, %v269_v27  ;;  %v444_v41 = vadd.f32 %v3119_v45, %v357_v32 }
  0xcf   :  { %v3658_v47 = vpop.f32.mrf.mxu0  ;;  %v3660_v48 = vpop.f32.mrf.mxu1 }
  0xd0   :  { %v443_v43 = vadd.f32 %v3658_v47, %v356_v37 }
  0xd1   :  { %v3662_v49 = vpop.f32.mrf.mxu0  ;;  %v3664_v50 = vpop.f32.mrf.mxu1 }
  0xd3   :  { %v3666_v51 = vpop.f32.mrf.mxu0  ;;  %v3668_v52 = vpop.f32.mrf.mxu1 }
  0xd5   :  { %v3670_v53 = vpop.f32.mrf.mxu0  ;;  %v3144_v54 = vpop.f32.mrf.mxu1 }
  0xd7   :  { %v3672_v55 = vpop.f32.mrf.mxu0  ;;  %v859_v56 = vpop.f32.mrf.mxu1 }
  0xd9   :  { %v3149_v57 = vpop.f32.mrf.mxu0  ;;  %v3154_v58 = vpop.f32.mrf.mxu1 }
  0xda   :  { %v940_v11 = vadd.f32 %v3149_v57, %v3144_v54 }
  0xdb   :  { %v934_v59 = vpop.f32.mrf.mxu0  ;;  %v1010_v60 = vpop.f32.mrf.mxu1 }
  0xdc   :  { %v935_v14 = vadd.f32 %v934_v59, %v859_v56  ;;  %v1020_v17 = vadd.f32 %v3154_v58, %v940_v11 }
  0xdd   :  { %v3159_v61 = vpop.f32.mrf.mxu0  ;;  %v3164_v62 = vpop.f32.mrf.mxu1 }
  0xde   :  { %v1019_v23 = vadd.f32 %v1010_v60, %v935_v14  ;;  %v1097_v29 = vadd.f32 %v3159_v61, %v1020_v17 }
  0xdf   :  { %v1087_v63 = vpop.f32.mrf.mxu0  ;;  %v1164_v0 = vpop.f32.mrf.mxu1 }
  0xe0   :  { %v1096_v34 = vadd.f32 %v1087_v63, %v1019_v23  ;;  %v1174_v54 = vadd.f32 %v3164_v62, %v1097_v29  ;;  %v531_v63 = vadd.f32 %v3656_v46, %v444_v41  ;;  %v530_v62 = vadd.f32 %v3660_v48, %v443_v43 }
  0xe1   :  { %v3169_v1 = vpop.f32.mrf.mxu0  ;;  %v3174_v2 = vpop.f32.mrf.mxu1 }
  0xe2   :  { %v1173_v57 = vadd.f32 %v1164_v0, %v1096_v34  ;;  %v1252_v61 = vadd.f32 %v3169_v1, %v1174_v54  ;;  %v617_v46 = vadd.f32 %v3666_v51, %v530_v62 }
  0xe3   :  { %v1242_v3 = vpop.f32.mrf.mxu0  ;;  %v1319_v4 = vpop.f32.mrf.mxu1 }
  0xe4   :  { %v1251_v11 = vadd.f32 %v1242_v3, %v1173_v57  ;;  %v1329_v45 = vadd.f32 %v3174_v2, %v1252_v61  ;;  %v704_v29 = vadd.f32 %v3668_v52, %v617_v46  ;;  %v2878_v52 = vpop.permute.xlu0 %2877 }
  0xe5   :  { %v3674_v5 = vpop.f32.mrf.mxu0  ;;  %v3676_v6 = vpop.f32.mrf.mxu1 }
  0xe6   :  { %v1328_v17 = vadd.f32 %v1319_v4, %v1251_v11  ;;  %v1406_v21 = vadd.f32 %v3674_v5, %v1329_v45  ;;  %v791_v54 = vadd.f32 %v3672_v55, %v704_v29 }
  0xe7   :  { %v3678_v7 = vpop.f32.mrf.mxu0  ;;  %v3680_v8 = vpop.f32.mrf.mxu1 }
  0xe8   :  { %v1484_v51 = vadd.f32 %v3676_v6, %v1406_v21 }
  0xe9   :  { %v3189_v9 = vpop.f32.mrf.mxu0  ;;  %v3194_v10 = vpop.f32.mrf.mxu1 }
  0xea   :  { %v1634_v18 = vadd.f32 %v3194_v10, %v3189_v9 }
  0xeb   :  { %v1553_v12 = vpop.f32.mrf.mxu0  ;;  %v1628_v13 = vpop.f32.mrf.mxu1 }
  0xec   :  { %v1629_v24 = vadd.f32 %v1628_v13, %v1553_v12 }
  0xed   :  { %v3199_v16 = vpop.f32.mrf.mxu0 }
  0xee   :  { %v3204_v19 = vpop.f32.mrf.mxu1  ;;  %v1713_v25 = vadd.f32 %v3199_v16, %v1634_v18  ;;  %v618_v16 = vadd.f32 %v3662_v49, %v531_v63  ;;  %v1405_v49 = vadd.f32 %v3678_v7, %v1328_v17  ;;  %v2883_v63 = vpop.permute.xlu0 %2882 }
  0xef   :  { %v1703_v22 = vpop.f32.mrf.mxu0 }
  0xf0   :  { %v1780_v26 = vpop.f32.mrf.mxu1  ;;  %v1712_v30 = vadd.f32 %v1703_v22, %v1629_v24  ;;  %v1790_v35 = vadd.f32 %v3204_v19, %v1713_v25  ;;  %v705_v24 = vadd.f32 %v3664_v50, %v618_v16  ;;  %v1483_v50 = vadd.f32 %v3680_v8, %v1405_v49 }
  0xf1   :  { %v3209_v28 = vpop.f32.mrf.mxu0 }
  0xf2   :  { %v3214_v31 = vpop.f32.mrf.mxu1  ;;  %v1789_v39 = vadd.f32 %v1780_v26, %v1712_v30  ;;  %v1867_v58 = vadd.f32 %v3209_v28, %v1790_v35  ;;  %v792_v34 = vadd.f32 %v3670_v53, %v705_v24 }
  0xf3   :  { %v1857_v33 = vpop.f32.mrf.mxu0 }
  0xf4   :  { %v1934_v36 = vpop.f32.mrf.mxu1  ;;  %v1866_v9 = vadd.f32 %v1857_v33, %v1789_v39  ;;  %v1944_v44 = vadd.f32 %v3214_v31, %v1867_v58 }
  0xf5   :  { %v3219_v38 = vpop.f32.mrf.mxu0 }
  0xf6   :  { %v3224_v40 = vpop.f32.mrf.mxu1  ;;  %v1943_v14 = vadd.f32 %v1934_v36, %v1866_v9  ;;  %v2022_v1 = vadd.f32 %v3219_v38, %v1944_v44 }
  0xf7   :  { %v2012_v56 = vpop.f32.mrf.mxu0 }
  0xf8   :  { %v2090_v59 = vpop.f32.mrf.mxu1  ;;  %v2021_v22 = vadd.f32 %v2012_v56, %v1943_v14  ;;  %v2100_v26 = vadd.f32 %v3224_v40, %v2022_v1  ;;  %v1486_v40 = vmax.f32 %v792_v34, %v1484_v51 }
  0xf9   :  { %v3229_v60 = vpop.f32.mrf.mxu0 }
  0xfa   :  { %v3234_v42 = vpop.f32.mrf.mxu1  ;;  %v2099_v31 = vadd.f32 %v2090_v59, %v2021_v22  ;;  %v2178_v36 = vadd.f32 %v3229_v60, %v2100_v26  ;;  %v1485_v59 = vmax.f32 %v791_v54, %v1483_v50 }
  0xfb   :  { %v2168_v10 = vpop.f32.mrf.mxu0 }
  0xfc   :  { %v2247_v12 = vpop.f32.mrf.mxu1  ;;  %v2177_v41 = vadd.f32 %v2168_v10, %v2099_v31  ;;  %v2180_v43 = vmax.f32 %v1486_v40, %v2178_v36 }
  0xfd   :  { %v3239_v13 = vpop.f32.mrf.mxu0 }
  0xfe   :  { %v2328_v0 = vadd.f32 %v3239_v13, %v3234_v42  ;;  %v3244_v15 = vpop.f32.mrf.mxu1  ;;  %v2179_v8 = vmax.f32 %v1485_v59, %v2177_v41 }
  0xff   :  { %v2322_v47 = vpop.f32.mrf.mxu0 }
 0x100   :  { %v2407_v18 = vadd.f32 %v3244_v15, %v2328_v0  ;;  %v2323_v19 = vadd.f32 %v2322_v47, %v2247_v12  ;;  %v2397_v20 = vpop.f32.mrf.mxu1 }
 0x101   :  { %v3249_v3 = vpop.f32.mrf.mxu0 }
 0x102   :  { %v2406_v48 = vadd.f32 %v2397_v20, %v2323_v19  ;;  %v2484_v23 = vadd.f32 %v3249_v3, %v2407_v18  ;;  %v3254_v2 = vpop.f32.mrf.mxu1 }
 0x103   :  { %v2474_v25 = vpop.f32.mrf.mxu0 }
 0x104   :  { %v2561_v4 = vadd.f32 %v3254_v2, %v2484_v23  ;;  %v2483_v27 = vadd.f32 %v2474_v25, %v2406_v48  ;;  %v2551_v28 = vpop.f32.mrf.mxu1 }
 0x105   :  { %v3259_v30 = vpop.f32.mrf.mxu0 }
 0x106   :  { %v2560_v5 = vadd.f32 %v2551_v28, %v2483_v27  ;;  %v2638_v32 = vadd.f32 %v3259_v30, %v2561_v4  ;;  %v3264_v33 = vpop.f32.mrf.mxu1 }
 0x107   :  { %v2628_v35 = vpop.f32.mrf.mxu0 }
 0x108   :  { %v2715_v7 = vadd.f32 %v3264_v33, %v2638_v32  ;;  %v2637_v37 = vadd.f32 %v2628_v35, %v2560_v5  ;;  %v2705_v38 = vpop.f32.mrf.mxu1 }
 0x109   :  { %v3269_v39 = vpop.f32.mrf.mxu0 }
 0x10a   :  { %v2714_v6 = vadd.f32 %v2705_v38, %v2637_v37  ;;  %v2792_v56 = vadd.f32 %v3269_v39, %v2715_v7  ;;  %v3274_v57 = vpop.f32.mrf.mxu1 }
 0x10b   :  { %v2782_v58 = vpop.f32.mrf.mxu0 }
 0x10c   :  { %v2870_v53 = vadd.f32 %v3274_v57, %v2792_v56  ;;  %v2791_v61 = vadd.f32 %v2782_v58, %v2714_v6  ;;  %v2860_v9 = vpop.f32.mrf.mxu1 }
 0x10e   :  { %v2869_v60 = vadd.f32 %v2860_v9, %v2791_v61  ;;  %v2872_v42 = vmax.f32 %v2180_v43, %v2870_v53 }
 0x110   :  { %v2871_v11 = vmax.f32 %v2179_v8, %v2869_v60  ;;  %v2886_v44 = vadd.f32 %v2883_v63, %v2872_v42 }
 0x112   :  { %v2885_v55 = vadd.f32 %v2878_v52, %v2871_v11  ;;  %vm2888_vm1 = vcmp.ge.f32.partialorder %v2886_v44, 0.0  ;;  %v2890_v12 = vmul.f32 0.01, %v2886_v44 }
 0x114   :  { %vm2887_vm2 = vcmp.ge.f32.partialorder %v2885_v55, 0.0  ;;  %v2889_v10 = vmul.f32 0.01, %v2885_v55  ;;  %v2892_v62 = vsel %vm2888_vm1, %v2886_v44, %v2890_v12 }
 0x115   :  { %2894 = vst [vmem:[%s3704_s3 + $0x8] sm:$0xff] %v2892_v62 }
 0x116   :  { %v2891_v13 = vsel %vm2887_vm2, %v2885_v55, %v2889_v10 }
 0x117   :  { %2893 = vst [vmem:[%s3704_s3] sm:$0xff] %v2891_v13 }

// kernel: laia_crnn_forward.5
= control target key start
LH: loop header
LB: loop body
LE: loop exit
PB: predicated region body
PF: predicated region fallthrough
CT: control target
= control target key end

     0   :  { %v2579_v3 = vmov 0.0   ;;  %vm2580_vm0 = vmmov 0   ;;  %vm65_vm1 = vcmask 523264   ;;  %v55_v33 = vlaneseq  ;;  %s3246_s1 = inlined_call_operand.vmem [shape: f32[64,256], index: 1, kind: input, shape index: {}]   ;;  %s3247_s3 = inlined_call_operand.vmem [shape: f32[32,128], index: 3, kind: input, shape index: {}]   ;;  %s3248_s4 = inlined_call_operand.vmem [shape: f32[32,128], index: 4, kind: input, shape index: {}]   ;;  %s3249_s0 = inlined_call_operand.vmem [shape: f32[64,64], index: 0, kind: input, shape index: {}]   ;;  %s3250_s2 = inlined_call_operand.vmem [shape: f32[1,256], index: 2, kind: input, shape index: {}]   ;;  %s3251_s5 = inlined_call_operand.vmem [shape: f32[32,128], index: 5, kind: input, shape index: {}]   ;;  %s3252_s6 = inlined_call_operand.vmem [shape: f32[32,128], index: 6, kind: input, shape index: {}]   ;;  %s3253_s7 = inlined_call_operand.vmem [shape: f32[1,128], index: 7, kind: input, shape index: {}]   ;;  %s3254_s8 = inlined_call_operand.vmem [shape: f32[64,128], index: 8, kind: output, shape index: {}]  }
   0x1   :  { %v52_v0 = vld [vmem:[%s3246_s1 + $0x78] sm:$0xff]  ;;  %v51_v1 = vld [vmem:[%s3246_s1 + $0x70] sm:$0xff]  ;;  %v50_v2 = vld [vmem:[%s3246_s1 + $0x68] sm:$0xff]  ;;  %2284 = vmatprep.subr.mxu1 %v2579_v3  ;;  %154 = vmatprep.mubr.f32.mxu0 %v2579_v3  ;;  %vm233_vm5 = vcmask 261120  }
   0x2   :  { %106 = vmatprep.subr.mxu0 %v52_v0  ;;  %v49_v4 = vld [vmem:[%s3246_s1 + $0x60] sm:$0xff]  ;;  %2292 = vmatprep.mubr.msk.f32.mxu1 %vm2580_vm0, %v2579_v3  ;;  %v48_v5 = vld [vmem:[%s3246_s1 + $0x58] sm:$0xff]  ;;  %v47_v6 = vld [vmem:[%s3246_s1 + $0x50] sm:$0xff]  ;;  %v56_v34 = vshrl.u32 %v55_v33, 7  ;;  %v220_v58 = vand.u32 127, %v55_v33 }
   0x3   :  { %107 = vmatpush1.msra.mxu0 %v51_v1  ;;  %v46_v7 = vld [vmem:[%s3246_s1 + $0x48] sm:$0xff]  ;;  %v2656_v8 = vld [vmem:[%s3247_s3 + $0x18] sm:$0xff]  ;;  %v45_v9 = vld [vmem:[%s3246_s1 + $0x40] sm:$0xff] }
   0x4   :  { %108 = vmatprep.subr.mxu0 %v50_v2  ;;  %2285 = vmatpush3.msra.mxu1 %v2656_v8  ;;  %v2665_v10 = vld [vmem:[%s3247_s3 + $0x10] sm:$0xff]  ;;  %v44_v11 = vld [vmem:[%s3246_s1 + $0x38] sm:$0xff]  ;;  %v2674_v12 = vld [vmem:[%s3247_s3 + $0x8] sm:$0xff]  ;;  %v57_v35 = vsub.s32 0, %v56_v34  ;;  %v61_v37 = vsub.s32 1, %v56_v34  ;;  %vm221_vm2 = vcmp.ge.s32.totalorder %v220_v58, 64 }
   0x5   :  { %109 = vmatpush1.msra.mxu0 %v49_v4  ;;  %2286 = vmatprep.subr.mxu1 %v2579_v3  ;;  %v43_v13 = vld [vmem:[%s3246_s1 + $0x30] sm:$0xff]  ;;  %v42_v14 = vld [vmem:[%s3246_s1 + $0x28] sm:$0xff]  ;;  %v2687_v15 = vld [vmem:[%s3247_s3] sm:$0xff]  ;;  %vm222_vm3 = vcmp.lt.s32.totalorder %v220_v58, 96 }
   0x6   :  { %110 = vmatprep.subr.mxu0 %v48_v5  ;;  %2287 = vmatpush3.msra.mxu1 %v2665_v10  ;;  %v41_v16 = vld [vmem:[%s3246_s1 + $0x20] sm:$0xff]  ;;  %v40_v17 = vld [vmem:[%s3246_s1 + $0x18] sm:$0xff]  ;;  %v39_v18 = vld [vmem:[%s3246_s1 + $0x10] sm:$0xff] }
   0x7   :  { %111 = vmatpush1.msra.mxu0 %v47_v6  ;;  %2288 = vmatprep.subr.mxu1 %v2579_v3  ;;  %v2704_v19 = vld [vmem:[%s3248_s4 + $0x18] sm:$0xff]  ;;  %v38_v20 = vld [vmem:[%s3246_s1 + $0x8] sm:$0xff]  ;;  %v37_v21 = vld [vmem:[%s3246_s1] sm:$0xff] }
   0x8   :  { %112 = vmatprep.subr.mxu0 %v46_v7  ;;  %2289 = vmatpush3.msra.mxu1 %v2674_v12  ;;  %v2717_v22 = vld [vmem:[%s3248_s4 + $0x10] sm:$0xff]  ;;  %v29_v23 = vld [vmem:[%s3249_s0] sm:$0xff]  ;;  %v2727_v24 = vld [vmem:[%s3248_s4 + $0x8] sm:$0xff] }
   0x9   :  { %113 = vmatpush1.msra.mxu0 %v45_v9  ;;  %2290 = vmatprep.subr.mxu1 %v2579_v3  ;;  %v2735_v25 = vld [vmem:[%s3248_s4] sm:$0xff]  ;;  %v30_v26 = vld [vmem:[%s3249_s0 + $0x8] sm:$0xff]  ;;  %v31_v27 = vld [vmem:[%s3249_s0 + $0x10] sm:$0xff] }
   0xa   :  { %114 = vmatprep.subr.mxu0 %v44_v11  ;;  %2291 = vmatpush3.msra.mxu1 %v2687_v15  ;;  %v32_v28 = vld [vmem:[%s3249_s0 + $0x18] sm:$0xff]  ;;  %v33_v29 = vld [vmem:[%s3249_s0 + $0x20] sm:$0xff]  ;;  %v34_v30 = vld [vmem:[%s3249_s0 + $0x28] sm:$0xff] }
   0xb   :  { %115 = vmatpush1.msra.mxu0 %v43_v13  ;;  %2293 = vmatmul.mubr.f32.vlgmr.msra.gmra.mxu1 %v2579_v3  ;;  %v35_v31 = vld [vmem:[%s3249_s0 + $0x30] sm:$0xff]  ;;  %v36_v32 = vld [vmem:[%s3249_s0 + $0x38] sm:$0xff]  ;;  %v53_v36 = vld [vmem:[%s3250_s2] sm:$0x3]  ;;  %s2581_s0 = smov 64   ;;  %s2582_s2 = smov 32  }
   0xc   :  { %116 = vmatprep.subr.mxu0 %v42_v14  ;;  %2295 = vmatprep.subr.mxu1 %v2579_v3  ;;  %v58_v39 = vrot.slane %v53_v36, %v57_v35  ;;  %v62_v41 = vrot.slane %v53_v36, %v61_v37  ;;  %vm2821_vm4 = vmand %vm221_vm2, %vm222_vm3 }
   0xd   :  { %117 = vmatpush1.msra.mxu0 %v41_v16  ;;  %2296 = vmatpush3.msra.mxu1 %v2704_v19 }
   0xe   :  { %118 = vmatprep.subr.mxu0 %v40_v17  ;;  %2297 = vmatprep.subr.mxu1 %v2579_v3 }
   0xf   :  { %119 = vmatpush1.msra.mxu0 %v39_v18  ;;  %2298 = vmatpush3.msra.mxu1 %v2717_v22 }
  0x10   :  { %120 = vmatprep.subr.mxu0 %v38_v20  ;;  %2299 = vmatprep.subr.mxu1 %v2579_v3 }
  0x11   :  { %121 = vmatpush1.msra.mxu0 %v37_v21  ;;  %2300 = vmatpush3.msra.mxu1 %v2727_v24 }
  0x12   :  { %2141 = vmatmul.mubr.msk.f32.vlgmr.msra.gmra.mxu0 %vm65_vm1, %v29_v23  ;;  %2301 = vmatprep.subr.mxu1 %v2579_v3 }
  0x13   :  { %160 = vmatprep.mubr.f32.mxu0 %v2579_v3  ;;  %2303 = vmatprep.mubr.msk.f32.mxu1 %vm2580_vm0, %v2579_v3 }
  0x14   :  { %2302 = vmatpush3.msra.mxu1 %v2735_v25  ;;  %2339 = vmatprep.subr.mxu0 %v2579_v3 }
  0x15   :  { %2304 = vmatmul.mubr.f32.vlgmr.msra.gmra.mxu1 %v2579_v3  ;;  %2306 = vmatprep.subr.mxu1 %v2579_v3 }
  0x16   :  { %2142 = vmatmul.mubr.msk.f32.gmra.mxu0 %vm65_vm1, %v30_v26  ;;  %2307 = vmatpush3.msra.mxu1 %v2656_v8 }
  0x17   :  { %166 = vmatprep.mubr.f32.mxu0 %v2579_v3  ;;  %2314 = vmatprep.mubr.msk.f32.mxu1 %vm2580_vm0, %v2579_v3 }
  0x18   :  { %2308 = vmatprep.subr.mxu1 %v2579_v3  ;;  %2340 = vmatpush3.msra.mxu0 %v2704_v19 }
  0x19   :  { %2309 = vmatpush3.msra.mxu1 %v2665_v10  ;;  %2341 = vmatprep.subr.mxu0 %v2579_v3 }
  0x1a   :  { %2143 = vmatmul.mubr.msk.f32.gmra.mxu0 %vm65_vm1, %v31_v27  ;;  %2310 = vmatprep.subr.mxu1 %v2579_v3 }
  0x1b   :  { %172 = vmatprep.mubr.f32.mxu0 %v2579_v3  ;;  %2311 = vmatpush3.msra.mxu1 %v2674_v12 }
  0x1c   :  { %2312 = vmatprep.subr.mxu1 %v2579_v3  ;;  %2342 = vmatpush3.msra.mxu0 %v2717_v22 }
  0x1d   :  { %2313 = vmatpush3.msra.mxu1 %v2687_v15  ;;  %2343 = vmatprep.subr.mxu0 %v2579_v3 }
  0x1e   :  { %2144 = vmatmul.mubr.msk.f32.gmra.mxu0 %vm65_vm1, %v32_v28  ;;  %2317 = vmatprep.subr.mxu1 %v2579_v3 }
  0x1f   :  { %178 = vmatprep.mubr.f32.mxu0 %v2579_v3  ;;  %2344 = vmatpush3.msra.mxu0 %v2727_v24 }
  0x20   :  { %2345 = vmatprep.subr.mxu0 %v2579_v3 }
  0x21   :  { %2346 = vmatpush3.msra.mxu0 %v2735_v25 }
  0x22   :  { %2145 = vmatmul.mubr.msk.f32.gmra.mxu0 %vm65_vm1, %v33_v29  ;;  %2361 = vmatprep.subr.mxu0 %v2579_v3 }
  0x23   :  { %184 = vmatprep.mubr.f32.mxu0 %v2579_v3 }
  0x26   :  { %2146 = vmatmul.mubr.msk.f32.gmra.mxu0 %vm65_vm1, %v34_v30 }
  0x27   :  { %190 = vmatprep.mubr.f32.mxu0 %v2579_v3 }
  0x2a   :  { %2147 = vmatmul.mubr.msk.f32.gmra.mxu0 %vm65_vm1, %v35_v31 }
  0x2b   :  { %196 = vmatprep.mubr.f32.mxu0 %v2579_v3 }
  0x2e   :  { %2148 = vmatmul.mubr.msk.f32.gmra.mxu0 %vm65_vm1, %v36_v32 }
  0x2f   :  { %2347 = vmatprep.mubr.msk.f32.mxu0 %vm2580_vm0, %v2579_v3 }
  0xcb   :  { %v303_v38 = vpop.f32.mrf.mxu1 }
  0xcd   :  { %v2294_v40 = vpop.f32.mrf.mxu1 }
  0xd2   :  { %v156_v42 = vpop.f32.mrf.mxu0 }
  0xd3   :  { %v157_v43 = vadd.f32 %v156_v42, %v58_v39 }
  0xd4   :  { %v158_v44 = vpop.f32.mrf.mxu0 }
  0xd5   :  { %v2803_v45 = vadd.f32 %v158_v44, %v62_v41  ;;  %v307_v46 = vadd.f32 %v303_v38, %v157_v43  ;;  %v375_v48 = vpop.f32.mrf.mxu1 }
  0xd6   :  { %v162_v47 = vpop.f32.mrf.mxu0 }
  0xd7   :  { %2512 = vtanh.f32 %v307_v46  ;;  %v2805_v49 = vadd.f32 %v162_v47, %v58_v39  ;;  %v2305_v51 = vpop.f32.mrf.mxu1 }
  0xd8   :  { %v164_v50 = vpop.f32.mrf.mxu0 }
  0xd9   :  { %v2807_v52 = vadd.f32 %v164_v50, %v62_v41 }
  0xda   :  { %v168_v53 = vpop.f32.mrf.mxu0 }
  0xdb   :  { %v2809_v54 = vadd.f32 %v168_v53, %v58_v39 }
  0xdc   :  { %v170_v55 = vpop.f32.mrf.mxu0 }
  0xdd   :  { %v2811_v56 = vadd.f32 %v170_v55, %v62_v41 }
  0xde   :  { %v174_v57 = vpop.f32.mrf.mxu0 }
  0xdf   :  { %v2813_v59 = vadd.f32 %v174_v57, %v58_v39 }
  0xe0   :  { %v176_v60 = vpop.f32.mrf.mxu0 }
  0xe1   :  { %v2815_v61 = vadd.f32 %v176_v60, %v62_v41 }
  0xe2   :  { %v180_v62 = vpop.f32.mrf.mxu0 }
  0xe3   :  { %v2817_v63 = vadd.f32 %v180_v62, %v58_v39 }
  0xe4   :  { %v2513_v0 = vpop.eup %2512  ;;  %v182_v1 = vpop.f32.mrf.mxu0 }
  0xe5   :  { %v2819_v2 = vadd.f32 %v182_v1, %v62_v41  ;;  %v381_v4 = vadd.f32 1.0, %v2513_v0 }
  0xe6   :  { %v186_v6 = vpop.f32.mrf.mxu0 }
  0xe7   :  { %v2825_v7 = vadd.f32 %v186_v6, %v58_v39  ;;  %v382_v9 = vmul.f32 0.5, %v381_v4 }
  0xe8   :  { %v188_v11 = vpop.f32.mrf.mxu0 }
  0xe9   :  { %v2827_v13 = vadd.f32 %v188_v11, %v62_v41  ;;  %v383_v14 = vsel %vm2821_vm4, %v2513_v0, %v382_v9 }
  0xea   :  { %v192_v16 = vpop.f32.mrf.mxu0  ;;  %386 = vrot.lane.b32.xlu0 %v383_v14, %s2581_s0  ;;  %v384_v37 = vmul.f32 0.0, %v383_v14 }
  0xeb   :  { %v2832_v17 = vadd.f32 %v192_v16, %v58_v39 }
  0xec   :  { %v194_v18 = vpop.f32.mrf.mxu0 }
  0xed   :  { %v2834_v20 = vadd.f32 %v194_v18, %v62_v41 }
  0xee   :  { %v198_v21 = vpop.f32.mrf.mxu0 }
  0xef   :  { %v2836_v23 = vadd.f32 %v198_v21, %v58_v39 }
  0xf0   :  { %v200_v26 = vpop.f32.mrf.mxu0 }
  0xf1   :  { %v201_v27 = vadd.f32 %v200_v26, %v62_v41 }
  0xf3   :  { %v379_v28 = vadd.f32 %v375_v48, %v201_v27 }
  0xf5   :  { %2514 = vtanh.f32 %v379_v28 }
 0x102   :  { %v2515_v29 = vpop.eup %2514 }
 0x103   :  { %v402_v30 = vadd.f32 1.0, %v2515_v29 }
 0x105   :  { %v403_v31 = vmul.f32 0.5, %v402_v30 }
 0x107   :  { %v404_v32 = vsel %vm2821_vm4, %v2515_v29, %v403_v31 }
 0x108   :  { %407 = vrot.lane.b32.xlu0 %v404_v32, %s2581_s0  ;;  %v405_v41 = vmul.f32 0.0, %v404_v32 }
 0x15c   :  { %v387_v33 = vpop.permute.xlu0 %386 }
 0x15d   :  { %v389_v34 = vmul.f32 %v387_v33, %v383_v14 }
 0x15f   :  { %391 = vrot.lane.b32.xlu1 %v389_v34, %s2582_s2 }
 0x17a   :  { %v408_v35 = vpop.permute.xlu0 %407 }
 0x17b   :  { %v410_v36 = vmul.f32 %v408_v35, %v404_v32 }
 0x17d   :  { %412 = vrot.lane.b32.xlu1 %v410_v36, %s2582_s2 }
 0x1d1   :  { %v392_v38 = vpop.permute.xlu1 %391 }
 0x1d2   :  { %v2843_v39 = vadd.f32 %v392_v38, %v384_v37 }
 0x1d4   :  { %2516 = vtanh.f32 %v2843_v39 }
 0x1e1   :  { %v2517_v40 = vpop.eup %2516 }
 0x1e2   :  { %397 = vrot.lane.b32.xlu0 %v2517_v40, %s2581_s0 }
 0x1ef   :  { %v413_v42 = vpop.permute.xlu1 %412 }
 0x1f0   :  { %v2847_v43 = vadd.f32 %v413_v42, %v405_v41 }
 0x1f2   :  { %2518 = vtanh.f32 %v2847_v43 }
 0x1ff   :  { %v2519_v44 = vpop.eup %2518 }
 0x200   :  { %418 = vrot.lane.b32.xlu1 %v2519_v44, %s2581_s0 }
 0x254   :  { %v398_v46 = vpop.permute.xlu0 %397 }
 0x255   :  { %v400_v47 = vmul.f32 %v398_v46, %v383_v14 }
 0x257   :  { %423 = vrot.lane.b32.xlu0 %v400_v47, %s2582_s2 }
 0x272   :  { %v419_v48 = vpop.permute.xlu1 %418 }
 0x273   :  { %v421_v50 = vmul.f32 %v419_v48, %v404_v32 }
 0x275   :  { %428 = vrot.lane.b32.xlu1 %v421_v50, %s2582_s2 }
 0x2c9   :  { %v424_v51 = vpop.permute.xlu0 %423 }
 0x2ca   :  { %426 = vst.msk [vmem:[#allocation3] sm:$0xff] %vm233_vm5, %v424_v51  ;;  %2315 = vmatmul.mubr.msk.f32.vlgmr.msra.gmra.mxu1 %vm233_vm5, %v424_v51 }
 0x2cb   :  { %2318 = vmatpush3.msra.mxu1 %v2704_v19  ;;  %2325 = vmatprep.mubr.msk.f32.mxu1 %vm2580_vm0, %v2579_v3 }
 0x2cc   :  { %2319 = vmatprep.subr.mxu1 %v2579_v3 }
 0x2cd   :  { %2320 = vmatpush3.msra.mxu1 %v2717_v22 }
 0x2ce   :  { %2321 = vmatprep.subr.mxu1 %v2579_v3 }
 0x2cf   :  { %2322 = vmatpush3.msra.mxu1 %v2727_v24 }
 0x2d0   :  { %2323 = vmatprep.subr.mxu1 %v2579_v3 }
 0x2d1   :  { %2324 = vmatpush3.msra.mxu1 %v2735_v25 }
 0x2d2   :  { %2328 = vmatprep.subr.mxu1 %v2579_v3 }
 0x2e7   :  { %v429_v53 = vpop.permute.xlu1 %428 }
 0x2e8   :  { %431 = vst.msk [vmem:[#allocation4 + $0x38] sm:$0xff] %vm233_vm5, %v429_v53  ;;  %2326 = vmatmul.mubr.msk.f32.vlgmr.msra.gmra.mxu1 %vm233_vm5, %v429_v53 }
 0x2e9   :  { %2329 = vmatpush3.msra.mxu1 %v2656_v8  ;;  %2336 = vmatprep.mubr.msk.f32.mxu1 %vm2580_vm0, %v2579_v3 }
 0x2ea   :  { %2330 = vmatprep.subr.mxu1 %v2579_v3 }
 0x2eb   :  { %2331 = vmatpush3.msra.mxu1 %v2665_v10 }
 0x2ec   :  { %2332 = vmatprep.subr.mxu1 %v2579_v3 }
 0x2ed   :  { %2333 = vmatpush3.msra.mxu1 %v2674_v12 }
 0x2ee   :  { %2334 = vmatprep.subr.mxu1 %v2579_v3 }
 0x2ef   :  { %2335 = vmatpush3.msra.mxu1 %v2687_v15 }
 0x2f0   :  { %2350 = vmatprep.subr.mxu1 %v2579_v3 }
 0x38a   :  { %v501_v55 = vpop.f32.mrf.mxu1 }
 0x38b   :  { %v505_v57 = vadd.f32 %v501_v55, %v2805_v49 }
 0x38c   :  { %v2316_v58 = vpop.f32.mrf.mxu1 }
 0x38d   :  { %2520 = vtanh.f32 %v505_v57 }
 0x39a   :  { %v2521_v60 = vpop.eup %2520 }
 0x39b   :  { %v581_v62 = vadd.f32 1.0, %v2521_v60 }
 0x39d   :  { %v582_v0 = vmul.f32 0.5, %v581_v62 }
 0x39f   :  { %v583_v1 = vsel %vm2821_vm4, %v2521_v60, %v582_v0 }
 0x3a0   :  { %586 = vrot.lane.b32.xlu1 %v583_v1, %s2581_s0 }
 0x3a8   :  { %v575_v4 = vpop.f32.mrf.mxu1 }
 0x3a9   :  { %v579_v6 = vadd.f32 %v575_v4, %v2834_v20  ;;  %v584_v20 = vmul.f32 %v583_v1, %v2843_v39 }
 0x3aa   :  { %v2327_v9 = vpop.f32.mrf.mxu1 }
 0x3ab   :  { %2522 = vtanh.f32 %v579_v6 }
 0x3b8   :  { %v2523_v11 = vpop.eup %2522 }
 0x3b9   :  { %v602_v14 = vadd.f32 1.0, %v2523_v11 }
 0x3bb   :  { %v603_v16 = vmul.f32 0.5, %v602_v14 }
 0x3bd   :  { %v604_v49 = vsel %vm2821_vm4, %v2523_v11, %v603_v16 }
 0x3be   :  { %607 = vrot.lane.b32.xlu0 %v604_v49, %s2581_s0  ;;  %v605_v31 = vmul.f32 %v604_v49, %v2847_v43 }
 0x412   :  { %v587_v18 = vpop.permute.xlu1 %586 }
 0x413   :  { %v589_v21 = vmul.f32 %v587_v18, %v583_v1 }
 0x415   :  { %591 = vrot.lane.b32.xlu1 %v589_v21, %s2582_s2 }
 0x430   :  { %v608_v26 = vpop.permute.xlu0 %607 }
 0x431   :  { %v610_v27 = vmul.f32 %v608_v26, %v604_v49 }
 0x433   :  { %612 = vrot.lane.b32.xlu0 %v610_v27, %s2582_s2 }
 0x487   :  { %v592_v28 = vpop.permute.xlu1 %591 }
 0x488   :  { %v2888_v29 = vadd.f32 %v592_v28, %v584_v20 }
 0x48a   :  { %2524 = vtanh.f32 %v2888_v29 }
 0x497   :  { %v2525_v30 = vpop.eup %2524 }
 0x498   :  { %597 = vrot.lane.b32.xlu1 %v2525_v30, %s2581_s0 }
 0x4a5   :  { %v613_v32 = vpop.permute.xlu0 %612 }
 0x4a6   :  { %v2893_v33 = vadd.f32 %v613_v32, %v605_v31 }
 0x4a8   :  { %2526 = vtanh.f32 %v2893_v33 }
 0x4b5   :  { %v2527_v34 = vpop.eup %2526 }
 0x4b6   :  { %618 = vrot.lane.b32.xlu0 %v2527_v34, %s2581_s0 }
 0x50a   :  { %v598_v35 = vpop.permute.xlu1 %597 }
 0x50b   :  { %v600_v36 = vmul.f32 %v598_v35, %v583_v1 }
 0x50d   :  { %623 = vrot.lane.b32.xlu1 %v600_v36, %s2582_s2 }
 0x528   :  { %v619_v37 = vpop.permute.xlu0 %618 }
 0x529   :  { %v621_v38 = vmul.f32 %v619_v37, %v604_v49 }
 0x52b   :  { %628 = vrot.lane.b32.xlu0 %v621_v38, %s2582_s2 }
 0x57f   :  { %v624_v39 = vpop.permute.xlu1 %623 }
 0x580   :  { %626 = vst.msk [vmem:[#allocation3 + $0x8] sm:$0xff] %vm233_vm5, %v624_v39  ;;  %2337 = vmatmul.mubr.msk.f32.vlgmr.msra.gmra.mxu1 %vm233_vm5, %v624_v39 }
 0x581   :  { %2351 = vmatpush3.msra.mxu1 %v2656_v8  ;;  %2358 = vmatprep.mubr.msk.f32.mxu1 %vm2580_vm0, %v2579_v3 }
 0x582   :  { %2352 = vmatprep.subr.mxu1 %v2579_v3 }
 0x583   :  { %2353 = vmatpush3.msra.mxu1 %v2665_v10 }
 0x584   :  { %2354 = vmatprep.subr.mxu1 %v2579_v3 }
 0x585   :  { %2355 = vmatpush3.msra.mxu1 %v2674_v12 }
 0x586   :  { %2356 = vmatprep.subr.mxu1 %v2579_v3 }
 0x587   :  { %2357 = vmatpush3.msra.mxu1 %v2687_v15 }
 0x588   :  { %2372 = vmatprep.subr.mxu1 %v2579_v3 }
 0x59d   :  { %v629_v40 = vpop.permute.xlu0 %628 }
 0x59e   :  { %631 = vst.msk [vmem:[#allocation4 + $0x30] sm:$0xff] %vm233_vm5, %v629_v40  ;;  %2348 = vmatmul.mubr.msk.f32.vlgmr.msra.gmra.mxu0 %vm233_vm5, %v629_v40 }
 0x59f   :  { %2362 = vmatpush3.msra.mxu0 %v2704_v19  ;;  %2369 = vmatprep.mubr.msk.f32.mxu0 %vm2580_vm0, %v2579_v3 }
 0x5a0   :  { %2363 = vmatprep.subr.mxu0 %v2579_v3 }
 0x5a1   :  { %2364 = vmatpush3.msra.mxu0 %v2717_v22 }
 0x5a2   :  { %2365 = vmatprep.subr.mxu0 %v2579_v3 }
 0x5a3   :  { %2366 = vmatpush3.msra.mxu0 %v2727_v24 }
 0x5a4   :  { %2367 = vmatprep.subr.mxu0 %v2579_v3 }
 0x5a5   :  { %2368 = vmatpush3.msra.mxu0 %v2735_v25 }
 0x5a6   :  { %2383 = vmatprep.subr.mxu0 %v2579_v3 }
 0x640   :  { %v701_v41 = vpop.f32.mrf.mxu1 }
 0x641   :  { %v705_v42 = vadd.f32 %v701_v41, %v2809_v54 }
 0x642   :  { %v2338_v43 = vpop.f32.mrf.mxu1 }
 0x643   :  { %2528 = vtanh.f32 %v705_v42 }
 0x650   :  { %v2529_v44 = vpop.eup %2528 }
 0x651   :  { %v781_v46 = vadd.f32 1.0, %v2529_v44 }
 0x653   :  { %v782_v47 = vmul.f32 0.5, %v781_v46 }
 0x655   :  { %v783_v48 = vsel %vm2821_vm4, %v2529_v44, %v782_v47 }
 0x656   :  { %786 = vrot.lane.b32.xlu1 %v783_v48, %s2581_s0 }
 0x65e   :  { %v775_v50 = vpop.f32.mrf.mxu0 }
 0x65f   :  { %v779_v51 = vadd.f32 %v775_v50, %v2827_v13  ;;  %v784_v13 = vmul.f32 %v783_v48, %v2888_v29 }
 0x660   :  { %v2349_v53 = vpop.f32.mrf.mxu0 }
 0x661   :  { %2530 = vtanh.f32 %v779_v51 }
 0x66e   :  { %v2531_v55 = vpop.eup %2530 }
 0x66f   :  { %v802_v57 = vadd.f32 1.0, %v2531_v55 }
 0x671   :  { %v803_v58 = vmul.f32 0.5, %v802_v57 }
 0x673   :  { %v804_v54 = vsel %vm2821_vm4, %v2531_v55, %v803_v58 }
 0x674   :  { %807 = vrot.lane.b32.xlu0 %v804_v54, %s2581_s0  ;;  %v805_v11 = vmul.f32 %v804_v54, %v2893_v33 }
 0x6c8   :  { %v787_v60 = vpop.permute.xlu1 %786 }
 0x6c9   :  { %v789_v62 = vmul.f32 %v787_v60, %v783_v48 }
 0x6cb   :  { %791 = vrot.lane.b32.xlu1 %v789_v62, %s2582_s2 }
 0x6e6   :  { %v808_v0 = vpop.permute.xlu0 %807 }
 0x6e7   :  { %v810_v1 = vmul.f32 %v808_v0, %v804_v54 }
 0x6e9   :  { %812 = vrot.lane.b32.xlu0 %v810_v1, %s2582_s2 }
 0x73d   :  { %v792_v4 = vpop.permute.xlu1 %791 }
 0x73e   :  { %v2934_v6 = vadd.f32 %v792_v4, %v784_v13 }
 0x740   :  { %2532 = vtanh.f32 %v2934_v6 }
 0x74d   :  { %v2533_v9 = vpop.eup %2532 }
 0x74e   :  { %797 = vrot.lane.b32.xlu1 %v2533_v9, %s2581_s0 }
 0x75b   :  { %v813_v14 = vpop.permute.xlu0 %812 }
 0x75c   :  { %v2939_v16 = vadd.f32 %v813_v14, %v805_v11 }
 0x75e   :  { %2534 = vtanh.f32 %v2939_v16 }
 0x76b   :  { %v2535_v49 = vpop.eup %2534 }
 0x76c   :  { %818 = vrot.lane.b32.xlu0 %v2535_v49, %s2581_s0 }
 0x7c0   :  { %v798_v18 = vpop.permute.xlu1 %797 }
 0x7c1   :  { %v800_v21 = vmul.f32 %v798_v18, %v783_v48 }
 0x7c3   :  { %823 = vrot.lane.b32.xlu1 %v800_v21, %s2582_s2 }
 0x7de   :  { %v819_v26 = vpop.permute.xlu0 %818 }
 0x7df   :  { %v821_v27 = vmul.f32 %v819_v26, %v804_v54 }
 0x7e1   :  { %828 = vrot.lane.b32.xlu0 %v821_v27, %s2582_s2 }
 0x835   :  { %v824_v20 = vpop.permute.xlu1 %823 }
 0x836   :  { %826 = vst.msk [vmem:[#allocation3 + $0x10] sm:$0xff] %vm233_vm5, %v824_v20  ;;  %2359 = vmatmul.mubr.msk.f32.vlgmr.msra.gmra.mxu1 %vm233_vm5, %v824_v20 }
 0x837   :  { %2373 = vmatpush3.msra.mxu1 %v2656_v8  ;;  %2380 = vmatprep.mubr.msk.f32.mxu1 %vm2580_vm0, %v2579_v3 }
 0x838   :  { %2374 = vmatprep.subr.mxu1 %v2579_v3 }
 0x839   :  { %2375 = vmatpush3.msra.mxu1 %v2665_v10 }
 0x83a   :  { %2376 = vmatprep.subr.mxu1 %v2579_v3 }
 0x83b   :  { %2377 = vmatpush3.msra.mxu1 %v2674_v12 }
 0x83c   :  { %2378 = vmatprep.subr.mxu1 %v2579_v3 }
 0x83d   :  { %2379 = vmatpush3.msra.mxu1 %v2687_v15 }
 0x83e   :  { %2394 = vmatprep.subr.mxu1 %v2579_v3 }
 0x853   :  { %v829_v28 = vpop.permute.xlu0 %828 }
 0x854   :  { %831 = vst.msk [vmem:[#allocation4 + $0x28] sm:$0xff] %vm233_vm5, %v829_v28  ;;  %2370 = vmatmul.mubr.msk.f32.vlgmr.msra.gmra.mxu0 %vm233_vm5, %v829_v28 }
 0x855   :  { %2384 = vmatpush3.msra.mxu0 %v2704_v19  ;;  %2391 = vmatprep.mubr.msk.f32.mxu0 %vm2580_vm0, %v2579_v3 }
 0x856   :  { %2385 = vmatprep.subr.mxu0 %v2579_v3 }
 0x857   :  { %2386 = vmatpush3.msra.mxu0 %v2717_v22 }
 0x858   :  { %2387 = vmatprep.subr.mxu0 %v2579_v3 }
 0x859   :  { %2388 = vmatpush3.msra.mxu0 %v2727_v24 }
 0x85a   :  { %2389 = vmatprep.subr.mxu0 %v2579_v3 }
 0x85b   :  { %2390 = vmatpush3.msra.mxu0 %v2735_v25 }
 0x85c   :  { %2405 = vmatprep.subr.mxu0 %v2579_v3 }
 0x8f6   :  { %v901_v29 = vpop.f32.mrf.mxu1 }
 0x8f7   :  { %v905_v30 = vadd.f32 %v901_v29, %v2813_v59 }
 0x8f8   :  { %v2360_v31 = vpop.f32.mrf.mxu1 }
 0x8f9   :  { %2536 = vtanh.f32 %v905_v30 }
 0x906   :  { %v2537_v32 = vpop.eup %2536 }
 0x907   :  { %v981_v33 = vadd.f32 1.0, %v2537_v32 }
 0x909   :  { %v982_v34 = vmul.f32 0.5, %v981_v33 }
 0x90b   :  { %v983_v35 = vsel %vm2821_vm4, %v2537_v32, %v982_v34 }
 0x90c   :  { %986 = vrot.lane.b32.xlu1 %v983_v35, %s2581_s0 }
 0x914   :  { %v975_v36 = vpop.f32.mrf.mxu0 }
 0x915   :  { %v979_v37 = vadd.f32 %v975_v36, %v2819_v2  ;;  %v984_v2 = vmul.f32 %v983_v35, %v2934_v6 }
 0x916   :  { %v2371_v38 = vpop.f32.mrf.mxu0 }
 0x917   :  { %2538 = vtanh.f32 %v979_v37 }
 0x924   :  { %v2539_v39 = vpop.eup %2538 }
 0x925   :  { %v1002_v40 = vadd.f32 1.0, %v2539_v39 }
 0x927   :  { %v1003_v41 = vmul.f32 0.5, %v1002_v40 }
 0x929   :  { %v1004_v59 = vsel %vm2821_vm4, %v2539_v39, %v1003_v41 }
 0x92a   :  { %1007 = vrot.lane.b32.xlu0 %v1004_v59, %s2581_s0  ;;  %v1005_v51 = vmul.f32 %v1004_v59, %v2939_v16 }
 0x97e   :  { %v987_v42 = vpop.permute.xlu1 %986 }
 0x97f   :  { %v989_v43 = vmul.f32 %v987_v42, %v983_v35 }
 0x981   :  { %991 = vrot.lane.b32.xlu1 %v989_v43, %s2582_s2 }
 0x99c   :  { %v1008_v44 = vpop.permute.xlu0 %1007 }
 0x99d   :  { %v1010_v46 = vmul.f32 %v1008_v44, %v1004_v59 }
 0x99f   :  { %1012 = vrot.lane.b32.xlu0 %v1010_v46, %s2582_s2 }
 0x9f3   :  { %v992_v47 = vpop.permute.xlu1 %991 }
 0x9f4   :  { %v2980_v48 = vadd.f32 %v992_v47, %v984_v2 }
 0x9f6   :  { %2540 = vtanh.f32 %v2980_v48 }
 0xa03   :  { %v2541_v50 = vpop.eup %2540 }
 0xa04   :  { %997 = vrot.lane.b32.xlu1 %v2541_v50, %s2581_s0 }
 0xa11   :  { %v1013_v53 = vpop.permute.xlu0 %1012 }
 0xa12   :  { %v2985_v55 = vadd.f32 %v1013_v53, %v1005_v51 }
 0xa14   :  { %2542 = vtanh.f32 %v2985_v55 }
 0xa21   :  { %v2543_v57 = vpop.eup %2542 }
 0xa22   :  { %1018 = vrot.lane.b32.xlu0 %v2543_v57, %s2581_s0 }
 0xa76   :  { %v998_v58 = vpop.permute.xlu1 %997 }
 0xa77   :  { %v1000_v54 = vmul.f32 %v998_v58, %v983_v35 }
 0xa79   :  { %1023 = vrot.lane.b32.xlu1 %v1000_v54, %s2582_s2 }
 0xa94   :  { %v1019_v60 = vpop.permute.xlu0 %1018 }
 0xa95   :  { %v1021_v62 = vmul.f32 %v1019_v60, %v1004_v59 }
 0xa97   :  { %1028 = vrot.lane.b32.xlu0 %v1021_v62, %s2582_s2 }
 0xaeb   :  { %v1024_v0 = vpop.permute.xlu1 %1023 }
 0xaec   :  { %1026 = vst.msk [vmem:[#allocation3 + $0x18] sm:$0xff] %vm233_vm5, %v1024_v0  ;;  %2381 = vmatmul.mubr.msk.f32.vlgmr.msra.gmra.mxu1 %vm233_vm5, %v1024_v0 }
 0xaed   :  { %2395 = vmatpush3.msra.mxu1 %v2656_v8  ;;  %2402 = vmatprep.mubr.msk.f32.mxu1 %vm2580_vm0, %v2579_v3 }
 0xaee   :  { %2396 = vmatprep.subr.mxu1 %v2579_v3 }
 0xaef   :  { %2397 = vmatpush3.msra.mxu1 %v2665_v10 }
 0xaf0   :  { %2398 = vmatprep.subr.mxu1 %v2579_v3 }
 0xaf1   :  { %2399 = vmatpush3.msra.mxu1 %v2674_v12 }
 0xaf2   :  { %2400 = vmatprep.subr.mxu1 %v2579_v3 }
 0xaf3   :  { %2401 = vmatpush3.msra.mxu1 %v2687_v15 }
 0xaf4   :  { %2416 = vmatprep.subr.mxu1 %v2579_v3 }
 0xb09   :  { %v1029_v1 = vpop.permute.xlu0 %1028 }
 0xb0a   :  { %1031 = vst.msk [vmem:[#allocation4 + $0x20] sm:$0xff] %vm233_vm5, %v1029_v1  ;;  %2392 = vmatmul.mubr.msk.f32.vlgmr.msra.gmra.mxu0 %vm233_vm5, %v1029_v1 }
 0xb0b   :  { %2406 = vmatpush3.msra.mxu0 %v2704_v19  ;;  %2413 = vmatprep.mubr.msk.f32.mxu0 %vm2580_vm0, %v2579_v3 }
 0xb0c   :  { %2407 = vmatprep.subr.mxu0 %v2579_v3 }
 0xb0d   :  { %2408 = vmatpush3.msra.mxu0 %v2717_v22 }
 0xb0e   :  { %2409 = vmatprep.subr.mxu0 %v2579_v3 }
 0xb0f   :  { %2410 = vmatpush3.msra.mxu0 %v2727_v24 }
 0xb10   :  { %2411 = vmatprep.subr.mxu0 %v2579_v3 }
 0xb11   :  { %2412 = vmatpush3.msra.mxu0 %v2735_v25 }
 0xb12   :  { %2427 = vmatprep.subr.mxu0 %v2579_v3 }
 0xbac   :  { %v1101_v13 = vpop.f32.mrf.mxu1 }
 0xbad   :  { %v1105_v4 = vadd.f32 %v1101_v13, %v2817_v63 }
 0xbae   :  { %v2382_v6 = vpop.f32.mrf.mxu1 }
 0xbaf   :  { %2544 = vtanh.f32 %v1105_v4 }
 0xbbc   :  { %v2545_v9 = vpop.eup %2544 }
 0xbbd   :  { %v1181_v11 = vadd.f32 1.0, %v2545_v9 }
 0xbbf   :  { %v1182_v14 = vmul.f32 0.5, %v1181_v11 }
 0xbc1   :  { %v1183_v16 = vsel %vm2821_vm4, %v2545_v9, %v1182_v14 }
 0xbc2   :  { %1186 = vrot.lane.b32.xlu1 %v1183_v16, %s2581_s0 }
 0xbca   :  { %v1175_v49 = vpop.f32.mrf.mxu0 }
 0xbcb   :  { %v1179_v18 = vadd.f32 %v1175_v49, %v2815_v61  ;;  %v1184_v61 = vmul.f32 %v1183_v16, %v2980_v48 }
 0xbcc   :  { %v2393_v21 = vpop.f32.mrf.mxu0 }
 0xbcd   :  { %2546 = vtanh.f32 %v1179_v18 }
 0xbda   :  { %v2547_v26 = vpop.eup %2546 }
 0xbdb   :  { %v1202_v27 = vadd.f32 1.0, %v2547_v26 }
 0xbdd   :  { %v1203_v20 = vmul.f32 0.5, %v1202_v27  ;;  %v2577_v27 = vld [vmem:[%s3247_s3 + $0x10] sm:$0xff] }
 0xbdf   :  { %v1204_v63 = vsel %vm2821_vm4, %v2547_v26, %v1203_v20  ;;  %v2576_v26 = vld [vmem:[%s3247_s3 + $0x18] sm:$0xff]  ;;  %v2578_v20 = vld [vmem:[%s3247_s3 + $0x8] sm:$0xff] }
 0xbe0   :  { %1207 = vrot.lane.b32.xlu0 %v1204_v63, %s2581_s0  ;;  %v1205_v35 = vmul.f32 %v1204_v63, %v2985_v55 }
 0xc34   :  { %v1187_v28 = vpop.permute.xlu1 %1186 }
 0xc35   :  { %v1189_v29 = vmul.f32 %v1187_v28, %v1183_v16 }
 0xc37   :  { %1191 = vrot.lane.b32.xlu1 %v1189_v29, %s2582_s2 }
 0xc52   :  { %v1208_v30 = vpop.permute.xlu0 %1207 }
 0xc53   :  { %v1210_v31 = vmul.f32 %v1208_v30, %v1204_v63 }
 0xc55   :  { %1212 = vrot.lane.b32.xlu0 %v1210_v31, %s2582_s2 }
 0xca9   :  { %v1192_v32 = vpop.permute.xlu1 %1191 }
 0xcaa   :  { %v3026_v33 = vadd.f32 %v1192_v32, %v1184_v61 }
 0xcac   :  { %2548 = vtanh.f32 %v3026_v33 }
 0xcb9   :  { %v2549_v34 = vpop.eup %2548 }
 0xcba   :  { %1197 = vrot.lane.b32.xlu1 %v2549_v34, %s2581_s0 }
 0xcc7   :  { %v1213_v36 = vpop.permute.xlu0 %1212 }
 0xcc8   :  { %v3031_v37 = vadd.f32 %v1213_v36, %v1205_v35 }
 0xcca   :  { %2550 = vtanh.f32 %v3031_v37 }
 0xcd7   :  { %v2551_v38 = vpop.eup %2550 }
 0xcd8   :  { %1218 = vrot.lane.b32.xlu0 %v2551_v38, %s2581_s0 }
 0xd2c   :  { %v1198_v39 = vpop.permute.xlu1 %1197 }
 0xd2d   :  { %v1200_v40 = vmul.f32 %v1198_v39, %v1183_v16 }
 0xd2f   :  { %1223 = vrot.lane.b32.xlu1 %v1200_v40, %s2582_s2 }
 0xd4a   :  { %v1219_v41 = vpop.permute.xlu0 %1218 }
 0xd4b   :  { %v1221_v59 = vmul.f32 %v1219_v41, %v1204_v63 }
 0xd4d   :  { %1228 = vrot.lane.b32.xlu0 %v1221_v59, %s2582_s2 }
 0xda1   :  { %v1224_v42 = vpop.permute.xlu1 %1223 }
 0xda2   :  { %1226 = vst.msk [vmem:[#allocation3 + $0x20] sm:$0xff] %vm233_vm5, %v1224_v42  ;;  %2403 = vmatmul.mubr.msk.f32.vlgmr.msra.gmra.mxu1 %vm233_vm5, %v1224_v42 }
 0xda3   :  { %2417 = vmatpush3.msra.mxu1 %v2656_v8  ;;  %2424 = vmatprep.mubr.msk.f32.mxu1 %vm2580_vm0, %v2579_v3 }
 0xda4   :  { %2418 = vmatprep.subr.mxu1 %v2579_v3 }
 0xda5   :  { %2419 = vmatpush3.msra.mxu1 %v2665_v10 }
 0xda6   :  { %2420 = vmatprep.subr.mxu1 %v2579_v3 }
 0xda7   :  { %2421 = vmatpush3.msra.mxu1 %v2674_v12 }
 0xda8   :  { %2422 = vmatprep.subr.mxu1 %v2579_v3 }
 0xda9   :  { %2423 = vmatpush3.msra.mxu1 %v2687_v15 }
 0xdaa   :  { %2438 = vmatprep.subr.mxu1 %v2579_v3 }
 0xdbf   :  { %v1229_v43 = vpop.permute.xlu0 %1228 }
 0xdc0   :  { %1231 = vst.msk [vmem:[#allocation4 + $0x18] sm:$0xff] %vm233_vm5, %v1229_v43  ;;  %2414 = vmatmul.mubr.msk.f32.vlgmr.msra.gmra.mxu0 %vm233_vm5, %v1229_v43 }
 0xdc1   :  { %2428 = vmatpush3.msra.mxu0 %v2704_v19  ;;  %2435 = vmatprep.mubr.msk.f32.mxu0 %vm2580_vm0, %v2579_v3 }
 0xdc2   :  { %2429 = vmatprep.subr.mxu0 %v2579_v3 }
 0xdc3   :  { %2430 = vmatpush3.msra.mxu0 %v2717_v22 }
 0xdc4   :  { %2431 = vmatprep.subr.mxu0 %v2579_v3 }
 0xdc5   :  { %2432 = vmatpush3.msra.mxu0 %v2727_v24 }
 0xdc6   :  { %2433 = vmatprep.subr.mxu0 %v2579_v3 }
 0xdc7   :  { %2434 = vmatpush3.msra.mxu0 %v2735_v25 }
 0xdc8   :  { %2449 = vmatprep.subr.mxu0 %v2579_v3 }
 0xe62   :  { %v1301_v8 = vpop.f32.mrf.mxu1 }
 0xe63   :  { %v1305_v10 = vadd.f32 %v1301_v8, %v2825_v7  ;;  %v3134_v8 = vld [vmem:[%s3251_s5 + $0x18] sm:$0xff] }
 0xe64   :  { %v2404_v12 = vpop.f32.mrf.mxu1 }
 0xe65   :  { %2552 = vtanh.f32 %v1305_v10 }
 0xe72   :  { %v2553_v44 = vpop.eup %2552 }
 0xe73   :  { %v1381_v46 = vadd.f32 1.0, %v2553_v44 }
 0xe75   :  { %v1382_v2 = vmul.f32 0.5, %v1381_v46 }
 0xe77   :  { %v1383_v47 = vsel %vm2821_vm4, %v2553_v44, %v1382_v2 }
 0xe78   :  { %1386 = vrot.lane.b32.xlu1 %v1383_v47, %s2581_s0 }
 0xe80   :  { %v1375_v48 = vpop.f32.mrf.mxu0 }
 0xe81   :  { %v1379_v50 = vadd.f32 %v1375_v48, %v2811_v56  ;;  %v1384_v56 = vmul.f32 %v1383_v47, %v3026_v33  ;;  %v3144_v48 = vld [vmem:[%s3251_s5 + $0x10] sm:$0xff] }
 0xe82   :  { %v2415_v51 = vpop.f32.mrf.mxu0 }
 0xe83   :  { %2554 = vtanh.f32 %v1379_v50  ;;  %v1832_v50 = vld [vmem:[#allocation3] sm:$0xff]  ;;  %v3153_v51 = vld [vmem:[%s3251_s5 + $0x8] sm:$0xff] }
 0xe90   :  { %v2555_v53 = vpop.eup %2554 }
 0xe91   :  { %v1402_v55 = vadd.f32 1.0, %v2555_v53 }
 0xe93   :  { %v1403_v57 = vmul.f32 0.5, %v1402_v55  ;;  %v1833_v55 = vld [vmem:[#allocation3 + $0x8] sm:$0xff] }
 0xe95   :  { %v1404_v7 = vsel %vm2821_vm4, %v2555_v53, %v1403_v57  ;;  %v3160_v53 = vld [vmem:[%s3251_s5] sm:$0xff]  ;;  %v1834_v57 = vld [vmem:[#allocation3 + $0x10] sm:$0xff] }
 0xe96   :  { %1407 = vrot.lane.b32.xlu0 %v1404_v7, %s2581_s0  ;;  %v1405_v4 = vmul.f32 %v1404_v7, %v3031_v37 }
 0xeea   :  { %v1387_v58 = vpop.permute.xlu1 %1386 }
 0xeeb   :  { %v1389_v54 = vmul.f32 %v1387_v58, %v1383_v47  ;;  %v1836_v58 = vld [vmem:[#allocation3 + $0x20] sm:$0xff] }
 0xeed   :  { %1391 = vrot.lane.b32.xlu1 %v1389_v54, %s2582_s2 }
 0xf08   :  { %v1408_v60 = vpop.permute.xlu0 %1407 }
 0xf09   :  { %v1410_v62 = vmul.f32 %v1408_v60, %v1404_v7 }
 0xf0b   :  { %1412 = vrot.lane.b32.xlu0 %v1410_v62, %s2582_s2 }
 0xf5f   :  { %v1392_v0 = vpop.permute.xlu1 %1391 }
 0xf60   :  { %v3072_v1 = vadd.f32 %v1392_v0, %v1384_v56 }
 0xf62   :  { %2556 = vtanh.f32 %v3072_v1 }
 0xf6f   :  { %v2557_v13 = vpop.eup %2556 }
 0xf70   :  { %1397 = vrot.lane.b32.xlu1 %v2557_v13, %s2581_s0 }
 0xf7d   :  { %v1413_v6 = vpop.permute.xlu0 %1412 }
 0xf7e   :  { %v3077_v9 = vadd.f32 %v1413_v6, %v1405_v4 }
 0xf80   :  { %2558 = vtanh.f32 %v3077_v9 }
 0xf8d   :  { %v2559_v11 = vpop.eup %2558 }
 0xf8e   :  { %1418 = vrot.lane.b32.xlu0 %v2559_v11, %s2581_s0 }
 0xfe2   :  { %v1398_v14 = vpop.permute.xlu1 %1397 }
 0xfe3   :  { %v1400_v16 = vmul.f32 %v1398_v14, %v1383_v47 }
 0xfe5   :  { %1423 = vrot.lane.b32.xlu1 %v1400_v16, %s2582_s2 }
0x1000   :  { %v1419_v49 = vpop.permute.xlu0 %1418 }
0x1001   :  { %v1421_v18 = vmul.f32 %v1419_v49, %v1404_v7  ;;  %v1835_v7 = vld [vmem:[#allocation3 + $0x18] sm:$0xff] }
0x1003   :  { %1428 = vrot.lane.b32.xlu0 %v1421_v18, %s2582_s2 }
0x1057   :  { %v1424_v21 = vpop.permute.xlu1 %1423 }
0x1058   :  { %1426 = vst.msk [vmem:[#allocation3 + $0x28] sm:$0xff] %vm233_vm5, %v1424_v21  ;;  %2425 = vmatmul.mubr.msk.f32.vlgmr.msra.gmra.mxu1 %vm233_vm5, %v1424_v21 }
0x1059   :  { %2439 = vmatpush3.msra.mxu1 %v2576_v26  ;;  %2446 = vmatprep.mubr.msk.f32.mxu1 %vm2580_vm0, %v2579_v3 }
0x105a   :  { %2440 = vmatprep.subr.mxu1 %v2579_v3 }
0x105b   :  { %2441 = vmatpush3.msra.mxu1 %v2577_v27 }
0x105c   :  { %2442 = vmatprep.subr.mxu1 %v2579_v3 }
0x105d   :  { %2443 = vmatpush3.msra.mxu1 %v2578_v20 }
0x105e   :  { %2444 = vmatprep.subr.mxu1 %v2579_v3 }
0x105f   :  { %2445 = vmatpush3.msra.mxu1 %v2687_v15  ;;  %v1837_v54 = vld [vmem:[#allocation3 + $0x28] sm:$0xff] }
0x1075   :  { %v1429_v63 = vpop.permute.xlu0 %1428 }
0x1076   :  { %1431 = vst.msk [vmem:[#allocation4 + $0x10] sm:$0xff] %vm233_vm5, %v1429_v63  ;;  %2436 = vmatmul.mubr.msk.f32.vlgmr.msra.gmra.mxu0 %vm233_vm5, %v1429_v63 }
0x1077   :  { %2450 = vmatpush3.msra.mxu0 %v2704_v19  ;;  %2457 = vmatprep.mubr.msk.f32.mxu0 %vm2580_vm0, %v2579_v3 }
0x1078   :  { %2451 = vmatprep.subr.mxu0 %v2579_v3 }
0x1079   :  { %2452 = vmatpush3.msra.mxu0 %v2717_v22 }
0x107a   :  { %2453 = vmatprep.subr.mxu0 %v2579_v3 }
0x107b   :  { %2454 = vmatpush3.msra.mxu0 %v2727_v24 }
0x107c   :  { %2455 = vmatprep.subr.mxu0 %v2579_v3 }
0x107d   :  { %2456 = vmatpush3.msra.mxu0 %v2735_v25 }
0x107e   :  { %2480 = vmatprep.subr.mxu0 %v3134_v8 }
0x1118   :  { %v1501_v15 = vpop.f32.mrf.mxu1 }
0x1119   :  { %v1505_v28 = vadd.f32 %v1501_v15, %v2832_v17 }
0x111a   :  { %v2426_v29 = vpop.f32.mrf.mxu1 }
0x111b   :  { %2560 = vtanh.f32 %v1505_v28 }
0x1128   :  { %v2561_v19 = vpop.eup %2560 }
0x1129   :  { %v1581_v30 = vadd.f32 1.0, %v2561_v19 }
0x112b   :  { %v1582_v31 = vmul.f32 0.5, %v1581_v30 }
0x112d   :  { %v1583_v61 = vsel %vm2821_vm4, %v2561_v19, %v1582_v31 }
0x112e   :  { %1586 = vrot.lane.b32.xlu1 %v1583_v61, %s2581_s0 }
0x1136   :  { %v1575_v22 = vpop.f32.mrf.mxu0 }
0x1137   :  { %v1579_v24 = vadd.f32 %v1575_v22, %v2807_v52  ;;  %v1584_v52 = vmul.f32 %v1583_v61, %v3072_v1  ;;  %v1854_v22 = vld [vmem:[%s3252_s6 + $0x10] sm:$0xff] }
0x1138   :  { %v2437_v32 = vpop.f32.mrf.mxu0 }
0x1139   :  { %2562 = vtanh.f32 %v1579_v24  ;;  %v1853_v24 = vld [vmem:[%s3252_s6 + $0x8] sm:$0xff]  ;;  %v1852_v32 = vld [vmem:[%s3252_s6] sm:$0xff] }
0x1146   :  { %v2563_v3 = vpop.eup %2562 }
0x1147   :  { %v1602_v25 = vadd.f32 1.0, %v2563_v3 }
0x1149   :  { %v1603_v33 = vmul.f32 0.5, %v1602_v25 }
0x114b   :  { %v1604_v17 = vsel %vm2821_vm4, %v2563_v3, %v1603_v33 }
0x114c   :  { %1607 = vrot.lane.b32.xlu0 %v1604_v17, %s2581_s0  ;;  %v1605_v41 = vmul.f32 %v1604_v17, %v3077_v9 }
0x11a0   :  { %v1587_v34 = vpop.permute.xlu1 %1586 }
0x11a1   :  { %v1589_v35 = vmul.f32 %v1587_v34, %v1583_v61 }
0x11a3   :  { %1591 = vrot.lane.b32.xlu1 %v1589_v35, %s2582_s2 }
0x11be   :  { %v1608_v36 = vpop.permute.xlu0 %1607 }
0x11bf   :  { %v1610_v37 = vmul.f32 %v1608_v36, %v1604_v17  ;;  %v1846_v36 = vld [vmem:[#allocation4 + $0x10] sm:$0xff] }
0x11c1   :  { %1612 = vrot.lane.b32.xlu0 %v1610_v37, %s2582_s2  ;;  %v1847_v37 = vld [vmem:[#allocation4 + $0x18] sm:$0xff] }
0x1215   :  { %v1592_v38 = vpop.permute.xlu1 %1591 }
0x1216   :  { %v3122_v39 = vadd.f32 %v1592_v38, %v1584_v52  ;;  %v1848_v52 = vld [vmem:[#allocation4 + $0x20] sm:$0xff]  ;;  %v1849_v38 = vld [vmem:[#allocation4 + $0x28] sm:$0xff] }
0x1218   :  { %2564 = vtanh.f32 %v3122_v39 }
0x1225   :  { %v2565_v40 = vpop.eup %2564 }
0x1226   :  { %1597 = vrot.lane.b32.xlu1 %v2565_v40, %s2581_s0  ;;  %v1851_v40 = vld [vmem:[#allocation4 + $0x38] sm:$0xff] }
0x1233   :  { %v1613_v59 = vpop.permute.xlu0 %1612 }
0x1234   :  { %v3127_v42 = vadd.f32 %v1613_v59, %v1605_v41 }
0x1236   :  { %2566 = vtanh.f32 %v3127_v42 }
0x1243   :  { %v2567_v43 = vpop.eup %2566 }
0x1244   :  { %1618 = vrot.lane.b32.xlu0 %v2567_v43, %s2581_s0 }
0x1298   :  { %v1598_v10 = vpop.permute.xlu1 %1597 }
0x1299   :  { %v1600_v12 = vmul.f32 %v1598_v10, %v1583_v61  ;;  %v1855_v61 = vld [vmem:[%s3252_s6 + $0x18] sm:$0xff] }
0x129a   :  { %2460 = vmatprep.subr.mxu1 %v1855_v61 }
0x129b   :  { %1623 = vrot.lane.b32.xlu1 %v1600_v12, %s2582_s2  ;;  %v2179_v12 = vld [vmem:[%s3253_s7] ss:$0 sm:$0xff] }
0x12b6   :  { %v1619_v44 = vpop.permute.xlu0 %1618 }
0x12b7   :  { %v1621_v46 = vmul.f32 %v1619_v44, %v1604_v17 }
0x12b9   :  { %1628 = vrot.lane.b32.xlu0 %v1621_v46, %s2582_s2 }
0x130d   :  { %v1624_v2 = vpop.permute.xlu1 %1623 }
0x130e   :  { %1626 = vst.msk [vmem:[#allocation3 + $0x30] sm:$0xff] %vm233_vm5, %v1624_v2  ;;  %2447 = vmatmul.mubr.msk.f32.vlgmr.msra.gmra.mxu1 %vm233_vm5, %v1624_v2 }
0x130f   :  { %2461 = vmatpush3.msra.mxu1 %v1855_v61 }
0x1310   :  { %2462 = vmatprep.subr.mxu1 %v1854_v22 }
0x1311   :  { %2463 = vmatpush3.msra.mxu1 %v1854_v22 }
0x1312   :  { %2464 = vmatprep.subr.mxu1 %v1853_v24 }
0x1313   :  { %2465 = vmatpush3.msra.mxu1 %v1853_v24 }
0x1314   :  { %2466 = vmatprep.subr.mxu1 %v1852_v32 }
0x1315   :  { %2467 = vmatpush3.msra.mxu1 %v1852_v32  ;;  %v1838_v41 = vld [vmem:[#allocation3 + $0x30] sm:$0xff] }
0x1316   :  { %2500 = vmatprep.subr.mxu1 %v3134_v8 }
0x132b   :  { %v1629_v47 = vpop.permute.xlu0 %1628 }
0x132c   :  { %1631 = vst.msk [vmem:[#allocation4 + $0x8] sm:$0xff] %vm233_vm5, %v1629_v47  ;;  %2458 = vmatmul.mubr.msk.f32.vlgmr.msra.gmra.mxu0 %vm233_vm5, %v1629_v47 }
0x132d   :  { %2481 = vmatpush3.msra.mxu0 %v3134_v8  ;;  %2488 = vmatprep.mubr.msk.f32.mxu0 %vm233_vm5, %v1832_v50 }
0x132e   :  { %2482 = vmatprep.subr.mxu0 %v3144_v48 }
0x132f   :  { %2483 = vmatpush3.msra.mxu0 %v3144_v48 }
0x1330   :  { %2484 = vmatprep.subr.mxu0 %v3153_v51 }
0x1331   :  { %2485 = vmatpush3.msra.mxu0 %v3153_v51 }
0x1332   :  { %2486 = vmatprep.subr.mxu0 %v3160_v53 }
0x1333   :  { %2487 = vmatpush3.msra.mxu0 %v3160_v53  ;;  %v1845_v35 = vld [vmem:[#allocation4 + $0x8] sm:$0xff] }
0x1334   :  { %2489 = vmatmul.mubr.msk.f32.vlgmr.msra.gmra.mxu0 %vm233_vm5, %v1833_v55 }
0x1335   :  { %2491 = vmatprep.mubr.msk.f32.mxu0 %vm233_vm5, %v1834_v57 }
0x1338   :  { %2492 = vmatmul.mubr.msk.f32.gmra.mxu0 %vm233_vm5, %v1835_v7 }
0x1339   :  { %2494 = vmatprep.mubr.msk.f32.mxu0 %vm233_vm5, %v1836_v58 }
0x133c   :  { %2495 = vmatmul.mubr.msk.f32.gmra.mxu0 %vm233_vm5, %v1837_v54 }
0x13ce   :  { %v1701_v60 = vpop.f32.mrf.mxu1 }
0x13cf   :  { %v1705_v62 = vadd.f32 %v1701_v60, %v2836_v23 }
0x13d0   :  { %v2448_v56 = vpop.f32.mrf.mxu1 }
0x13d1   :  { %2568 = vtanh.f32 %v1705_v62 }
0x13de   :  { %v2569_v0 = vpop.eup %2568 }
0x13df   :  { %v1781_v1 = vadd.f32 1.0, %v2569_v0 }
0x13e1   :  { %v1782_v13 = vmul.f32 0.5, %v1781_v1 }
0x13e3   :  { %v1783_v4 = vsel %vm2821_vm4, %v2569_v0, %v1782_v13 }
0x13e4   :  { %1786 = vrot.lane.b32.xlu1 %v1783_v4, %s2581_s0 }
0x13ec   :  { %v1775_v6 = vpop.f32.mrf.mxu0 }
0x13ed   :  { %v1779_v9 = vadd.f32 %v1775_v6, %v2803_v45  ;;  %v1784_v45 = vmul.f32 %v1783_v4, %v3122_v39  ;;  %v1850_v39 = vld [vmem:[#allocation4 + $0x30] sm:$0xff] }
0x13ee   :  { %v2459_v11 = vpop.f32.mrf.mxu0 }
0x13ef   :  { %2570 = vtanh.f32 %v1779_v9 }
0x13fc   :  { %v2571_v14 = vpop.eup %2570 }
0x13fd   :  { %v1802_v16 = vadd.f32 1.0, %v2571_v14 }
0x13ff   :  { %v1803_v49 = vmul.f32 0.5, %v1802_v16 }
0x1401   :  { %v1804_v23 = vsel %vm2821_vm4, %v2571_v14, %v1803_v49 }
0x1402   :  { %1807 = vrot.lane.b32.xlu0 %v1804_v23, %s2581_s0  ;;  %v1805_v5 = vmul.f32 %v1804_v23, %v3127_v42  ;;  %v2490_v42 = vpop.f32.mrf.mxu0 }
0x1404   :  { %v2075_v43 = vpop.f32.mrf.mxu0 }
0x1456   :  { %v1787_v18 = vpop.permute.xlu1 %1786 }
0x1457   :  { %v1789_v21 = vmul.f32 %v1787_v18, %v1783_v4 }
0x1459   :  { %1791 = vrot.lane.b32.xlu1 %v1789_v21, %s2582_s2 }
0x1474   :  { %v1808_v26 = vpop.permute.xlu0 %1807 }
0x1475   :  { %v1810_v27 = vmul.f32 %v1808_v26, %v1804_v23 }
0x1477   :  { %1812 = vrot.lane.b32.xlu0 %v1810_v27, %s2582_s2 }
0x14cb   :  { %v1792_v20 = vpop.permute.xlu1 %1791 }
0x14cc   :  { %v1794_v63 = vadd.f32 %v1792_v20, %v1784_v45 }
0x14ce   :  { %2572 = vtanh.f32 %v1794_v63 }
0x14db   :  { %v2573_v15 = vpop.eup %2572 }
0x14dc   :  { %1797 = vrot.lane.b32.xlu1 %v2573_v15, %s2581_s0 }
0x14e9   :  { %v1813_v28 = vpop.permute.xlu0 %1812 }
0x14ea   :  { %v1815_v29 = vadd.f32 %v1813_v28, %v1805_v5 }
0x14ec   :  { %2574 = vtanh.f32 %v1815_v29 }
0x14f9   :  { %v2575_v19 = vpop.eup %2574 }
0x14fa   :  { %1818 = vrot.lane.b32.xlu0 %v2575_v19, %s2581_s0 }
0x154e   :  { %v1798_v30 = vpop.permute.xlu1 %1797 }
0x154f   :  { %v1800_v31 = vmul.f32 %v1798_v30, %v1783_v4 }
0x1551   :  { %1823 = vrot.lane.b32.xlu1 %v1800_v31, %s2582_s2 }
0x156c   :  { %v1819_v3 = vpop.permute.xlu0 %1818 }
0x156d   :  { %v1821_v25 = vmul.f32 %v1819_v3, %v1804_v23 }
0x156f   :  { %1828 = vrot.lane.b32.xlu0 %v1821_v25, %s2582_s2 }
0x15c3   :  { %v1824_v33 = vpop.permute.xlu1 %1823 }
0x15c4   :  { %1826 = vst.msk [vmem:[#allocation3 + $0x38] sm:$0xff] %vm233_vm5, %v1824_v33 }
0x15cb   :  { %v1839_v59 = vld [vmem:[#allocation3 + $0x38] sm:$0xff] }
0x15e1   :  { %v1829_v17 = vpop.permute.xlu0 %1828 }
0x15e2   :  { %1831 = vst.msk [vmem:[#allocation4] sm:$0xff] %vm233_vm5, %v1829_v17 }
0x15e9   :  { %v1844_v34 = vld [vmem:[#allocation4] sm:$0xff] }
0x15ea   :  { %2468 = vmatprep.mubr.msk.f32.mxu1 %vm233_vm5, %v1844_v34 }
0x15eb   :  { %2469 = vmatmul.mubr.msk.f32.vlgmr.msra.gmra.mxu1 %vm233_vm5, %v1845_v35 }
0x15ec   :  { %2504 = vmatpush3.msra.mxu1 %v3134_v8  ;;  %2471 = vmatprep.mubr.msk.f32.mxu1 %vm233_vm5, %v1846_v36  ;;  %v2493_v8 = vpop.f32.mrf.mxu0 }
0x15ed   :  { %2501 = vmatprep.subr.mxu1 %v3144_v48 }
0x15ee   :  { %2505 = vmatpush3.msra.mxu1 %v3144_v48  ;;  %v2085_v46 = vpop.f32.mrf.mxu0 }
0x15ef   :  { %2472 = vmatmul.mubr.msk.f32.gmra.mxu1 %vm233_vm5, %v1847_v37  ;;  %2502 = vmatprep.subr.mxu1 %v3153_v51 }
0x15f0   :  { %2474 = vmatprep.mubr.msk.f32.mxu1 %vm233_vm5, %v1848_v52  ;;  %2506 = vmatpush3.msra.mxu1 %v3153_v51  ;;  %v2496_v55 = vpop.f32.mrf.mxu0 }
0x15f1   :  { %2503 = vmatprep.subr.mxu1 %v3160_v53 }
0x15f2   :  { %2507 = vmatpush3.msra.mxu1 %v3160_v53  ;;  %v2095_v56 = vpop.f32.mrf.mxu0 }
0x15f3   :  { %2475 = vmatmul.mubr.msk.f32.gmra.mxu1 %vm233_vm5, %v1849_v38 }
0x15f4   :  { %2477 = vmatprep.mubr.msk.f32.mxu1 %vm233_vm5, %v1850_v39 }
0x15f7   :  { %2478 = vmatmul.mubr.msk.f32.gmra.mxu1 %vm233_vm5, %v1851_v40 }
0x15f8   :  { %2497 = vmatprep.mubr.msk.f32.mxu1 %vm233_vm5, %v1838_v41 }
0x15fb   :  { %2498 = vmatmul.mubr.msk.f32.vlgmr.msra.gmra.mxu1 %vm233_vm5, %v1839_v59 }
0x16ab   :  { %v2470_v10 = vpop.f32.mrf.mxu1 }
0x16ac   :  { %v2081_v44 = vadd.f32 %v2490_v42, %v2470_v10 }
0x16ad   :  { %v1946_v2 = vpop.f32.mrf.mxu1 }
0x16ae   :  { %v2122_v47 = vadd.f32 %v2179_v12, %v2081_v44  ;;  %v2076_v48 = vadd.f32 %v2075_v43, %v1946_v2 }
0x16af   :  { %v2473_v50 = vpop.f32.mrf.mxu1 }
0x16b0   :  { %2130 = vst [vmem:[%s3254_s8 + $0x8] sm:$0xff] %v2122_v47  ;;  %v2121_v51 = vadd.f32 %v2179_v12, %v2076_v48  ;;  %v2091_v53 = vadd.f32 %v2493_v8, %v2473_v50 }
0x16b1   :  { %v1956_v57 = vpop.f32.mrf.mxu1 }
0x16b2   :  { %2129 = vst [vmem:[%s3254_s8] sm:$0xff] %v2121_v51  ;;  %v2124_v7 = vadd.f32 %v2179_v12, %v2091_v53  ;;  %v2086_v58 = vadd.f32 %v2085_v46, %v1956_v57 }
0x16b3   :  { %v2476_v54 = vpop.f32.mrf.mxu1 }
0x16b4   :  { %2132 = vst [vmem:[%s3254_s8 + $0x18] sm:$0xff] %v2124_v7  ;;  %v2123_v60 = vadd.f32 %v2179_v12, %v2086_v58  ;;  %v2101_v62 = vadd.f32 %v2496_v55, %v2476_v54 }
0x16b5   :  { %v1966_v0 = vpop.f32.mrf.mxu1 }
0x16b6   :  { %2131 = vst [vmem:[%s3254_s8 + $0x10] sm:$0xff] %v2123_v60  ;;  %v2126_v1 = vadd.f32 %v2179_v12, %v2101_v62  ;;  %v2096_v13 = vadd.f32 %v2095_v56, %v1966_v0 }
0x16b7   :  { %v2479_v4 = vpop.f32.mrf.mxu1 }
0x16b8   :  { %2134 = vst [vmem:[%s3254_s8 + $0x28] sm:$0xff] %v2126_v1  ;;  %v2125_v6 = vadd.f32 %v2179_v12, %v2096_v13 }
0x16b9   :  { %v1976_v9 = vpop.f32.mrf.mxu1 }
0x16ba   :  { %2133 = vst [vmem:[%s3254_s8 + $0x20] sm:$0xff] %v2125_v6 }
0x16bb   :  { %v2499_v11 = vpop.f32.mrf.mxu1 }
0x16bc   :  { %v2111_v14 = vadd.f32 %v2499_v11, %v2479_v4 }
0x16bd   :  { %v2105_v16 = vpop.f32.mrf.mxu1 }
0x16be   :  { %v2128_v49 = vadd.f32 %v2179_v12, %v2111_v14  ;;  %v2106_v23 = vadd.f32 %v2105_v16, %v1976_v9 }
0x16c0   :  { %2136 = vst [vmem:[%s3254_s8 + $0x38] sm:$0xff] %v2128_v49  ;;  %v2127_v18 = vadd.f32 %v2179_v12, %v2106_v23 }
0x16c2   :  { %2135 = vst [vmem:[%s3254_s8 + $0x30] sm:$0xff] %v2127_v18 }

</bundles_post_ra>
